<compile_context>
chip_gen: v7x
topology: tpu7x:2x2x1
jax: 0.10.0
libtpu: 0.0.40
codegen_flags: <defaults>
</compile_context>

<pallas_src>
import functools

import jax
import jax.numpy as jnp
from jax.experimental import pallas as pl
from jax.experimental.pallas import tpu as pltpu


def _round_up(x, m):
    return (x + m - 1) // m * m


# -----------------------------------------------------------------------------
# Fused matmul kernels:  Y = leaky_relu_or_identity((X @ W) * scale + shift)
# -----------------------------------------------------------------------------
def _mm_kernel_single(x_ref, w_ref, scale_ref, shift_ref, o_ref, *, neg_slope):
    # Single K step: no accumulator scratch, no init/finalize branches.
    y = jnp.dot(x_ref[...], w_ref[...], preferred_element_type=jnp.float32)
    y = y * scale_ref[...] + shift_ref[...]
    if neg_slope is not None:          # static (trace-time) switch
        y = jnp.where(y >= 0, y, y * neg_slope)
    o_ref[...] = y.astype(o_ref.dtype)


def _mm_kernel_multi(x_ref, w_ref, scale_ref, shift_ref, o_ref, acc_ref,
                     *, neg_slope):
    @pl.when(pl.program_id(2) == 0)
    def _():
        acc_ref[...] = jnp.zeros_like(acc_ref)

    acc_ref[...] += jnp.dot(x_ref[...], w_ref[...],
                            preferred_element_type=jnp.float32)

    @pl.when(pl.program_id(2) == pl.num_programs(2) - 1)
    def _():
        y = acc_ref[...] * scale_ref[...] + shift_ref[...]
        if neg_slope is not None:
            y = jnp.where(y >= 0, y, y * neg_slope)
        o_ref[...] = y.astype(o_ref.dtype)


def _pick_tiles(M, K, N):
    # N tile (lane axis): full dim when small (no pad, W resident across M),
    # otherwise lane-dense 256/128.
    if N <= 256:
        tn = N
    elif N % 256 == 0:
        tn = 256
    elif N % 128 == 0:
        tn = 128
    else:
        tn = 256  # padded fallback
    # K tile: single reduction step whenever it fits VMEM comfortably.
    tk = K if K <= 2048 else 2048
    # M tile: large M -> big unpadded tiles; small M with a single N block ->
    # split in two so both v7x TensorCores get a "parallel" block.
    if M > 512:
        tm = next((c for c in (512, 256, 128) if M % c == 0), 256)
    elif N <= 256 and M >= 32 and M % 16 == 0:
        tm = M // 2
    else:
        tm = M
    return tm, tk, tn


def fused_matmul(x, w, scale, shift, *, neg_slope=None, out_dtype=jnp.float32):
    """act((x @ w) * scale + shift) computed by a single Pallas MXU kernel.

    x: (M, K), w: (K, N); cast to bf16 for the MXU.  scale/shift: (N,) f32
    per-output-channel (folds conv bias / inference-mode BatchNorm).
    """
    M, K = x.shape
    K2, N = w.shape
    assert K == K2, (K, K2)

    tm, tk, tn = _pick_tiles(M, K, N)
    Mp, Kp, Np = _round_up(M, tm), _round_up(K, tk), _round_up(N, tn)

    xb = x.astype(jnp.bfloat16)
    wb = w.astype(jnp.bfloat16)
    if (Mp, Kp) != (M, K):
        xb = jnp.pad(xb, ((0, Mp - M), (0, Kp - K)))
    if (Kp, Np) != (K, N):
        wb = jnp.pad(wb, ((0, Kp - K), (0, Np - N)))
    scale_p = scale.astype(jnp.float32).reshape(1, N)
    shift_p = shift.astype(jnp.float32).reshape(1, N)
    if Np != N:
        scale_p = jnp.pad(scale_p, ((0, 0), (0, Np - N)))
        shift_p = jnp.pad(shift_p, ((0, 0), (0, Np - N)))

    mb, nb, kb = Mp // tm, Np // tn, Kp // tk

    cost = pl.CostEstimate(
        flops=2 * Mp * Np * Kp,
        transcendentals=0,
        bytes_accessed=2 * (Mp * Kp + Kp * Np)
        + jnp.dtype(out_dtype).itemsize * Mp * Np + 8 * Np)

    cparams = pltpu.CompilerParams(
        dimension_semantics=(("parallel", "parallel") if kb == 1 else
                             ("parallel", "parallel", "arbitrary")),
        vmem_limit_bytes=32 * 1024 * 1024)

    if kb == 1:
        out = pl.pallas_call(
            functools.partial(_mm_kernel_single, neg_slope=neg_slope),
            out_shape=jax.ShapeDtypeStruct((Mp, Np), out_dtype),
            grid_spec=pltpu.PrefetchScalarGridSpec(
                num_scalar_prefetch=0,
                grid=(mb, nb),
                in_specs=[
                    pl.BlockSpec((tm, Kp), lambda i, j: (i, 0)),
                    pl.BlockSpec((Kp, tn), lambda i, j: (0, j)),
                    pl.BlockSpec((1, tn), lambda i, j: (0, j)),
                    pl.BlockSpec((1, tn), lambda i, j: (0, j)),
                ],
                out_specs=pl.BlockSpec((tm, tn), lambda i, j: (i, j)),
            ),
            compiler_params=cparams,
            cost_estimate=cost,
        )(xb, wb, scale_p, shift_p)
    else:
        out = pl.pallas_call(
            functools.partial(_mm_kernel_multi, neg_slope=neg_slope),
            out_shape=jax.ShapeDtypeStruct((Mp, Np), out_dtype),
            grid_spec=pltpu.PrefetchScalarGridSpec(
                num_scalar_prefetch=0,
                grid=(mb, nb, kb),
                in_specs=[
                    pl.BlockSpec((tm, tk), lambda i, j, k: (i, k)),
                    pl.BlockSpec((tk, tn), lambda i, j, k: (k, j)),
                    pl.BlockSpec((1, tn), lambda i, j, k: (0, j)),
                    pl.BlockSpec((1, tn), lambda i, j, k: (0, j)),
                ],
                out_specs=pl.BlockSpec((tm, tn), lambda i, j, k: (i, j)),
                scratch_shapes=[pltpu.VMEM((tm, tn), jnp.float32)],
            ),
            compiler_params=cparams,
            cost_estimate=cost,
        )(xb, wb, scale_p, shift_p)

    if (Mp, Np) != (M, N):
        out = out[:M, :N]
    return out


# -----------------------------------------------------------------------------
# Conv2d(k=4, s=2, p=1) as im2col + fused Pallas matmul (+affine +LeakyReLU)
# -----------------------------------------------------------------------------
def conv2d_fused(x_nhwc, w_oihw, scale, shift, *, neg_slope=0.2,
                 k=4, s=2, p=1, out_dtype=jnp.bfloat16):
    N, H, W, Cin = x_nhwc.shape
    Cout = w_oihw.shape[0]
    Ho = (H + 2 * p - k) // s + 1
    Wo = (W + 2 * p - k) // s + 1

    xp = jnp.pad(x_nhwc, ((0, 0), (p, p), (p, p), (0, 0)))
    cols = []
    for kh in range(k):
        for kw in range(k):
            cols.append(xp[:, kh:kh + s * (Ho - 1) + 1:s,
                           kw:kw + s * (Wo - 1) + 1:s, :])
    patches = jnp.concatenate(cols, axis=-1)          # (N, Ho, Wo, k*k*Cin)
    patches = patches.reshape(N * Ho * Wo, k * k * Cin)

    # (Cout, Cin, kh, kw) -> (kh, kw, Cin, Cout) -> (k*k*Cin, Cout); matches
    # the (kh, kw, cin) feature ordering of the patches above.  (Constant-
    # folded by jit since the weights are compile-time constants.)
    wm = jnp.transpose(w_oihw, (2, 3, 1, 0)).reshape(k * k * Cin, Cout)

    y = fused_matmul(patches, wm, scale, shift, neg_slope=neg_slope,
                     out_dtype=out_dtype)
    return y.reshape(N, Ho, Wo, Cout)


def avg_pool2(x_nhwc):
    """AvgPool2d(kernel_size=2) on a tiny tail tensor (fused JAX reshape+mean)."""
    N, H, W, C = x_nhwc.shape
    return x_nhwc.reshape(N, H // 2, 2, W // 2, 2, C).mean(axis=(2, 4))


class View:
    """Mirror of the PyTorch `View` module.  A contiguous view is metadata
    only, so no Pallas kernel / no HBM traffic."""

    def __init__(self, *shape):
        self.shape = shape

    def __call__(self, x):
        return x.reshape(self.shape)


# -----------------------------------------------------------------------------
# Discriminator
# -----------------------------------------------------------------------------
class DiscriminatorPallas:
    IMAGE_SHAPE = {'mnist': (1, 28, 28), 'f_mnist': (1, 28, 28),
                   'cifar10': (3, 32, 32), 'cifar100': (3, 32, 32),
                   'celeba': (3, 64, 64), 'lsun': (3, 64, 64),
                   'afhq': (3, 128, 128)}

    def __init__(self, model_type, key):
        self.model_type = model_type
        ndf, ngs = 64, 512
        nc, nsize, _ = self.IMAGE_SHAPE[model_type]
        if nsize == 32:
            chans = [nc, ndf, ndf * 2, ndf * 4]
        elif nsize == 64:
            chans = [nc, ndf, ndf * 2, ndf * 4, ndf * 8]
        elif nsize == 128:
            chans = [nc, ndf, ndf * 2, ndf * 4, ndf * 8, ndf * 16]
        else:
            raise AssertionError()
        self.feat_dim = chans[-1]

        eps = 1e-5
        self.conv_layers = []
        for li in range(len(chans) - 1):
            cin, cout = chans[li], chans[li + 1]
            key, kw, kb, kg, kbe, krm, krv = jax.random.split(key, 7)
            w = 0.05 * jax.random.normal(kw, (cout, cin, 4, 4), jnp.float32)
            if li == 0:
                # First conv: bias=True, no BatchNorm.
                scale = jnp.ones((cout,), jnp.float32)
                shift = 0.05 * jax.random.normal(kb, (cout,), jnp.float32)
            else:
                # bias=False conv followed by BatchNorm2d.
                # TODO(synk): training-mode BatchNorm (batch statistics) is not
                # implemented; inference-mode running-stats affine is fused
                # into the matmul epilogue as (scale, shift).
                gamma = 1.0 + 0.1 * jax.random.normal(kg, (cout,), jnp.float32)
                beta = 0.1 * jax.random.normal(kbe, (cout,), jnp.float32)
                rmean = 0.1 * jax.random.normal(krm, (cout,), jnp.float32)
                rvar = jax.random.uniform(krv, (cout,), jnp.float32, 0.5, 1.5)
                scale = gamma * jax.lax.rsqrt(rvar + eps)
                shift = beta - rmean * scale
            self.conv_layers.append((w, scale, shift))

        key, kwl, kbl = jax.random.split(key, 3)
        # Stored as (in_features, out_features) so the kernel computes x @ W.
        self.w_fc = 0.05 * jax.random.normal(kwl, (self.feat_dim, ngs),
                                             jnp.float32)
        self.b_fc = 0.05 * jax.random.normal(kbl, (ngs,), jnp.float32)
        self.fc_scale = jnp.ones((ngs,), jnp.float32)
        self.view = View(-1, self.feat_dim)

        # Whole forward pass under one jit: the im2col / transpose plumbing
        # fuses around the pallas_calls and dispatch overhead disappears.
        self._jit_forward = jax.jit(self._forward)

    def _forward(self, x_nchw):
        # Internal layout is NHWC so channels sit on the 128-lane axis.
        x = jnp.transpose(x_nchw, (0, 2, 3, 1))
        for w, scale, shift in self.conv_layers:
            x = conv2d_fused(x, w, scale, shift, neg_slope=0.2,
                             out_dtype=jnp.bfloat16)
        x = avg_pool2(x)
        # Back to NCHW so View(-1, feat) matches torch's row-major semantics.
        x = jnp.transpose(x, (0, 3, 1, 2))
        flat = self.view(x)
        return fused_matmul(flat, self.w_fc, self.fc_scale, self.b_fc,
                            neg_slope=None, out_dtype=jnp.float32)

    def __call__(self, x_nchw):
        return self._jit_forward(x_nchw)


# -----------------------------------------------------------------------------
# Pure-JAX reference (f32, HIGHEST precision) for correctness validation
# -----------------------------------------------------------------------------
def reference_forward(disc, x_nchw):
    x = jnp.transpose(x_nchw, (0, 2, 3, 1))
    for w, scale, shift in disc.conv_layers:
        y = jax.lax.conv_general_dilated(
            x, jnp.transpose(w, (2, 3, 1, 0)),
            window_strides=(2, 2), padding=((1, 1), (1, 1)),
            dimension_numbers=("NHWC", "HWIO", "NHWC"),
            precision=jax.lax.Precision.HIGHEST)
        y = y * scale + shift
        x = jnp.where(y >= 0, y, 0.2 * y)
    x = avg_pool2(x)
    flat = jnp.transpose(x, (0, 3, 1, 2)).reshape(-1, disc.feat_dim)
    return jnp.dot(flat, disc.w_fc,
                   precision=jax.lax.Precision.HIGHEST) + disc.b_fc


if __name__ == "__main__":
    root = jax.random.PRNGKey(0)
    pkey, xkey = jax.random.split(root)

    # cifar10 config: smallest supported image shape (3, 32, 32), batch=2.
    disc = DiscriminatorPallas("cifar10", pkey)
    x = jax.random.normal(xkey, (2, 3, 32, 32), dtype=jnp.float32)  # NCHW

    y = jax.block_until_ready(disc(x))
    # After AvgPool the map is (N, 256, 2, 2); View(-1, 256) -> (4N, 256);
    # Linear(256, 512) -> (4N, 512).
    assert y.shape == (2 * 4, 512), y.shape
    assert y.dtype == jnp.float32

    y_ref = jax.block_until_ready(reference_forward(disc, x))
    err = float(jnp.max(jnp.abs(y.astype(jnp.float32) - y_ref)))
    ref_max = float(jnp.max(jnp.abs(y_ref)))
    assert err <= 5e-2 * max(1.0, ref_max), (
        f"max abs error {err} (ref max {ref_max})")

    print("KERNEL_OK")
</pallas_src>

<mosaic_0001>
module attributes {stable_mosaic.version = 11 : i64} {
  func.func @_mm_kernel_single(%arg0: i32, %arg1: i32, %arg2: memref<256x48xbf16, #tpu.memory_space<vmem>>, %arg3: memref<48x64xbf16, #tpu.memory_space<vmem>>, %arg4: memref<1x64xf32, #tpu.memory_space<vmem>>, %arg5: memref<1x64xf32, #tpu.memory_space<vmem>>, %arg6: memref<256x64xbf16, #tpu.memory_space<vmem>>) attributes {dimension_semantics = [#tpu.dimension_semantics<parallel>, #tpu.dimension_semantics<parallel>], iteration_bounds = array<i64: 2, 1>, scalar_prefetch = 0 : i64, scratch_operands = 0 : i64, tpu.core_type = #tpu.core_type<tc>, window_params = [{transform_indices = @transform_0, window_bounds = array<i64: 256, 48>}, {transform_indices = @transform_1, window_bounds = array<i64: 48, 64>}, {transform_indices = @transform_2, window_bounds = array<i64: 1, 64>}, {transform_indices = @transform_3, window_bounds = array<i64: 1, 64>}, {transform_indices = @transform_4, window_bounds = array<i64: 256, 64>}]} {
    %c0 = arith.constant 0 : index
    %c0_0 = arith.constant 0 : index
    %0 = vector.load %arg2[%c0, %c0_0] : memref<256x48xbf16, #tpu.memory_space<vmem>>, vector<256x48xbf16>
    %c0_1 = arith.constant 0 : index
    %c0_2 = arith.constant 0 : index
    %1 = vector.load %arg3[%c0_1, %c0_2] : memref<48x64xbf16, #tpu.memory_space<vmem>>, vector<48x64xbf16>
    %cst = arith.constant dense<0.000000e+00> : vector<256x64xf32>
    %2 = tpu.matmul %0, %1, %cst {dimension_numbers = #tpu.dot_dimension_numbers<[1], [0], [0], [1], [0, 0, 1, 1], [], []>} : vector<256x48xbf16>, vector<48x64xbf16>, vector<256x64xf32> -> vector<256x64xf32>
    %c0_3 = arith.constant 0 : index
    %c0_4 = arith.constant 0 : index
    %3 = vector.load %arg4[%c0_3, %c0_4] : memref<1x64xf32, #tpu.memory_space<vmem>>, vector<1x64xf32>
    %4 = vector.broadcast %3 : vector<1x64xf32> to vector<256x64xf32>
    %5 = arith.mulf %2, %4 : vector<256x64xf32>
    %c0_5 = arith.constant 0 : index
    %c0_6 = arith.constant 0 : index
    %6 = vector.load %arg5[%c0_5, %c0_6] : memref<1x64xf32, #tpu.memory_space<vmem>>, vector<1x64xf32>
    %7 = vector.broadcast %6 : vector<1x64xf32> to vector<256x64xf32>
    %8 = arith.addf %5, %7 : vector<256x64xf32>
    %cst_7 = arith.constant 0.000000e+00 : f32
    %9 = vector.broadcast %cst_7 : f32 to vector<256x64xf32>
    %10 = arith.cmpf oge, %8, %9 : vector<256x64xf32>
    %cst_8 = arith.constant 2.000000e-01 : f32
    %11 = vector.broadcast %cst_8 : f32 to vector<256x64xf32>
    %12 = arith.mulf %8, %11 : vector<256x64xf32>
    %13 = arith.select %10, %8, %12 : vector<256x64xi1>, vector<256x64xf32>
    %14 = arith.truncf %13 : vector<256x64xf32> to vector<256x64xbf16>
    %c0_9 = arith.constant 0 : index
    %c0_10 = arith.constant 0 : index
    %15 = vector.load %arg6[%c0_9, %c0_10] : memref<256x64xbf16, #tpu.memory_space<vmem>>, vector<256x64xbf16>
    tpu.vector_store %arg6[%c0_9, %c0_10], %14 {strides = array<i32>} : memref<256x64xbf16, #tpu.memory_space<vmem>>, vector<256x64xbf16>,
    return
  }
  func.func @transform_0(%arg0: i32, %arg1: i32) -> (i32, i32) {
    %c0_i32 = arith.constant 0 : i32
    %c0_i32_0 = arith.constant 0 : i32
    return %arg0, %c0_i32 : i32, i32
  }
  func.func @transform_1(%arg0: i32, %arg1: i32) -> (i32, i32) {
    %c0_i32 = arith.constant 0 : i32
    %c0_i32_0 = arith.constant 0 : i32
    return %c0_i32, %arg1 : i32, i32
  }
  func.func @transform_2(%arg0: i32, %arg1: i32) -> (i32, i32) {
    %c0_i32 = arith.constant 0 : i32
    %c0_i32_0 = arith.constant 0 : i32
    return %c0_i32, %arg1 : i32, i32
  }
  func.func @transform_3(%arg0: i32, %arg1: i32) -> (i32, i32) {
    %c0_i32 = arith.constant 0 : i32
    %c0_i32_0 = arith.constant 0 : i32
    return %c0_i32, %arg1 : i32, i32
  }
  func.func @transform_4(%arg0: i32, %arg1: i32) -> (i32, i32) {
    %c0_i32 = arith.constant 0 : i32
    return %arg0, %arg1 : i32, i32
  }
}

module attributes {stable_mosaic.version = 11 : i64} {
  func.func @_mm_kernel_single(%arg0: i32, %arg1: i32, %arg2: memref<64x1024xbf16, #tpu.memory_space<vmem>>, %arg3: memref<1024x128xbf16, #tpu.memory_space<vmem>>, %arg4: memref<1x128xf32, #tpu.memory_space<vmem>>, %arg5: memref<1x128xf32, #tpu.memory_space<vmem>>, %arg6: memref<64x128xbf16, #tpu.memory_space<vmem>>) attributes {dimension_semantics = [#tpu.dimension_semantics<parallel>, #tpu.dimension_semantics<parallel>], iteration_bounds = array<i64: 2, 1>, scalar_prefetch = 0 : i64, scratch_operands = 0 : i64, tpu.core_type = #tpu.core_type<tc>, window_params = [{transform_indices = @transform_0, window_bounds = array<i64: 64, 1024>}, {transform_indices = @transform_1, window_bounds = array<i64: 1024, 128>}, {transform_indices = @transform_2, window_bounds = array<i64: 1, 128>}, {transform_indices = @transform_3, window_bounds = array<i64: 1, 128>}, {transform_indices = @transform_4, window_bounds = array<i64: 64, 128>}]} {
    %c0 = arith.constant 0 : index
    %c0_0 = arith.constant 0 : index
    %0 = vector.load %arg2[%c0, %c0_0] : memref<64x1024xbf16, #tpu.memory_space<vmem>>, vector<64x1024xbf16>
    %c0_1 = arith.constant 0 : index
    %c0_2 = arith.constant 0 : index
    %1 = vector.load %arg3[%c0_1, %c0_2] : memref<1024x128xbf16, #tpu.memory_space<vmem>>, vector<1024x128xbf16>
    %cst = arith.constant dense<0.000000e+00> : vector<64x128xf32>
    %2 = tpu.matmul %0, %1, %cst {dimension_numbers = #tpu.dot_dimension_numbers<[1], [0], [0], [1], [0, 0, 1, 1], [], []>} : vector<64x1024xbf16>, vector<1024x128xbf16>, vector<64x128xf32> -> vector<64x128xf32>
    %c0_3 = arith.constant 0 : index
    %c0_4 = arith.constant 0 : index
    %3 = vector.load %arg4[%c0_3, %c0_4] : memref<1x128xf32, #tpu.memory_space<vmem>>, vector<1x128xf32>
    %4 = vector.broadcast %3 : vector<1x128xf32> to vector<64x128xf32>
    %5 = arith.mulf %2, %4 : vector<64x128xf32>
    %c0_5 = arith.constant 0 : index
    %c0_6 = arith.constant 0 : index
    %6 = vector.load %arg5[%c0_5, %c0_6] : memref<1x128xf32, #tpu.memory_space<vmem>>, vector<1x128xf32>
    %7 = vector.broadcast %6 : vector<1x128xf32> to vector<64x128xf32>
    %8 = arith.addf %5, %7 : vector<64x128xf32>
    %cst_7 = arith.constant 0.000000e+00 : f32
    %9 = vector.broadcast %cst_7 : f32 to vector<64x128xf32>
    %10 = arith.cmpf oge, %8, %9 : vector<64x128xf32>
    %cst_8 = arith.constant 2.000000e-01 : f32
    %11 = vector.broadcast %cst_8 : f32 to vector<64x128xf32>
    %12 = arith.mulf %8, %11 : vector<64x128xf32>
    %13 = arith.select %10, %8, %12 : vector<64x128xi1>, vector<64x128xf32>
    %14 = arith.truncf %13 : vector<64x128xf32> to vector<64x128xbf16>
    %c0_9 = arith.constant 0 : index
    %c0_10 = arith.constant 0 : index
    %15 = vector.load %arg6[%c0_9, %c0_10] : memref<64x128xbf16, #tpu.memory_space<vmem>>, vector<64x128xbf16>
    tpu.vector_store %arg6[%c0_9, %c0_10], %14 {strides = array<i32>} : memref<64x128xbf16, #tpu.memory_space<vmem>>, vector<64x128xbf16>,
    return
  }
  func.func @transform_0(%arg0: i32, %arg1: i32) -> (i32, i32) {
    %c0_i32 = arith.constant 0 : i32
    %c0_i32_0 = arith.constant 0 : i32
    return %arg0, %c0_i32 : i32, i32
  }
  func.func @transform_1(%arg0: i32, %arg1: i32) -> (i32, i32) {
    %c0_i32 = arith.constant 0 : i32
    %c0_i32_0 = arith.constant 0 : i32
    return %c0_i32, %arg1 : i32, i32
  }
  func.func @transform_2(%arg0: i32, %arg1: i32) -> (i32, i32) {
    %c0_i32 = arith.constant 0 : i32
    %c0_i32_0 = arith.constant 0 : i32
    return %c0_i32, %arg1 : i32, i32
  }
  func.func @transform_3(%arg0: i32, %arg1: i32) -> (i32, i32) {
    %c0_i32 = arith.constant 0 : i32
    %c0_i32_0 = arith.constant 0 : i32
    return %c0_i32, %arg1 : i32, i32
  }
  func.func @transform_4(%arg0: i32, %arg1: i32) -> (i32, i32) {
    %c0_i32 = arith.constant 0 : i32
    return %arg0, %arg1 : i32, i32
  }
}

module attributes {stable_mosaic.version = 11 : i64} {
  func.func @_mm_kernel_single(%arg0: i32, %arg1: i32, %arg2: memref<16x2048xbf16, #tpu.memory_space<vmem>>, %arg3: memref<2048x256xbf16, #tpu.memory_space<vmem>>, %arg4: memref<1x256xf32, #tpu.memory_space<vmem>>, %arg5: memref<1x256xf32, #tpu.memory_space<vmem>>, %arg6: memref<16x256xbf16, #tpu.memory_space<vmem>>) attributes {dimension_semantics = [#tpu.dimension_semantics<parallel>, #tpu.dimension_semantics<parallel>], iteration_bounds = array<i64: 2, 1>, scalar_prefetch = 0 : i64, scratch_operands = 0 : i64, tpu.core_type = #tpu.core_type<tc>, window_params = [{transform_indices = @transform_0, window_bounds = array<i64: 16, 2048>}, {transform_indices = @transform_1, window_bounds = array<i64: 2048, 256>}, {transform_indices = @transform_2, window_bounds = array<i64: 1, 256>}, {transform_indices = @transform_3, window_bounds = array<i64: 1, 256>}, {transform_indices = @transform_4, window_bounds = array<i64: 16, 256>}]} {
    %c0 = arith.constant 0 : index
    %c0_0 = arith.constant 0 : index
    %0 = vector.load %arg2[%c0, %c0_0] : memref<16x2048xbf16, #tpu.memory_space<vmem>>, vector<16x2048xbf16>
    %c0_1 = arith.constant 0 : index
    %c0_2 = arith.constant 0 : index
    %1 = vector.load %arg3[%c0_1, %c0_2] : memref<2048x256xbf16, #tpu.memory_space<vmem>>, vector<2048x256xbf16>
    %cst = arith.constant dense<0.000000e+00> : vector<16x256xf32>
    %2 = tpu.matmul %0, %1, %cst {dimension_numbers = #tpu.dot_dimension_numbers<[1], [0], [0], [1], [0, 0, 1, 1], [], []>} : vector<16x2048xbf16>, vector<2048x256xbf16>, vector<16x256xf32> -> vector<16x256xf32>
    %c0_3 = arith.constant 0 : index
    %c0_4 = arith.constant 0 : index
    %3 = vector.load %arg4[%c0_3, %c0_4] : memref<1x256xf32, #tpu.memory_space<vmem>>, vector<1x256xf32>
    %4 = vector.broadcast %3 : vector<1x256xf32> to vector<16x256xf32>
    %5 = arith.mulf %2, %4 : vector<16x256xf32>
    %c0_5 = arith.constant 0 : index
    %c0_6 = arith.constant 0 : index
    %6 = vector.load %arg5[%c0_5, %c0_6] : memref<1x256xf32, #tpu.memory_space<vmem>>, vector<1x256xf32>
    %7 = vector.broadcast %6 : vector<1x256xf32> to vector<16x256xf32>
    %8 = arith.addf %5, %7 : vector<16x256xf32>
    %cst_7 = arith.constant 0.000000e+00 : f32
    %9 = vector.broadcast %cst_7 : f32 to vector<16x256xf32>
    %10 = arith.cmpf oge, %8, %9 : vector<16x256xf32>
    %cst_8 = arith.constant 2.000000e-01 : f32
    %11 = vector.broadcast %cst_8 : f32 to vector<16x256xf32>
    %12 = arith.mulf %8, %11 : vector<16x256xf32>
    %13 = arith.select %10, %8, %12 : vector<16x256xi1>, vector<16x256xf32>
    %14 = arith.truncf %13 : vector<16x256xf32> to vector<16x256xbf16>
    %c0_9 = arith.constant 0 : index
    %c0_10 = arith.constant 0 : index
    %15 = vector.load %arg6[%c0_9, %c0_10] : memref<16x256xbf16, #tpu.memory_space<vmem>>, vector<16x256xbf16>
    tpu.vector_store %arg6[%c0_9, %c0_10], %14 {strides = array<i32>} : memref<16x256xbf16, #tpu.memory_space<vmem>>, vector<16x256xbf16>,
    return
  }
  func.func @transform_0(%arg0: i32, %arg1: i32) -> (i32, i32) {
    %c0_i32 = arith.constant 0 : i32
    %c0_i32_0 = arith.constant 0 : i32
    return %arg0, %c0_i32 : i32, i32
  }
  func.func @transform_1(%arg0: i32, %arg1: i32) -> (i32, i32) {
    %c0_i32 = arith.constant 0 : i32
    %c0_i32_0 = arith.constant 0 : i32
    return %c0_i32, %arg1 : i32, i32
  }
  func.func @transform_2(%arg0: i32, %arg1: i32) -> (i32, i32) {
    %c0_i32 = arith.constant 0 : i32
    %c0_i32_0 = arith.constant 0 : i32
    return %c0_i32, %arg1 : i32, i32
  }
  func.func @transform_3(%arg0: i32, %arg1: i32) -> (i32, i32) {
    %c0_i32 = arith.constant 0 : i32
    %c0_i32_0 = arith.constant 0 : i32
    return %c0_i32, %arg1 : i32, i32
  }
  func.func @transform_4(%arg0: i32, %arg1: i32) -> (i32, i32) {
    %c0_i32 = arith.constant 0 : i32
    return %arg0, %arg1 : i32, i32
  }
}

module attributes {stable_mosaic.version = 11 : i64} {
  func.func @_mm_kernel_single(%arg0: i32, %arg1: i32, %arg2: memref<8x256xbf16, #tpu.memory_space<vmem>>, %arg3: memref<256x256xbf16, #tpu.memory_space<vmem>>, %arg4: memref<1x256xf32, #tpu.memory_space<vmem>>, %arg5: memref<1x256xf32, #tpu.memory_space<vmem>>, %arg6: memref<8x256xf32, #tpu.memory_space<vmem>>) attributes {dimension_semantics = [#tpu.dimension_semantics<parallel>, #tpu.dimension_semantics<parallel>], iteration_bounds = array<i64: 1, 2>, scalar_prefetch = 0 : i64, scratch_operands = 0 : i64, tpu.core_type = #tpu.core_type<tc>, window_params = [{transform_indices = @transform_0, window_bounds = array<i64: 8, 256>}, {transform_indices = @transform_1, window_bounds = array<i64: 256, 256>}, {transform_indices = @transform_2, window_bounds = array<i64: 1, 256>}, {transform_indices = @transform_3, window_bounds = array<i64: 1, 256>}, {transform_indices = @transform_4, window_bounds = array<i64: 8, 256>}]} {
    %c0 = arith.constant 0 : index
    %c0_0 = arith.constant 0 : index
    %0 = vector.load %arg2[%c0, %c0_0] : memref<8x256xbf16, #tpu.memory_space<vmem>>, vector<8x256xbf16>
    %c0_1 = arith.constant 0 : index
    %c0_2 = arith.constant 0 : index
    %1 = vector.load %arg3[%c0_1, %c0_2] : memref<256x256xbf16, #tpu.memory_space<vmem>>, vector<256x256xbf16>
    %cst = arith.constant dense<0.000000e+00> : vector<8x256xf32>
    %2 = tpu.matmul %0, %1, %cst {dimension_numbers = #tpu.dot_dimension_numbers<[1], [0], [0], [1], [0, 0, 1, 1], [], []>} : vector<8x256xbf16>, vector<256x256xbf16>, vector<8x256xf32> -> vector<8x256xf32>
    %c0_3 = arith.constant 0 : index
    %c0_4 = arith.constant 0 : index
    %3 = vector.load %arg4[%c0_3, %c0_4] : memref<1x256xf32, #tpu.memory_space<vmem>>, vector<1x256xf32>
    %4 = vector.broadcast %3 : vector<1x256xf32> to vector<8x256xf32>
    %5 = arith.mulf %2, %4 : vector<8x256xf32>
    %c0_5 = arith.constant 0 : index
    %c0_6 = arith.constant 0 : index
    %6 = vector.load %arg5[%c0_5, %c0_6] : memref<1x256xf32, #tpu.memory_space<vmem>>, vector<1x256xf32>
    %7 = vector.broadcast %6 : vector<1x256xf32> to vector<8x256xf32>
    %8 = arith.addf %5, %7 : vector<8x256xf32>
    %c0_7 = arith.constant 0 : index
    %c0_8 = arith.constant 0 : index
    %9 = vector.load %arg6[%c0_7, %c0_8] : memref<8x256xf32, #tpu.memory_space<vmem>>, vector<8x256xf32>
    tpu.vector_store %arg6[%c0_7, %c0_8], %8 {strides = array<i32>} : memref<8x256xf32, #tpu.memory_space<vmem>>, vector<8x256xf32>,
    return
  }
  func.func @transform_0(%arg0: i32, %arg1: i32) -> (i32, i32) {
    %c0_i32 = arith.constant 0 : i32
    %c0_i32_0 = arith.constant 0 : i32
    return %arg0, %c0_i32 : i32, i32
  }
  func.func @transform_1(%arg0: i32, %arg1: i32) -> (i32, i32) {
    %c0_i32 = arith.constant 0 : i32
    %c0_i32_0 = arith.constant 0 : i32
    return %c0_i32, %arg1 : i32, i32
  }
  func.func @transform_2(%arg0: i32, %arg1: i32) -> (i32, i32) {
    %c0_i32 = arith.constant 0 : i32
    %c0_i32_0 = arith.constant 0 : i32
    return %c0_i32, %arg1 : i32, i32
  }
  func.func @transform_3(%arg0: i32, %arg1: i32) -> (i32, i32) {
    %c0_i32 = arith.constant 0 : i32
    %c0_i32_0 = arith.constant 0 : i32
    return %c0_i32, %arg1 : i32, i32
  }
  func.func @transform_4(%arg0: i32, %arg1: i32) -> (i32, i32) {
    %c0_i32 = arith.constant 0 : i32
    return %arg0, %arg1 : i32, i32
  }
}

</mosaic_0001>

<bundles_post_ra>
// kernel: _forward.4
= control target key start
LH: loop header
LB: loop body
LE: loop exit
PB: predicated region body
PF: predicated region fallthrough
CT: control target
= control target key end

     0   :  { %s1332_s15 = smov 0   ;;  %s1334_s16 = smov 0   ;;  %s1582_s0 = inlined_call_operand.vmem [shape: bf16[512,48], index: 0, kind: input, shape index: {}]   ;;  %s1583_s1 = inlined_call_operand.vmem [shape: bf16[48,64], index: 1, kind: input, shape index: {}]   ;;  %s1584_s2 = inlined_call_operand.vmem [shape: f32[1,64], index: 2, kind: input, shape index: {}]   ;;  %s1585_s3 = inlined_call_operand.vmem [shape: f32[1,64], index: 3, kind: input, shape index: {}]   ;;  %s1586_s4 = inlined_call_operand.vmem [shape: bf16[512,64], index: 4, kind: output, shape index: {}]  }
   0x1   :  { %s1336_s17 = smov 0  }
   0x2 LB: > { %s26_s18 = sadd.s32 1, %s1301_s16  ;;  %p1069_p0 = scmp.ge.s32.totalorder %s1305_s17, 1  ;;  %s1305_s17 = sphi %s1336_s17, %s14_s17   ;;  %s1301_s16 = sphi %s1334_s16, %s1588_s16   ;;  %s1297_s15 = sphi %s1332_s15, %s1587_s15  }
   0x3   : > { %p28_p1 = scmp.ge.s32.totalorder %s26_s18, 2  ;;  %p202_p2 = scmp.lt.s32.totalorder %s1305_s17, 3 }
   0x5   : > { %s1590_s18 = smov (%p28_p1, %s26_s18), 0  ;;  %p203_p3 = pnand %p1069_p0, %p202_p2 }
   0x6   : > { %v1264_v0 = vld [vmem:[%s1583_s1] sm:$0xff] (!%p203_p3)   ;;  %s1070_s21 = sshll.u32 (!%p203_p3), %s1297_s15, 5  ;;  %v1265_v1 = vld [vmem:[%s1583_s1 + $0x8] sm:$0xff] (!%p203_p3)   ;;  %v1266_v2 = vld [vmem:[%s1583_s1 + $0x10] sm:$0xff] (!%p203_p3)   ;;  %vm403_vm0 = vcmask (!%p203_p3), 392192   ;;  %vm915_vm1 = vcmask (!%p203_p3), 519168  }
   0x7   : > { %206 = sbr.rel (%p203_p3) target bundleno = 286 (0x11e), region = 36  ;;  %p242_p4 = scmp.lt.s32.totalorder (!%p203_p3), %s1070_s21, 63  ;;  %1196 = vmatprep.subr.bf16.mxu0 (!%p203_p3), %v1264_v0  ;;  %1234 = vmatprep.subr.bf16.mxu1 (!%p203_p3), %v1264_v0  ;;  %v1404_v19 = vld [vmem:[%s1584_s2] ss:$0 sm:$0xff] (!%p203_p3) }
   0x8   : > { %1197 = vmatpush3.bf16.msra.mxu0 (!%p203_p3), %v1264_v0  ;;  %1237 = vmatpush3.bf16.msra.mxu1 (!%p203_p3), %v1264_v0  ;;  %v1409_v21 = vld [vmem:[%s1585_s3] ss:$0 sm:$0xff] (!%p203_p3) }
   0x9   : > { %1198 = vmatprep.subr.bf16.mxu0 (!%p203_p3), %v1265_v1  ;;  %1235 = vmatprep.subr.bf16.mxu1 (!%p203_p3), %v1265_v1 }
   0xc   : > { %1199 = vmatpush3.bf16.msra.mxu0 (!%p203_p3), %v1265_v1  ;;  %1238 = vmatpush3.bf16.msra.mxu1 (!%p203_p3), %v1265_v1 }
   0xd   : > { %1200 = vmatprep.subr.bf16.mxu0 (!%p203_p3), %v1266_v2  ;;  %1236 = vmatprep.subr.bf16.mxu1 (!%p203_p3), %v1266_v2 }
   0xe   : > { %s1592_s21 = smov (!%p242_p4, %s1070_s21), 63 }
   0xf   : > { %s1071_s26 = sshll.u32 %s1592_s21, 2 }
  0x10   : > { %s1367_s29 = scalar_lea.vmem %s1582_s0, %s1071_s26  ;;  %1201 = vmatpush3.bf16.msra.mxu0 %v1266_v2  ;;  %1239 = vmatpush3.bf16.msra.mxu1 %v1266_v2  ;;  %s1428_s10 = scalar_lea.vmem %s1586_s4, %s1071_s26 }
  0x11   : > { %v1267_v3 = vld [vmem:[%s1367_s29] sm:$0xff]   ;;  %v1269_v5 = vld [vmem:[%s1367_s29 + $0x8] sm:$0xff]   ;;  %v1271_v7 = vld [vmem:[%s1367_s29 + $0x10] sm:$0xff]  }
  0x12   : > { %v1268_v4 = vld [vmem:[%s1367_s29 + $0x40] sm:$0xff]   ;;  %1202 = vmatprep.mubr.msk.bf16.mxu0 %vm403_vm0, %v1267_v3  ;;  %v1270_v6 = vld [vmem:[%s1367_s29 + $0x48] sm:$0xff]   ;;  %v1272_v8 = vld [vmem:[%s1367_s29 + $0x50] sm:$0xff]  }
  0x13   : > { %1218 = vmatprep.mubr.msk.bf16.mxu1 %vm403_vm0, %v1268_v4  ;;  %1203 = vmatmul.mubr.msk.bf16.vlgmr.msra.gmra.mrb[0].mxu0 %vm403_vm0, %v1269_v5  ;;  %v1273_v9 = vld [vmem:[%s1367_s29 + $0x18] sm:$0xff]   ;;  %v1275_v11 = vld [vmem:[%s1367_s29 + $0x20] sm:$0xff]   ;;  %v1277_v13 = vld [vmem:[%s1367_s29 + $0x28] sm:$0xff]  }
  0x14   : > { %1219 = vmatmul.mubr.msk.bf16.vlgmr.msra.gmra.mrb[0].mxu1 %vm403_vm0, %v1270_v6  ;;  %1206 = vmatprep.mubr.msk.bf16.mxu0 %vm403_vm0, %v1271_v7  ;;  %v1274_v10 = vld [vmem:[%s1367_s29 + $0x58] sm:$0xff]   ;;  %v1276_v12 = vld [vmem:[%s1367_s29 + $0x60] sm:$0xff]   ;;  %v1278_v14 = vld [vmem:[%s1367_s29 + $0x68] sm:$0xff]  }
  0x15   : > { %1222 = vmatprep.mubr.msk.bf16.mxu1 %vm403_vm0, %v1272_v8  ;;  %v1279_v15 = vld [vmem:[%s1367_s29 + $0x30] sm:$0xff]   ;;  %v1281_v17 = vld [vmem:[%s1367_s29 + $0x38] sm:$0xff]  }
  0x16   : > { %v1280_v16 = vld [vmem:[%s1367_s29 + $0x70] sm:$0xff]   ;;  %v1282_v18 = vld [vmem:[%s1367_s29 + $0x78] sm:$0xff]  }
  0x1b   : > { %1207 = vmatmul.mubr.msk.bf16.gmra.mrb[4].mxu0 %vm403_vm0, %v1273_v9 }
  0x1c   : > { %1223 = vmatmul.mubr.msk.bf16.gmra.mrb[4].mxu1 %vm403_vm0, %v1274_v10  ;;  %1210 = vmatprep.mubr.msk.bf16.mxu0 %vm403_vm0, %v1275_v11 }
  0x1d   : > { %1226 = vmatprep.mubr.msk.bf16.mxu1 %vm403_vm0, %v1276_v12 }
  0x23   : > { %1211 = vmatmul.mubr.msk.bf16.gmra.mrb[8].mxu0 %vm403_vm0, %v1277_v13 }
  0x24   : > { %1227 = vmatmul.mubr.msk.bf16.gmra.mrb[8].mxu1 %vm403_vm0, %v1278_v14  ;;  %1214 = vmatprep.mubr.msk.bf16.mxu0 %vm403_vm0, %v1279_v15 }
  0x25   : > { %1230 = vmatprep.mubr.msk.bf16.mxu1 %vm403_vm0, %v1280_v16 }
  0x2b   : > { %1215 = vmatmul.mubr.msk.bf16.gmra.mrb[12].mxu0 %vm403_vm0, %v1281_v17 }
  0x2c   : > { %1231 = vmatmul.mubr.msk.bf16.gmra.mrb[12].mxu1 %vm403_vm0, %v1282_v18 }
  0xe6   : > { %v1204_v20 = vpop.f32.mrb[0].mxu0 }
  0xe7   : > { %v1220_v22 = vpop.f32.mrb[0].mxu1  ;;  %v622_v23 = vmul.f32 %v1204_v20, %v1404_v19  ;;  %v486_v25 = vpop.f32.mrb[1].mxu0 }
  0xe8   : > { %v638_v24 = vmul.f32 %v1220_v22, %v1404_v19  ;;  %v550_v26 = vpop.f32.mrb[1].mxu1  ;;  %v620_v27 = vmul.f32 %v1404_v19, %v486_v25  ;;  %v1205_v29 = vpop.f32.mrb[2].mxu0 }
  0xe9   : > { %v636_v28 = vmul.f32 %v1404_v19, %v550_v26  ;;  %v1221_v30 = vpop.f32.mrb[2].mxu1  ;;  %v661_v31 = vadd.f32 %v1409_v21, %v622_v23  ;;  %v623_v33 = vmul.f32 %v1205_v29, %v1404_v19  ;;  %v489_v35 = vpop.f32.mrb[3].mxu0 }
  0xea   : > { %v677_v32 = vadd.f32 %v1409_v21, %v638_v24  ;;  %v639_v34 = vmul.f32 %v1221_v30, %v1404_v19  ;;  %v553_v36 = vpop.f32.mrb[3].mxu1  ;;  %v659_v37 = vadd.f32 %v1409_v21, %v620_v27  ;;  %v621_v39 = vmul.f32 %v1404_v19, %v489_v35 }
  0xeb   : > { %v675_v38 = vadd.f32 %v1409_v21, %v636_v28  ;;  %v637_v40 = vmul.f32 %v1404_v19, %v553_v36  ;;  %vm693_vm2 = vcmp.ge.f32.partialorder %v661_v31, 0.0  ;;  %v725_v41 = vmul.f32 0.2, %v661_v31 }
  0xec   : > { %vm709_vm3 = vcmp.ge.f32.partialorder %v677_v32, 0.0  ;;  %v741_v42 = vmul.f32 0.2, %v677_v32  ;;  %vm691_vm4 = vcmp.ge.f32.partialorder %v659_v37, 0.0  ;;  %v723_v43 = vmul.f32 0.2, %v659_v37 }
  0xed   : > { %vm707_vm5 = vcmp.ge.f32.partialorder %v675_v38, 0.0  ;;  %v739_v44 = vmul.f32 0.2, %v675_v38  ;;  %v757_v45 = vsel %vm693_vm2, %v661_v31, %v725_v41  ;;  %v662_v47 = vadd.f32 %v1409_v21, %v623_v33 }
  0xee   : > { %v773_v46 = vsel %vm709_vm3, %v677_v32, %v741_v42  ;;  %v678_v48 = vadd.f32 %v1409_v21, %v639_v34  ;;  %v1147_v49 = vpack.c.bf16 %v757_v45, %v757_v45  ;;  %v755_v51 = vsel %vm691_vm4, %v659_v37, %v723_v43  ;;  %v1208_v53 = vpop.f32.mrb[4].mxu0 }
  0xef   : > { %v1163_v50 = vpack.c.bf16 %v773_v46, %v773_v46  ;;  %v771_v52 = vsel %vm707_vm5, %v675_v38, %v739_v44  ;;  %v1224_v54 = vpop.f32.mrb[4].mxu1  ;;  %v1145_v55 = vpack.c.bf16 %v755_v51, %v755_v51  ;;  %vm694_vm6 = vcmp.ge.f32.partialorder %v662_v47, 0.0  ;;  %v502_v58 = vpop.f32.mrb[5].mxu0 }
  0xf0   : > { %v1161_v56 = vpack.c.bf16 %v771_v52, %v771_v52  ;;  %v726_v57 = vmul.f32 0.2, %v662_v47  ;;  %v566_v59 = vpop.f32.mrb[5].mxu1  ;;  %918 = vst.msk [vmem:[%s1428_s10 + $0x8] sm:$0xf] %vm915_vm1, %v1147_v49  ;;  %vm710_vm7 = vcmp.ge.f32.partialorder %v678_v48, 0.0  ;;  %v660_v61 = vadd.f32 %v1409_v21, %v621_v39 }
  0xf1   : > { %934 = vst.msk [vmem:[%s1428_s10 + $0x48] sm:$0xf] %vm915_vm1, %v1163_v50  ;;  %v742_v60 = vmul.f32 0.2, %v678_v48  ;;  %v676_v62 = vadd.f32 %v1409_v21, %v637_v40  ;;  %v1209_v63 = vpop.f32.mrb[6].mxu0  ;;  %v1225_v0 = vpop.f32.mrb[6].mxu1  ;;  %v626_v2 = vmul.f32 %v1208_v53, %v1404_v19  ;;  %v642_v3 = vmul.f32 %v1224_v54, %v1404_v19 }
  0xf2   : > { %916 = vst.msk [vmem:[%s1428_s10] sm:$0xf] %vm915_vm1, %v1145_v55  ;;  %932 = vst.msk [vmem:[%s1428_s10 + $0x40] sm:$0xf] %vm915_vm1, %v1161_v56  ;;  %v758_v1 = vsel %vm694_vm6, %v662_v47, %v726_v57  ;;  %v624_v4 = vmul.f32 %v1404_v19, %v502_v58  ;;  %v505_v5 = vpop.f32.mrb[7].mxu0  ;;  %v569_v6 = vpop.f32.mrb[7].mxu1  ;;  %v640_v16 = vmul.f32 %v1404_v19, %v566_v59 }
  0xf3   : > { %v1148_v7 = vpack.c.bf16 %v758_v1, %v758_v1  ;;  %v774_v8 = vsel %vm710_vm7, %v678_v48, %v742_v60  ;;  %vm692_vm8 = vcmp.ge.f32.partialorder %v660_v61, 0.0  ;;  %v724_v9 = vmul.f32 0.2, %v660_v61 }
  0xf4   : > { %v1164_v10 = vpack.c.bf16 %v774_v8, %v774_v8  ;;  %vm708_vm9 = vcmp.ge.f32.partialorder %v676_v62, 0.0  ;;  %v740_v11 = vmul.f32 0.2, %v676_v62  ;;  %v665_v12 = vadd.f32 %v1409_v21, %v626_v2 }
  0xf5   : > { %919 = vst.msk [vmem:[%s1428_s10 + $0xc] sm:$0xf] %vm915_vm1, %v1148_v7  ;;  %v756_v13 = vsel %vm692_vm8, %v660_v61, %v724_v9  ;;  %v681_v14 = vadd.f32 %v1409_v21, %v642_v3  ;;  %v663_v15 = vadd.f32 %v1409_v21, %v624_v4  ;;  %v679_v28 = vadd.f32 %v1409_v21, %v640_v16 }
  0xf6   : > { %935 = vst.msk [vmem:[%s1428_s10 + $0x4c] sm:$0xf] %vm915_vm1, %v1164_v10  ;;  %v1146_v17 = vpack.c.bf16 %v756_v13, %v756_v13  ;;  %v772_v18 = vsel %vm708_vm9, %v676_v62, %v740_v11  ;;  %vm697_vm10 = vcmp.ge.f32.partialorder %v665_v12, 0.0  ;;  %v729_v20 = vmul.f32 0.2, %v665_v12  ;;  %v1212_v24 = vpop.f32.mrb[8].mxu0 }
  0xf7   : > { %v1162_v22 = vpack.c.bf16 %v772_v18, %v772_v18  ;;  %vm713_vm11 = vcmp.ge.f32.partialorder %v681_v14, 0.0  ;;  %v745_v23 = vmul.f32 0.2, %v681_v14  ;;  %vm695_vm12 = vcmp.ge.f32.partialorder %v663_v15, 0.0  ;;  %v1228_v25 = vpop.f32.mrb[8].mxu1  ;;  %v518_v30 = vpop.f32.mrb[9].mxu0 }
  0xf8   : > { %917 = vst.msk [vmem:[%s1428_s10 + $0x4] sm:$0xf] %vm915_vm1, %v1146_v17  ;;  %v761_v26 = vsel %vm697_vm10, %v665_v12, %v729_v20  ;;  %v727_v27 = vmul.f32 0.2, %v663_v15  ;;  %v627_v29 = vmul.f32 %v1209_v63, %v1404_v19  ;;  %v582_v31 = vpop.f32.mrb[9].mxu1  ;;  %v643_v34 = vmul.f32 %v1225_v0, %v1404_v19  ;;  %v1213_v36 = vpop.f32.mrb[10].mxu0 }
  0xf9   : > { %933 = vst.msk [vmem:[%s1428_s10 + $0x44] sm:$0xf] %vm915_vm1, %v1162_v22  ;;  %v1151_v32 = vpack.c.bf16 %v761_v26, %v761_v26  ;;  %v777_v33 = vsel %vm713_vm11, %v681_v14, %v745_v23  ;;  %v625_v35 = vmul.f32 %v1404_v19, %v505_v5  ;;  %v1229_v37 = vpop.f32.mrb[10].mxu1  ;;  %vm711_vm13 = vcmp.ge.f32.partialorder %v679_v28, 0.0  ;;  %v1462_v41 = vpop.f32.mrb[11].mxu0 }
  0xfa   : > { %v1167_v38 = vpack.c.bf16 %v777_v33, %v777_v33  ;;  %v759_v39 = vsel %vm695_vm12, %v663_v15, %v727_v27  ;;  %v743_v40 = vmul.f32 0.2, %v679_v28  ;;  %v1464_v42 = vpop.f32.mrb[11].mxu1  ;;  %v666_v44 = vadd.f32 %v1409_v21, %v627_v29 }
  0xfb   : > { %922 = vst.msk [vmem:[%s1428_s10 + $0x18] sm:$0xf] %vm915_vm1, %v1151_v32  ;;  %v1149_v43 = vpack.c.bf16 %v759_v39, %v759_v39  ;;  %v682_v45 = vadd.f32 %v1409_v21, %v643_v34  ;;  %v664_v46 = vadd.f32 %v1409_v21, %v625_v35  ;;  %v641_v48 = vmul.f32 %v1404_v19, %v569_v6 }
  0xfc   : > { %938 = vst.msk [vmem:[%s1428_s10 + $0x58] sm:$0xf] %vm915_vm1, %v1167_v38  ;;  %v775_v47 = vsel %vm711_vm13, %v679_v28, %v743_v40  ;;  %v630_v49 = vmul.f32 %v1212_v24, %v1404_v19  ;;  %v646_v50 = vmul.f32 %v1228_v25, %v1404_v19  ;;  %vm698_vm14 = vcmp.ge.f32.partialorder %v666_v44, 0.0 }
  0xfd   : > { %920 = vst.msk [vmem:[%s1428_s10 + $0x10] sm:$0xf] %vm915_vm1, %v1149_v43  ;;  %v1165_v51 = vpack.c.bf16 %v775_v47, %v775_v47  ;;  %v730_v52 = vmul.f32 0.2, %v666_v44  ;;  %vm714_vm15 = vcmp.ge.f32.partialorder %v682_v45, 0.0  ;;  %vm696_vm0 = vcmp.ge.f32.partialorder %v664_v46, 0.0 }
  0xfe   : > { %v746_v53 = vmul.f32 0.2, %v682_v45  ;;  %v728_v54 = vmul.f32 0.2, %v664_v46  ;;  %v680_v55 = vadd.f32 %v1409_v21, %v641_v48  ;;  %v669_v57 = vadd.f32 %v1409_v21, %v630_v49  ;;  %v1216_v60 = vpop.f32.mrb[12].mxu0 }
  0xff   : > { %936 = vst.msk [vmem:[%s1428_s10 + $0x50] sm:$0xf] %vm915_vm1, %v1165_v51  ;;  %v762_v56 = vsel %vm698_vm14, %v666_v44, %v730_v52  ;;  %v685_v58 = vadd.f32 %v1409_v21, %v646_v50  ;;  %v628_v59 = vmul.f32 %v1404_v19, %v518_v30  ;;  %v1232_v61 = vpop.f32.mrb[12].mxu1  ;;  %v1484_v1 = vpop.f32.mrb[13].mxu0  ;;  %v644_v13 = vmul.f32 %v1404_v19, %v582_v31 }
 0x100   : > { %v1152_v62 = vpack.c.bf16 %v762_v56, %v762_v56  ;;  %v778_v63 = vsel %vm714_vm15, %v682_v45, %v746_v53  ;;  %v760_v0 = vsel %vm696_vm0, %v664_v46, %v728_v54  ;;  %vm712_vm2 = vcmp.ge.f32.partialorder %v680_v55, 0.0  ;;  %v1486_v2 = vpop.f32.mrb[13].mxu1  ;;  %v1488_v6 = vpop.f32.mrb[14].mxu0 }
 0x101   : > { %v1168_v3 = vpack.c.bf16 %v778_v63, %v778_v63  ;;  %v1150_v4 = vpack.c.bf16 %v760_v0, %v760_v0  ;;  %v744_v5 = vmul.f32 0.2, %v680_v55  ;;  %vm701_vm3 = vcmp.ge.f32.partialorder %v669_v57, 0.0  ;;  %v1490_v7 = vpop.f32.mrb[14].mxu1  ;;  %v1495_v11 = vpop.f32.mrb[15].mxu0 }
 0x102   : > { %923 = vst.msk [vmem:[%s1428_s10 + $0x1c] sm:$0xf] %vm915_vm1, %v1152_v62  ;;  %v733_v8 = vmul.f32 0.2, %v669_v57  ;;  %vm717_vm4 = vcmp.ge.f32.partialorder %v685_v58, 0.0  ;;  %v667_v10 = vadd.f32 %v1409_v21, %v628_v59  ;;  %v631_v14 = vmul.f32 %v1213_v36, %v1404_v19  ;;  %v1505_v16 = vpop.f32.mrb[15].mxu1 }
 0x103   : > { %v749_v9 = vmul.f32 0.2, %v685_v58  ;;  %939 = vst.msk [vmem:[%s1428_s10 + $0x5c] sm:$0xf] %vm915_vm1, %v1168_v3  ;;  %921 = vst.msk [vmem:[%s1428_s10 + $0x14] sm:$0xf] %vm915_vm1, %v1150_v4  ;;  %v776_v12 = vsel %vm712_vm2, %v680_v55, %v744_v5  ;;  %v647_v15 = vmul.f32 %v1229_v37, %v1404_v19  ;;  %v683_v25 = vadd.f32 %v1409_v21, %v644_v13 }
 0x104   : > { %v1166_v17 = vpack.c.bf16 %v776_v12, %v776_v12  ;;  %v765_v18 = vsel %vm701_vm3, %v669_v57, %v733_v8  ;;  %vm699_vm5 = vcmp.ge.f32.partialorder %v667_v10, 0.0  ;;  %v731_v24 = vmul.f32 0.2, %v667_v10 }
 0x105   : > { %v781_v20 = vsel %vm717_vm4, %v685_v58, %v749_v9  ;;  %v1155_v22 = vpack.c.bf16 %v765_v18, %v765_v18  ;;  %v670_v26 = vadd.f32 %v1409_v21, %v631_v14  ;;  %v686_v27 = vadd.f32 %v1409_v21, %v647_v15 }
 0x106   : > { %v1171_v23 = vpack.c.bf16 %v781_v20, %v781_v20  ;;  %937 = vst.msk [vmem:[%s1428_s10 + $0x54] sm:$0xf] %vm915_vm1, %v1166_v17  ;;  %v629_v28 = vmul.f32 %v1404_v19, %v1462_v41  ;;  %v645_v29 = vmul.f32 %v1404_v19, %v1464_v42  ;;  %v763_v30 = vsel %vm699_vm5, %v667_v10, %v731_v24 }
 0x107   : > { %926 = vst.msk [vmem:[%s1428_s10 + $0x28] sm:$0xf] %vm915_vm1, %v1155_v22  ;;  %vm715_vm6 = vcmp.ge.f32.partialorder %v683_v25, 0.0  ;;  %v747_v31 = vmul.f32 0.2, %v683_v25  ;;  %v634_v32 = vmul.f32 %v1216_v60, %v1404_v19  ;;  %v1153_v33 = vpack.c.bf16 %v763_v30, %v763_v30 }
 0x108   : > { %942 = vst.msk [vmem:[%s1428_s10 + $0x68] sm:$0xf] %vm915_vm1, %v1171_v23  ;;  %vm702_vm7 = vcmp.ge.f32.partialorder %v670_v26, 0.0  ;;  %v734_v34 = vmul.f32 0.2, %v670_v26  ;;  %vm718_vm8 = vcmp.ge.f32.partialorder %v686_v27, 0.0  ;;  %v668_v37 = vadd.f32 %v1409_v21, %v629_v28 }
 0x109   : > { %v779_v35 = vsel %vm715_vm6, %v683_v25, %v747_v31  ;;  %v750_v36 = vmul.f32 0.2, %v686_v27  ;;  %v684_v38 = vadd.f32 %v1409_v21, %v645_v29  ;;  %924 = vst.msk [vmem:[%s1428_s10 + $0x20] sm:$0xf] %vm915_vm1, %v1153_v33  ;;  %v673_v41 = vadd.f32 %v1409_v21, %v634_v32 }
 0x10a   : > { %v1169_v39 = vpack.c.bf16 %v779_v35, %v779_v35  ;;  %v766_v40 = vsel %vm702_vm7, %v670_v26, %v734_v34  ;;  %v650_v42 = vmul.f32 %v1232_v61, %v1404_v19  ;;  %vm700_vm9 = vcmp.ge.f32.partialorder %v668_v37, 0.0 }
 0x10b   : > { %v1156_v43 = vpack.c.bf16 %v766_v40, %v766_v40  ;;  %v782_v44 = vsel %vm718_vm8, %v686_v27, %v750_v36  ;;  %v732_v45 = vmul.f32 0.2, %v668_v37  ;;  %vm716_vm10 = vcmp.ge.f32.partialorder %v684_v38, 0.0 }
 0x10c   : > { %940 = vst.msk [vmem:[%s1428_s10 + $0x60] sm:$0xf] %vm915_vm1, %v1169_v39  ;;  %v1172_v46 = vpack.c.bf16 %v782_v44, %v782_v44  ;;  %v748_v47 = vmul.f32 0.2, %v684_v38  ;;  %vm705_vm11 = vcmp.ge.f32.partialorder %v673_v41, 0.0  ;;  %v689_v50 = vadd.f32 %v1409_v21, %v650_v42 }
 0x10d   : > { %927 = vst.msk [vmem:[%s1428_s10 + $0x2c] sm:$0xf] %vm915_vm1, %v1156_v43  ;;  %v764_v48 = vsel %vm700_vm9, %v668_v37, %v732_v45  ;;  %v737_v49 = vmul.f32 0.2, %v673_v41  ;;  %v632_v51 = vmul.f32 %v1404_v19, %v1484_v1  ;;  %v648_v54 = vmul.f32 %v1404_v19, %v1486_v2 }
 0x10e   : > { %943 = vst.msk [vmem:[%s1428_s10 + $0x6c] sm:$0xf] %vm915_vm1, %v1172_v46  ;;  %v1154_v52 = vpack.c.bf16 %v764_v48, %v764_v48  ;;  %v780_v53 = vsel %vm716_vm10, %v684_v38, %v748_v47  ;;  %v635_v55 = vmul.f32 %v1488_v6, %v1404_v19  ;;  %vm721_vm12 = vcmp.ge.f32.partialorder %v689_v50, 0.0 }
 0x10f   : > { %v1170_v56 = vpack.c.bf16 %v780_v53, %v780_v53  ;;  %v769_v57 = vsel %vm705_vm11, %v673_v41, %v737_v49  ;;  %v753_v58 = vmul.f32 0.2, %v689_v50  ;;  %v671_v60 = vadd.f32 %v1409_v21, %v632_v51 }
 0x110   : > { %925 = vst.msk [vmem:[%s1428_s10 + $0x24] sm:$0xf] %vm915_vm1, %v1154_v52  ;;  %v1159_v59 = vpack.c.bf16 %v769_v57, %v769_v57  ;;  %v687_v61 = vadd.f32 %v1409_v21, %v648_v54  ;;  %v674_v62 = vadd.f32 %v1409_v21, %v635_v55  ;;  %v651_v0 = vmul.f32 %v1490_v7, %v1404_v19 }
 0x111   : > { %941 = vst.msk [vmem:[%s1428_s10 + $0x64] sm:$0xf] %vm915_vm1, %v1170_v56  ;;  %v785_v63 = vsel %vm721_vm12, %v689_v50, %v753_v58  ;;  %v633_v1 = vmul.f32 %v1404_v19, %v1495_v11  ;;  %v649_v2 = vmul.f32 %v1404_v19, %v1505_v16  ;;  %vm703_vm13 = vcmp.ge.f32.partialorder %v671_v60, 0.0 }
 0x112   : > { %930 = vst.msk [vmem:[%s1428_s10 + $0x38] sm:$0xf] %vm915_vm1, %v1159_v59  ;;  %v1175_v3 = vpack.c.bf16 %v785_v63, %v785_v63  ;;  %v735_v4 = vmul.f32 0.2, %v671_v60  ;;  %vm719_vm14 = vcmp.ge.f32.partialorder %v687_v61, 0.0  ;;  %vm706_vm15 = vcmp.ge.f32.partialorder %v674_v62, 0.0 }
 0x113   : > { %v751_v5 = vmul.f32 0.2, %v687_v61  ;;  %v738_v6 = vmul.f32 0.2, %v674_v62  ;;  %v690_v8 = vadd.f32 %v1409_v21, %v651_v0  ;;  %v672_v9 = vadd.f32 %v1409_v21, %v633_v1 }
 0x114   : > { %946 = vst.msk [vmem:[%s1428_s10 + $0x78] sm:$0xf] %vm915_vm1, %v1175_v3  ;;  %v767_v7 = vsel %vm703_vm13, %v671_v60, %v735_v4  ;;  %v688_v19 = vadd.f32 %v1409_v21, %v649_v2 }
 0x115   : > { %v1157_v10 = vpack.c.bf16 %v767_v7, %v767_v7  ;;  %v783_v11 = vsel %vm719_vm14, %v687_v61, %v751_v5  ;;  %v770_v12 = vsel %vm706_vm15, %v674_v62, %v738_v6  ;;  %vm722_vm0 = vcmp.ge.f32.partialorder %v690_v8, 0.0 }
 0x116   : > { %v1173_v13 = vpack.c.bf16 %v783_v11, %v783_v11  ;;  %v1160_v14 = vpack.c.bf16 %v770_v12, %v770_v12  ;;  %v754_v15 = vmul.f32 0.2, %v690_v8  ;;  %vm704_vm2 = vcmp.ge.f32.partialorder %v672_v9, 0.0 }
 0x117   : > { %928 = vst.msk [vmem:[%s1428_s10 + $0x30] sm:$0xf] %vm915_vm1, %v1157_v10  ;;  %v736_v16 = vmul.f32 0.2, %v672_v9  ;;  %vm720_vm3 = vcmp.ge.f32.partialorder %v688_v19, 0.0 }
 0x118   : > { %v752_v17 = vmul.f32 0.2, %v688_v19  ;;  %944 = vst.msk [vmem:[%s1428_s10 + $0x70] sm:$0xf] %vm915_vm1, %v1173_v13  ;;  %931 = vst.msk [vmem:[%s1428_s10 + $0x3c] sm:$0xf] %vm915_vm1, %v1160_v14  ;;  %v786_v21 = vsel %vm722_vm0, %v690_v8, %v754_v15 }
 0x119   : > { %v1176_v18 = vpack.c.bf16 %v786_v21, %v786_v21  ;;  %v768_v20 = vsel %vm704_vm2, %v672_v9, %v736_v16 }
 0x11a   : > { %v784_v22 = vsel %vm720_vm3, %v688_v19, %v752_v17  ;;  %v1158_v23 = vpack.c.bf16 %v768_v20, %v768_v20 }
 0x11b   : > { %v1174_v24 = vpack.c.bf16 %v784_v22, %v784_v22  ;;  %947 = vst.msk [vmem:[%s1428_s10 + $0x7c] sm:$0xf] %vm915_vm1, %v1176_v18 }
 0x11c   : > { %929 = vst.msk [vmem:[%s1428_s10 + $0x34] sm:$0xf] %vm915_vm1, %v1158_v23 }
 0x11d   : > { %945 = vst.msk [vmem:[%s1428_s10 + $0x74] sm:$0xf] %vm915_vm1, %v1174_v24 }
 0x11e PF: > { %s14_s17 = sadd.s32 1, %s1305_s17   ;;  %s1587_s15 = smov %s1301_s16 }
 0x11f   : > { %p11_p5 = scmp.ge.s32.totalorder %s14_s17, 4   ;;  %s1588_s16 = smov %s1590_s18 }
 0x121   :  { %13 = sbr.rel (!%p11_p5) target bundleno = 2 (0x2), region = 75 }

// kernel: _forward.5
= control target key start
LH: loop header
LB: loop body
LE: loop exit
PB: predicated region body
PF: predicated region fallthrough
CT: control target
= control target key end

     0   :  { %s1892_s15 = smov 0   ;;  %s1894_s16 = smov 0   ;;  %s2208_s0 = inlined_call_operand.vmem [shape: bf16[128,1024], index: 0, kind: input, shape index: {}]   ;;  %s2209_s1 = inlined_call_operand.vmem [shape: bf16[1024,128], index: 1, kind: input, shape index: {}]   ;;  %s2210_s2 = inlined_call_operand.vmem [shape: f32[1,128], index: 2, kind: input, shape index: {}]   ;;  %s2211_s3 = inlined_call_operand.vmem [shape: f32[1,128], index: 3, kind: input, shape index: {}]   ;;  %s2212_s4 = inlined_call_operand.vmem [shape: bf16[128,128], index: 4, kind: output, shape index: {}]  }
   0x1   :  { %s1896_s17 = smov 0  }
   0x2 LB: > { %s26_s18 = sadd.s32 1, %s1861_s16  ;;  %p1449_p0 = scmp.ge.s32.totalorder %s1865_s17, 1  ;;  %s1865_s17 = sphi %s1896_s17, %s14_s17   ;;  %s1861_s16 = sphi %s1894_s16, %s2214_s16   ;;  %s1857_s15 = sphi %s1892_s15, %s2213_s15  }
   0x3   : > { %p28_p1 = scmp.ge.s32.totalorder %s26_s18, 2  ;;  %p203_p2 = scmp.lt.s32.totalorder %s1865_s17, 3 }
   0x5   : > { %s2216_s18 = smov (%p28_p1, %s26_s18), 0  ;;  %p204_p3 = pnand %p1449_p0, %p203_p2 }
   0x6   : > { %v1779_v0 = vld [vmem:[%s2209_s1 + $0x40] sm:$0xff] (!%p204_p3)   ;;  %v1783_v4 = vld [vmem:[%s2209_s1 + $0x48] sm:$0xff] (!%p204_p3)   ;;  %v1787_v8 = vld [vmem:[%s2209_s1 + $0x50] sm:$0xff] (!%p204_p3)   ;;  %s1450_s29 = sshll.u32 (!%p204_p3), %s1857_s15, 3 }
   0x7   : > { %207 = sbr.rel (%p204_p3) target bundleno = 328 (0x148), region = 36  ;;  %v1780_v1 = vld [vmem:[%s2209_s1 + $0xc0] sm:$0xff] (!%p204_p3)   ;;  %1595 = vmatprep.subr.bf16.mxu0 (!%p204_p3), %v1779_v0  ;;  %v1784_v5 = vld [vmem:[%s2209_s1 + $0xc8] sm:$0xff] (!%p204_p3)   ;;  %v1788_v9 = vld [vmem:[%s2209_s1 + $0xd0] sm:$0xff] (!%p204_p3)   ;;  %p244_p4 = scmp.lt.s32.totalorder (!%p204_p3), %s1450_s29, 15 }
   0x8   : > { %v1781_v2 = vld [vmem:[%s2209_s1] sm:$0xff] (!%p204_p3)   ;;  %1635 = vmatprep.subr.bf16.mxu1 (!%p204_p3), %v1780_v1  ;;  %v1785_v6 = vld [vmem:[%s2209_s1 + $0x8] sm:$0xff] (!%p204_p3)   ;;  %v1789_v10 = vld [vmem:[%s2209_s1 + $0x10] sm:$0xff] (!%p204_p3)  }
   0x9   : > { %v1782_v3 = vld [vmem:[%s2209_s1 + $0x80] sm:$0xff] (!%p204_p3)   ;;  %1596 = vmatpush3.bf16.msra.mxu0 (!%p204_p3), %v1781_v2  ;;  %v1786_v7 = vld [vmem:[%s2209_s1 + $0x88] sm:$0xff] (!%p204_p3)   ;;  %v1790_v11 = vld [vmem:[%s2209_s1 + $0x90] sm:$0xff] (!%p204_p3)  }
   0xa   : > { %1636 = vmatpush3.bf16.msra.mxu1 (!%p204_p3), %v1782_v3  ;;  %1597 = vmatprep.subr.bf16.mxu0 (!%p204_p3), %v1783_v4  ;;  %v1791_v12 = vld [vmem:[%s2209_s1 + $0x58] sm:$0xff] (!%p204_p3)   ;;  %v1795_v16 = vld [vmem:[%s2209_s1 + $0x60] sm:$0xff] (!%p204_p3)   ;;  %v1799_v20 = vld [vmem:[%s2209_s1 + $0x68] sm:$0xff] (!%p204_p3)  }
   0xb   : > { %1637 = vmatprep.subr.bf16.mxu1 (!%p204_p3), %v1784_v5  ;;  %v1792_v13 = vld [vmem:[%s2209_s1 + $0xd8] sm:$0xff] (!%p204_p3)   ;;  %v1796_v17 = vld [vmem:[%s2209_s1 + $0xe0] sm:$0xff] (!%p204_p3)   ;;  %v1800_v21 = vld [vmem:[%s2209_s1 + $0xe8] sm:$0xff] (!%p204_p3)  }
   0xc   : > { %v1793_v14 = vld [vmem:[%s2209_s1 + $0x18] sm:$0xff] (!%p204_p3)   ;;  %v1797_v18 = vld [vmem:[%s2209_s1 + $0x20] sm:$0xff] (!%p204_p3)   ;;  %v1801_v22 = vld [vmem:[%s2209_s1 + $0x28] sm:$0xff] (!%p204_p3)  }
   0xd   : > { %1598 = vmatpush3.bf16.msra.mxu0 (!%p204_p3), %v1785_v6  ;;  %v1794_v15 = vld [vmem:[%s2209_s1 + $0x98] sm:$0xff] (!%p204_p3)   ;;  %v1798_v19 = vld [vmem:[%s2209_s1 + $0xa0] sm:$0xff] (!%p204_p3)   ;;  %v1802_v23 = vld [vmem:[%s2209_s1 + $0xa8] sm:$0xff] (!%p204_p3)  }
   0xe   : > { %1638 = vmatpush3.bf16.msra.mxu1 %v1786_v7  ;;  %1599 = vmatprep.subr.bf16.mxu0 %v1787_v8  ;;  %s2218_s29 = smov (!%p244_p4, %s1450_s29), 15  ;;  %v1803_v24 = vld [vmem:[%s2209_s1 + $0x70] sm:$0xff]   ;;  %v1807_v28 = vld [vmem:[%s2209_s1 + $0x78] sm:$0xff]   ;;  %v1811_v40 = vld [vmem:[%s2209_s1 + $0x140] sm:$0xff]  }
   0xf   : > { %1639 = vmatprep.subr.bf16.mxu1 %v1788_v9  ;;  %v1804_v25 = vld [vmem:[%s2209_s1 + $0xf0] sm:$0xff]   ;;  %s1563_s30 = sshll.u32 %s2218_s29, 5  ;;  %v1808_v29 = vld [vmem:[%s2209_s1 + $0xf8] sm:$0xff]   ;;  %v1812_v41 = vld [vmem:[%s2209_s1 + $0x1c0] sm:$0xff]   ;;  %s1454_s25 = sshll.u32 %s2218_s29, 2 }
  0x10   : > { %v1805_v26 = vld [vmem:[%s2209_s1 + $0x30] sm:$0xff]   ;;  %s2009_s12 = scalar_lea.vmem %s2208_s0, %s1563_s30  ;;  %v1809_v30 = vld [vmem:[%s2209_s1 + $0x38] sm:$0xff]   ;;  %v1813_v42 = vld [vmem:[%s2209_s1 + $0x100] sm:$0xff]   ;;  %s2177_s28 = scalar_lea.vmem %s2212_s4, %s1454_s25 }
  0x11   : > { %1600 = vmatpush3.bf16.msra.mxu0 %v1789_v10  ;;  %v1806_v27 = vld [vmem:[%s2209_s1 + $0xb0] sm:$0xff]   ;;  %v1810_v31 = vld [vmem:[%s2209_s1 + $0xb8] sm:$0xff]   ;;  %v270_v32 = vld [vmem:[%s2009_s12] sm:$0xff] }
  0x12   : > { %1640 = vmatpush3.bf16.msra.mxu1 %v1790_v11  ;;  %1601 = vmatprep.subr.bf16.mxu0 %v1791_v12  ;;  %v274_v33 = vld [vmem:[%s2009_s12 + $0x20] sm:$0xff]  ;;  %v271_v34 = vld [vmem:[%s2009_s12 + $0x8] sm:$0xff]  ;;  %v1819_v56 = vld [vmem:[%s2209_s1 + $0x150] sm:$0xff]  }
  0x13   : > { %1641 = vmatprep.subr.bf16.mxu1 %v1792_v13  ;;  %v1455_v35 = vcombine.low %v270_v32, %v274_v33  ;;  %v1456_v36 = vcombine.high %v270_v32, %v274_v33  ;;  %v275_v37 = vld [vmem:[%s2009_s12 + $0x28] sm:$0xff]  ;;  %v1814_v43 = vld [vmem:[%s2209_s1 + $0x180] sm:$0xff]   ;;  %v1820_v57 = vld [vmem:[%s2209_s1 + $0x1d0] sm:$0xff]  }
  0x14   : > { %v1457_v38 = vcombine.low %v271_v34, %v275_v37  ;;  %v1458_v39 = vcombine.high %v271_v34, %v275_v37  ;;  %v1815_v44 = vld [vmem:[%s2209_s1 + $0x148] sm:$0xff]   ;;  %v278_v48 = vld [vmem:[%s2009_s12 + $0x40] sm:$0xff]  ;;  %v1821_v58 = vld [vmem:[%s2209_s1 + $0x110] sm:$0xff]  }
  0x15   : > { %1602 = vmatpush3.bf16.msra.mxu0 %v1793_v14  ;;  %1006 = vmatprep.mubr.bf16.mxu0 %v1456_v36  ;;  %v1816_v45 = vld [vmem:[%s2209_s1 + $0x1c8] sm:$0xff]   ;;  %v282_v49 = vld [vmem:[%s2009_s12 + $0x60] sm:$0xff]  ;;  %v1822_v59 = vld [vmem:[%s2209_s1 + $0x190] sm:$0xff]  }
  0x16   : > { %1642 = vmatpush3.bf16.msra.mxu1 %v1794_v15  ;;  %1603 = vmatprep.subr.bf16.mxu0 %v1795_v16  ;;  %v1817_v46 = vld [vmem:[%s2209_s1 + $0x108] sm:$0xff]   ;;  %v1464_v50 = vcombine.high %v278_v48, %v282_v49  ;;  %v1463_v53 = vcombine.low %v278_v48, %v282_v49  ;;  %v1823_v60 = vld [vmem:[%s2209_s1 + $0x158] sm:$0xff]   ;;  %v286_v0 = vld [vmem:[%s2009_s12 + $0x80] sm:$0xff] }
  0x17   : > { %1643 = vmatprep.subr.bf16.mxu1 %v1796_v17  ;;  %1071 = vmatprep.mubr.bf16.mxu1 %v1458_v39  ;;  %v1818_v47 = vld [vmem:[%s2209_s1 + $0x188] sm:$0xff]   ;;  %v1824_v61 = vld [vmem:[%s2209_s1 + $0x1d8] sm:$0xff]   ;;  %v290_v1 = vld [vmem:[%s2009_s12 + $0xa0] sm:$0xff] }
  0x18   : > { %v279_v51 = vld [vmem:[%s2009_s12 + $0x48] sm:$0xff]  ;;  %v1825_v62 = vld [vmem:[%s2209_s1 + $0x118] sm:$0xff]   ;;  %v1472_v4 = vcombine.high %v286_v0, %v290_v1  ;;  %v1471_v6 = vcombine.low %v286_v0, %v290_v1  ;;  %v1827_v8 = vld [vmem:[%s2209_s1 + $0x160] sm:$0xff]  }
  0x19   : > { %1604 = vmatpush3.bf16.msra.mxu0 %v1797_v18  ;;  %v283_v52 = vld [vmem:[%s2009_s12 + $0x68] sm:$0xff]  ;;  %v1826_v63 = vld [vmem:[%s2209_s1 + $0x198] sm:$0xff]   ;;  %v1828_v9 = vld [vmem:[%s2209_s1 + $0x1e0] sm:$0xff]  }
  0x1a   : > { %1644 = vmatpush3.bf16.msra.mxu1 %v1798_v19  ;;  %1605 = vmatprep.subr.bf16.mxu0 %v1799_v20  ;;  %v1466_v54 = vcombine.high %v279_v51, %v283_v52  ;;  %v1465_v55 = vcombine.low %v279_v51, %v283_v52  ;;  %v287_v2 = vld [vmem:[%s2009_s12 + $0x88] sm:$0xff]  ;;  %v1829_v10 = vld [vmem:[%s2209_s1 + $0x120] sm:$0xff]   ;;  %v272_v32 = vld [vmem:[%s2009_s12 + $0x10] sm:$0xff] }
  0x1b   : > { %1645 = vmatprep.subr.bf16.mxu1 %v1800_v21  ;;  %v291_v3 = vld [vmem:[%s2009_s12 + $0xa8] sm:$0xff]  ;;  %v1830_v11 = vld [vmem:[%s2209_s1 + $0x1a0] sm:$0xff]   ;;  %v276_v33 = vld [vmem:[%s2009_s12 + $0x30] sm:$0xff] }
  0x1c   : > { %v1474_v5 = vcombine.high %v287_v2, %v291_v3  ;;  %v1473_v7 = vcombine.low %v287_v2, %v291_v3  ;;  %v1831_v12 = vld [vmem:[%s2209_s1 + $0x168] sm:$0xff]   ;;  %v294_v16 = vld [vmem:[%s2009_s12 + $0xc0] sm:$0xff]  ;;  %v1459_v34 = vcombine.low %v272_v32, %v276_v33  ;;  %v273_v36 = vld [vmem:[%s2009_s12 + $0x18] sm:$0xff] }
  0x1d   : > { %1606 = vmatpush3.bf16.msra.mxu0 %v1801_v22  ;;  %v1832_v13 = vld [vmem:[%s2209_s1 + $0x1e8] sm:$0xff]   ;;  %v298_v17 = vld [vmem:[%s2009_s12 + $0xe0] sm:$0xff]  ;;  %v277_v37 = vld [vmem:[%s2009_s12 + $0x38] sm:$0xff] }
  0x1e   : > { %1646 = vmatpush3.bf16.msra.mxu1 %v1802_v23  ;;  %1607 = vmatprep.subr.bf16.mxu0 %v1803_v24  ;;  %v1833_v14 = vld [vmem:[%s2209_s1 + $0x128] sm:$0xff]   ;;  %v1480_v19 = vcombine.high %v294_v16, %v298_v17  ;;  %v1479_v21 = vcombine.low %v294_v16, %v298_v17  ;;  %v1835_v24 = vld [vmem:[%s2209_s1 + $0x170] sm:$0xff]   ;;  %v1461_v39 = vcombine.low %v273_v36, %v277_v37  ;;  %v289_v48 = vld [vmem:[%s2009_s12 + $0x98] sm:$0xff] }
  0x1f   : > { %1647 = vmatprep.subr.bf16.mxu1 %v1804_v25  ;;  %v1834_v15 = vld [vmem:[%s2209_s1 + $0x1a8] sm:$0xff]   ;;  %v1836_v25 = vld [vmem:[%s2209_s1 + $0x1f0] sm:$0xff]   ;;  %v293_v49 = vld [vmem:[%s2009_s12 + $0xb8] sm:$0xff] }
  0x20   : > { %v295_v18 = vld [vmem:[%s2009_s12 + $0xc8] sm:$0xff] }
  0x21   : > { %1608 = vmatpush3.bf16.msra.mxu0 %v1805_v26  ;;  %v299_v20 = vld [vmem:[%s2009_s12 + $0xe8] sm:$0xff]  ;;  %v1837_v26 = vld [vmem:[%s2209_s1 + $0x130] sm:$0xff]  }
  0x22   : > { %1648 = vmatpush3.bf16.msra.mxu1 %v1806_v27  ;;  %1609 = vmatprep.subr.bf16.mxu0 %v1807_v28  ;;  %v1482_v22 = vcombine.high %v295_v18, %v299_v20  ;;  %v1481_v23 = vcombine.low %v295_v18, %v299_v20  ;;  %v1838_v27 = vld [vmem:[%s2209_s1 + $0x1b0] sm:$0xff]   ;;  %v1839_v28 = vld [vmem:[%s2209_s1 + $0x178] sm:$0xff]  }
  0x23   : > { %1649 = vmatprep.subr.bf16.mxu1 %v1808_v29  ;;  %v1840_v29 = vld [vmem:[%s2209_s1 + $0x1f8] sm:$0xff]  }
  0x25   : > { %1610 = vmatpush3.bf16.msra.mxu0 %v1809_v30  ;;  %v1841_v30 = vld [vmem:[%s2209_s1 + $0x138] sm:$0xff]  }
  0x26   : > { %1650 = vmatpush3.bf16.msra.mxu1 %v1810_v31  ;;  %1675 = vmatprep.subr.bf16.mxu0 %v1811_v40  ;;  %v1842_v31 = vld [vmem:[%s2209_s1 + $0x1b8] sm:$0xff]   ;;  %v1462_v40 = vcombine.high %v273_v36, %v277_v37 }
  0x27   : > { %1715 = vmatprep.subr.bf16.mxu1 %v1812_v41  ;;  %v284_v41 = vld [vmem:[%s2009_s12 + $0x70] sm:$0xff] }
  0x28   : > { %1007 = vmatmul.mubr.bf16.vlgmr.msra.gmra.mrb[0].mxu0 %v1455_v35  ;;  %v1460_v35 = vcombine.high %v272_v32, %v276_v33 }
  0x29   : > { %1072 = vmatmul.mubr.bf16.vlgmr.msra.gmra.mrb[0].mxu1 %v1457_v38  ;;  %1676 = vmatpush3.bf16.msra.mxu0 %v1813_v42  ;;  %v280_v38 = vld [vmem:[%s2009_s12 + $0x50] sm:$0xff]  ;;  %v281_v42 = vld [vmem:[%s2009_s12 + $0x58] sm:$0xff] }
  0x2a   : > { %1716 = vmatpush3.bf16.msra.mxu1 %v1814_v43  ;;  %1677 = vmatprep.subr.bf16.mxu0 %v1815_v44  ;;  %v285_v43 = vld [vmem:[%s2009_s12 + $0x78] sm:$0xff]  ;;  %v1468_v44 = vcombine.high %v280_v38, %v284_v41 }
  0x2b   : > { %1717 = vmatprep.subr.bf16.mxu1 %v1816_v45  ;;  %1014 = vmatprep.mubr.bf16.mxu0 %v1464_v50  ;;  %v1470_v45 = vcombine.high %v281_v42, %v285_v43  ;;  %v1467_v50 = vcombine.low %v280_v38, %v284_v41  ;;  %v1469_v51 = vcombine.low %v281_v42, %v285_v43 }
  0x2c   : > { %1079 = vmatprep.mubr.bf16.mxu1 %v1466_v54  ;;  %v296_v54 = vld [vmem:[%s2009_s12 + $0xd0] sm:$0xff] }
  0x2d   : > { %1678 = vmatpush3.bf16.msra.mxu0 %v1817_v46  ;;  %v288_v46 = vld [vmem:[%s2009_s12 + $0x90] sm:$0xff] }
  0x2e   : > { %1718 = vmatpush3.bf16.msra.mxu1 %v1818_v47  ;;  %1679 = vmatprep.subr.bf16.mxu0 %v1819_v56  ;;  %v292_v47 = vld [vmem:[%s2009_s12 + $0xb0] sm:$0xff]  ;;  %v297_v56 = vld [vmem:[%s2009_s12 + $0xd8] sm:$0xff] }
  0x2f   : > { %1719 = vmatprep.subr.bf16.mxu1 %v1820_v57  ;;  %v1476_v52 = vcombine.high %v288_v46, %v292_v47  ;;  %v301_v57 = vld [vmem:[%s2009_s12 + $0xf8] sm:$0xff] }
  0x30   : > { %1015 = vmatmul.mubr.bf16.gmra.mrb[4].mxu0 %v1463_v53  ;;  %v1478_v53 = vcombine.high %v289_v48, %v293_v49 }
  0x31   : > { %1080 = vmatmul.mubr.bf16.gmra.mrb[4].mxu1 %v1465_v55  ;;  %1680 = vmatpush3.bf16.msra.mxu0 %v1821_v58  ;;  %v300_v55 = vld [vmem:[%s2009_s12 + $0xf0] sm:$0xff]  ;;  %v1475_v58 = vcombine.low %v288_v46, %v292_v47 }
  0x32   : > { %1720 = vmatpush3.bf16.msra.mxu1 %v1822_v59  ;;  %1681 = vmatprep.subr.bf16.mxu0 %v1823_v60  ;;  %v1477_v59 = vcombine.low %v289_v48, %v293_v49  ;;  %v1484_v60 = vcombine.high %v296_v54, %v300_v55 }
  0x33   : > { %1721 = vmatprep.subr.bf16.mxu1 %v1824_v61  ;;  %1022 = vmatprep.mubr.bf16.mxu0 %v1472_v4  ;;  %v1486_v61 = vcombine.high %v297_v56, %v301_v57 }
  0x34   : > { %1087 = vmatprep.mubr.bf16.mxu1 %v1474_v5 }
  0x35   : > { %1682 = vmatpush3.bf16.msra.mxu0 %v1825_v62  ;;  %v1483_v62 = vcombine.low %v296_v54, %v300_v55 }
  0x36   : > { %1722 = vmatpush3.bf16.msra.mxu1 %v1826_v63  ;;  %1683 = vmatprep.subr.bf16.mxu0 %v1827_v8  ;;  %v1485_v63 = vcombine.low %v297_v56, %v301_v57 }
  0x37   : > { %1723 = vmatprep.subr.bf16.mxu1 %v1828_v9 }
  0x38   : > { %1023 = vmatmul.mubr.bf16.gmra.mrb[8].mxu0 %v1471_v6 }
  0x39   : > { %1088 = vmatmul.mubr.bf16.gmra.mrb[8].mxu1 %v1473_v7  ;;  %1684 = vmatpush3.bf16.msra.mxu0 %v1829_v10 }
  0x3a   : > { %1724 = vmatpush3.bf16.msra.mxu1 %v1830_v11  ;;  %1685 = vmatprep.subr.bf16.mxu0 %v1831_v12 }
  0x3b   : > { %1725 = vmatprep.subr.bf16.mxu1 %v1832_v13  ;;  %1030 = vmatprep.mubr.bf16.mxu0 %v1480_v19 }
  0x3c   : > { %1095 = vmatprep.mubr.bf16.mxu1 %v1482_v22 }
  0x3d   : > { %1686 = vmatpush3.bf16.msra.mxu0 %v1833_v14 }
  0x3e   : > { %1726 = vmatpush3.bf16.msra.mxu1 %v1834_v15  ;;  %1687 = vmatprep.subr.bf16.mxu0 %v1835_v24 }
  0x3f   : > { %1727 = vmatprep.subr.bf16.mxu1 %v1836_v25 }
  0x40   : > { %1031 = vmatmul.mubr.bf16.gmra.mrb[12].mxu0 %v1479_v21 }
  0x41   : > { %1096 = vmatmul.mubr.bf16.gmra.mrb[12].mxu1 %v1481_v23  ;;  %1688 = vmatpush3.bf16.msra.mxu0 %v1837_v26 }
  0x42   : > { %1728 = vmatpush3.bf16.msra.mxu1 %v1838_v27  ;;  %1689 = vmatprep.subr.bf16.mxu0 %v1839_v28 }
  0x43   : > { %1729 = vmatprep.subr.bf16.mxu1 %v1840_v29  ;;  %1136 = vmatprep.mubr.bf16.mxu0 %v1460_v35 }
  0x44   : > { %1201 = vmatprep.mubr.bf16.mxu1 %v1462_v40 }
  0x45   : > { %1690 = vmatpush3.bf16.msra.mxu0 %v1841_v30 }
  0x46   : > { %1730 = vmatpush3.bf16.msra.mxu1 %v1842_v31 }
  0x48   : > { %1137 = vmatmul.mubr.bf16.vlgmr.msra.gmra.mrb[16].mxu0 %v1459_v34 }
  0x49   : > { %1202 = vmatmul.mubr.bf16.vlgmr.msra.gmra.mrb[16].mxu1 %v1461_v39  ;;  %1144 = vmatprep.mubr.bf16.mxu0 %v1468_v44 }
  0x4a   : > { %1209 = vmatprep.mubr.bf16.mxu1 %v1470_v45 }
  0x50   : > { %1145 = vmatmul.mubr.bf16.gmra.mrb[20].mxu0 %v1467_v50 }
  0x51   : > { %1210 = vmatmul.mubr.bf16.gmra.mrb[20].mxu1 %v1469_v51  ;;  %1152 = vmatprep.mubr.bf16.mxu0 %v1476_v52 }
  0x52   : > { %1217 = vmatprep.mubr.bf16.mxu1 %v1478_v53 }
  0x58   : > { %1153 = vmatmul.mubr.bf16.gmra.mrb[24].mxu0 %v1475_v58 }
  0x59   : > { %1218 = vmatmul.mubr.bf16.gmra.mrb[24].mxu1 %v1477_v59  ;;  %1160 = vmatprep.mubr.bf16.mxu0 %v1484_v60 }
  0x5a   : > { %1225 = vmatprep.mubr.bf16.mxu1 %v1486_v61 }
  0x60   : > { %1161 = vmatmul.mubr.bf16.gmra.mrb[28].mxu0 %v1483_v62 }
  0x61   : > { %1226 = vmatmul.mubr.bf16.gmra.mrb[28].mxu1 %v1485_v63 }
  0xfb   : > { %v1611_v0 = vpop.f32.mrb[0].mxu0 }
  0xfc   : > { %v1651_v1 = vpop.f32.mrb[0].mxu1  ;;  %v1612_v2 = vpop.f32.mrb[1].mxu0 }
  0xfd   : > { %v1613_v3 = vadd.f32 %v1612_v2, %v1611_v0  ;;  %v1652_v4 = vpop.f32.mrb[1].mxu1  ;;  %v1614_v5 = vpop.f32.mrb[2].mxu0 }
  0xfe   : > { %v1653_v6 = vadd.f32 %v1652_v4, %v1651_v1  ;;  %v1654_v7 = vpop.f32.mrb[2].mxu1  ;;  %v1615_v8 = vpop.f32.mrb[3].mxu0  ;;  %v2160_v4 = vld [vmem:[%s2210_s2] ss:$0 sm:$0xff] }
  0xff   : > { %v1616_v9 = vadd.f32 %v1615_v8, %v1614_v5  ;;  %v1655_v10 = vpop.f32.mrb[3].mxu1  ;;  %v2165_v8 = vld [vmem:[%s2211_s3] ss:$0 sm:$0xff] }
 0x100   : > { %v1074_v11 = vadd.f32 %v1653_v6, %v1613_v3  ;;  %v1656_v12 = vadd.f32 %v1655_v10, %v1654_v7 }
 0x102   : > { %v1077_v13 = vadd.f32 %v1656_v12, %v1616_v9 }
 0x103   : > { %v1617_v14 = vpop.f32.mrb[4].mxu0 }
 0x104   : > { %v1657_v15 = vpop.f32.mrb[4].mxu1  ;;  %v1618_v16 = vpop.f32.mrb[5].mxu0 }
 0x105   : > { %v1619_v17 = vadd.f32 %v1618_v16, %v1617_v14  ;;  %v1658_v18 = vpop.f32.mrb[5].mxu1  ;;  %v1620_v19 = vpop.f32.mrb[6].mxu0 }
 0x106   : > { %v1659_v20 = vadd.f32 %v1658_v18, %v1657_v15  ;;  %v1660_v21 = vpop.f32.mrb[6].mxu1  ;;  %v1621_v22 = vpop.f32.mrb[7].mxu0 }
 0x107   : > { %v1622_v23 = vadd.f32 %v1621_v22, %v1620_v19  ;;  %v1661_v24 = vpop.f32.mrb[7].mxu1 }
 0x108   : > { %v2145_v25 = vadd.f32 %v1659_v20, %v1619_v17  ;;  %v1662_v26 = vadd.f32 %v1661_v24, %v1660_v21 }
 0x10a   : > { %v2147_v27 = vadd.f32 %v1662_v26, %v1622_v23 }
 0x10b   : > { %v1623_v28 = vpop.f32.mrb[8].mxu0 }
 0x10c   : > { %v1663_v29 = vpop.f32.mrb[8].mxu1  ;;  %v1624_v30 = vpop.f32.mrb[9].mxu0 }
 0x10d   : > { %v1664_v31 = vpop.f32.mrb[9].mxu1  ;;  %v1625_v32 = vadd.f32 %v1624_v30, %v1623_v28  ;;  %v1626_v34 = vpop.f32.mrb[10].mxu0 }
 0x10e   : > { %v1665_v33 = vadd.f32 %v1664_v31, %v1663_v29  ;;  %v1666_v35 = vpop.f32.mrb[10].mxu1  ;;  %v1627_v36 = vpop.f32.mrb[11].mxu0 }
 0x10f   : > { %v1667_v37 = vpop.f32.mrb[11].mxu1  ;;  %v1628_v39 = vadd.f32 %v1627_v36, %v1626_v34 }
 0x110   : > { %v2149_v38 = vadd.f32 %v1665_v33, %v1625_v32  ;;  %v1668_v40 = vadd.f32 %v1667_v37, %v1666_v35 }
 0x112   : > { %v2151_v41 = vadd.f32 %v1668_v40, %v1628_v39 }
 0x113   : > { %v1629_v42 = vpop.f32.mrb[12].mxu0 }
 0x114   : > { %v1669_v43 = vpop.f32.mrb[12].mxu1  ;;  %v1630_v44 = vpop.f32.mrb[13].mxu0 }
 0x115   : > { %v1631_v45 = vadd.f32 %v1630_v44, %v1629_v42  ;;  %v1670_v46 = vpop.f32.mrb[13].mxu1  ;;  %v1632_v47 = vpop.f32.mrb[14].mxu0 }
 0x116   : > { %v1671_v48 = vadd.f32 %v1670_v46, %v1669_v43  ;;  %v1672_v49 = vpop.f32.mrb[14].mxu1  ;;  %v1633_v50 = vpop.f32.mrb[15].mxu0 }
 0x117   : > { %v1634_v51 = vadd.f32 %v1633_v50, %v1632_v47  ;;  %v1673_v52 = vpop.f32.mrb[15].mxu1 }
 0x118   : > { %v2153_v53 = vadd.f32 %v1671_v48, %v1631_v45  ;;  %v1674_v54 = vadd.f32 %v1673_v52, %v1672_v49 }
 0x11a   : > { %v2155_v55 = vadd.f32 %v1674_v54, %v1634_v51 }
 0x11b   : > { %v1691_v56 = vpop.f32.mrb[16].mxu0 }
 0x11c   : > { %v1731_v57 = vpop.f32.mrb[16].mxu1  ;;  %v1692_v58 = vpop.f32.mrb[17].mxu0 }
 0x11d   : > { %v1693_v59 = vadd.f32 %v1692_v58, %v1691_v56  ;;  %v1732_v60 = vpop.f32.mrb[17].mxu1  ;;  %v1694_v61 = vpop.f32.mrb[18].mxu0 }
 0x11e   : > { %v1733_v62 = vadd.f32 %v1732_v60, %v1731_v57  ;;  %v1734_v63 = vpop.f32.mrb[18].mxu1  ;;  %v1695_v0 = vpop.f32.mrb[19].mxu0 }
 0x11f   : > { %v1139_v1 = vadd.f32 %v1693_v59, %v1074_v11  ;;  %v1696_v2 = vadd.f32 %v1695_v0, %v1694_v61  ;;  %v1735_v3 = vpop.f32.mrb[19].mxu1 }
 0x120   : > { %v1736_v5 = vadd.f32 %v1735_v3, %v1734_v63 }
 0x121   : > { %v1204_v6 = vadd.f32 %v1733_v62, %v1139_v1  ;;  %v1142_v7 = vadd.f32 %v1696_v2, %v1077_v13 }
 0x123   : > { %v1241_v9 = vmul.f32 %v2160_v4, %v1204_v6  ;;  %v1207_v10 = vadd.f32 %v1736_v5, %v1142_v7  ;;  %v1697_v12 = vpop.f32.mrb[20].mxu0 }
 0x124   : > { %v1737_v11 = vpop.f32.mrb[20].mxu1  ;;  %v1698_v14 = vpop.f32.mrb[21].mxu0 }
 0x125   : > { %v1256_v15 = vadd.f32 %v2165_v8, %v1241_v9  ;;  %v1242_v16 = vmul.f32 %v2160_v4, %v1207_v10  ;;  %v1699_v17 = vadd.f32 %v1698_v14, %v1697_v12  ;;  %v1738_v18 = vpop.f32.mrb[21].mxu1  ;;  %v1700_v19 = vpop.f32.mrb[22].mxu0 }
 0x126   : > { %v1739_v13 = vadd.f32 %v1738_v18, %v1737_v11  ;;  %v1740_v20 = vpop.f32.mrb[22].mxu1  ;;  %v1701_v21 = vpop.f32.mrb[23].mxu0 }
 0x127   : > { %v1272_v22 = vmul.f32 0.2, %v1256_v15  ;;  %v1257_v23 = vadd.f32 %v2165_v8, %v1242_v16  ;;  %v1147_v24 = vadd.f32 %v1699_v17, %v2145_v25  ;;  %v1741_v26 = vpop.f32.mrb[23].mxu1  ;;  %vm1264_vm0 = vcmp.ge.f32.partialorder %v1256_v15, 0.0 }
 0x128   : > { %v1702_v28 = vadd.f32 %v1701_v21, %v1700_v19  ;;  %v1742_v29 = vadd.f32 %v1741_v26, %v1740_v20 }
 0x129   : > { %vm1265_vm1 = vcmp.ge.f32.partialorder %v1257_v23, 0.0  ;;  %v1273_v30 = vmul.f32 0.2, %v1257_v23  ;;  %v1212_v31 = vadd.f32 %v1739_v13, %v1147_v24  ;;  %v1280_v33 = vsel %vm1264_vm0, %v1256_v15, %v1272_v22 }
 0x12a   : > { %v1150_v32 = vadd.f32 %v1702_v28, %v2147_v27 }
 0x12b   : > { %v1281_v34 = vsel %vm1265_vm1, %v1257_v23, %v1273_v30  ;;  %v1243_v25 = vmul.f32 %v2160_v4, %v1212_v31  ;;  %v1703_v35 = vpop.f32.mrb[24].mxu0 }
 0x12c   : > { %v1575_v36 = vpack.c.bf16 %v1281_v34, %v1280_v33  ;;  %v1215_v37 = vadd.f32 %v1742_v29, %v1150_v32  ;;  %v1743_v39 = vpop.f32.mrb[24].mxu1  ;;  %v1704_v40 = vpop.f32.mrb[25].mxu0 }
 0x12d   : > { %v1258_v42 = vadd.f32 %v2165_v8, %v1243_v25  ;;  %v1705_v43 = vadd.f32 %v1704_v40, %v1703_v35  ;;  %v1744_v44 = vpop.f32.mrb[25].mxu1  ;;  %v1706_v27 = vpop.f32.mrb[26].mxu0 }
 0x12e   : > { %1576 = vst [vmem:[%s2177_s28] sm:$0xff] %v1575_v36   ;;  %v1244_v45 = vmul.f32 %v2160_v4, %v1215_v37  ;;  %v1745_v46 = vadd.f32 %v1744_v44, %v1743_v39  ;;  %v1746_v47 = vpop.f32.mrb[26].mxu1  ;;  %v1707_v48 = vpop.f32.mrb[27].mxu0 }
 0x12f   : > { %v1155_v49 = vadd.f32 %v1705_v43, %v2149_v38  ;;  %v1708_v50 = vadd.f32 %v1707_v48, %v1706_v27  ;;  %v1747_v51 = vpop.f32.mrb[27].mxu1  ;;  %v1274_v52 = vmul.f32 0.2, %v1258_v42  ;;  %vm1266_vm2 = vcmp.ge.f32.partialorder %v1258_v42, 0.0 }
 0x130   : > { %v1259_v54 = vadd.f32 %v2165_v8, %v1244_v45  ;;  %v1748_v56 = vadd.f32 %v1747_v51, %v1746_v47 }
 0x131   : > { %v1220_v57 = vadd.f32 %v1745_v46, %v1155_v49  ;;  %v1158_v58 = vadd.f32 %v1708_v50, %v2151_v41  ;;  %v1282_v63 = vsel %vm1266_vm2, %v1258_v42, %v1274_v52 }
 0x132   : > { %vm1267_vm3 = vcmp.ge.f32.partialorder %v1259_v54, 0.0  ;;  %v1275_v59 = vmul.f32 0.2, %v1259_v54 }
 0x133   : > { %v1245_v60 = vmul.f32 %v2160_v4, %v1220_v57  ;;  %v1223_v61 = vadd.f32 %v1748_v56, %v1158_v58  ;;  %v1709_v62 = vpop.f32.mrb[28].mxu0 }
 0x134   : > { %v1283_v0 = vsel %vm1267_vm3, %v1259_v54, %v1275_v59  ;;  %v1749_v38 = vpop.f32.mrb[28].mxu1  ;;  %v1710_v1 = vpop.f32.mrb[29].mxu0 }
 0x135   : > { %v1580_v2 = vpack.c.bf16 %v1283_v0, %v1282_v63  ;;  %v1260_v3 = vadd.f32 %v2165_v8, %v1245_v60  ;;  %v1246_v5 = vmul.f32 %v2160_v4, %v1223_v61  ;;  %v1711_v6 = vadd.f32 %v1710_v1, %v1709_v62  ;;  %v1750_v7 = vpop.f32.mrb[29].mxu1  ;;  %v1712_v9 = vpop.f32.mrb[30].mxu0 }
 0x136   : > { %v1751_v41 = vadd.f32 %v1750_v7, %v1749_v38  ;;  %v1752_v10 = vpop.f32.mrb[30].mxu1  ;;  %v1713_v12 = vpop.f32.mrb[31].mxu0 }
 0x137   : > { %1592 = vst [vmem:[%s2177_s28 + $0x8] sm:$0xff] %v1580_v2   ;;  %v1276_v11 = vmul.f32 0.2, %v1260_v3  ;;  %v1261_v14 = vadd.f32 %v2165_v8, %v1246_v5  ;;  %v1163_v15 = vadd.f32 %v1711_v6, %v2153_v53  ;;  %v1753_v16 = vpop.f32.mrb[31].mxu1  ;;  %vm1268_vm4 = vcmp.ge.f32.partialorder %v1260_v3, 0.0 }
 0x138   : > { %v1714_v17 = vadd.f32 %v1713_v12, %v1712_v9  ;;  %v1754_v18 = vadd.f32 %v1753_v16, %v1752_v10 }
 0x139   : > { %vm1269_vm5 = vcmp.ge.f32.partialorder %v1261_v14, 0.0  ;;  %v1277_v19 = vmul.f32 0.2, %v1261_v14  ;;  %v1228_v13 = vadd.f32 %v1751_v41, %v1163_v15  ;;  %v1284_v21 = vsel %vm1268_vm4, %v1260_v3, %v1276_v11 }
 0x13a   : > { %v1166_v20 = vadd.f32 %v1714_v17, %v2155_v55 }
 0x13b   : > { %v1285_v22 = vsel %vm1269_vm5, %v1261_v14, %v1277_v19  ;;  %v1247_v23 = vmul.f32 %v2160_v4, %v1228_v13 }
 0x13c   : > { %v1585_v24 = vpack.c.bf16 %v1285_v22, %v1284_v21  ;;  %v1231_v26 = vadd.f32 %v1754_v18, %v1166_v20 }
 0x13d   : > { %v1262_v28 = vadd.f32 %v2165_v8, %v1247_v23 }
 0x13e   : > { %1593 = vst [vmem:[%s2177_s28 + $0x10] sm:$0xff] %v1585_v24   ;;  %v1248_v53 = vmul.f32 %v2160_v4, %v1231_v26 }
 0x13f   : > { %v1278_v29 = vmul.f32 0.2, %v1262_v28  ;;  %vm1270_vm6 = vcmp.ge.f32.partialorder %v1262_v28, 0.0 }
 0x140   : > { %v1263_v30 = vadd.f32 %v2165_v8, %v1248_v53 }
 0x141   : > { %v1286_v32 = vsel %vm1270_vm6, %v1262_v28, %v1278_v29 }
 0x142   : > { %vm1271_vm7 = vcmp.ge.f32.partialorder %v1263_v30, 0.0  ;;  %v1279_v31 = vmul.f32 0.2, %v1263_v30 }
 0x144   : > { %v1287_v55 = vsel %vm1271_vm7, %v1263_v30, %v1279_v31 }
 0x145   : > { %v1590_v33 = vpack.c.bf16 %v1287_v55, %v1286_v32 }
 0x147   : > { %1594 = vst [vmem:[%s2177_s28 + $0x18] sm:$0xff] %v1590_v33  }
 0x148 PF: > { %s14_s17 = sadd.s32 1, %s1865_s17   ;;  %s2213_s15 = smov %s1861_s16 }
 0x149   : > { %p11_p5 = scmp.ge.s32.totalorder %s14_s17, 4   ;;  %s2214_s16 = smov %s2216_s18 }
 0x14b   :  { %13 = sbr.rel (!%p11_p5) target bundleno = 2 (0x2), region = 75 }

// kernel: _forward.6
= control target key start
LH: loop header
LB: loop body
LE: loop exit
PB: predicated region body
PF: predicated region fallthrough
CT: control target
= control target key end

     0   :  { %s3225_s15 = smov 0   ;;  %s3227_s16 = smov 0   ;;  %s4105_s0 = inlined_call_operand.vmem [shape: bf16[32,2048], index: 0, kind: input, shape index: {}]   ;;  %s4106_s1 = inlined_call_operand.vmem [shape: bf16[2048,256], index: 1, kind: input, shape index: {}]   ;;  %s4107_s2 = inlined_call_operand.vmem [shape: f32[1,256], index: 2, kind: input, shape index: {}]   ;;  %s4108_s3 = inlined_call_operand.vmem [shape: f32[1,256], index: 3, kind: input, shape index: {}]   ;;  %s4109_s4 = inlined_call_operand.vmem [shape: bf16[32,256], index: 4, kind: output, shape index: {}]  }
   0x1   :  { %s3229_s17 = smov 0  }
   0x2 LB: > { %s26_s18 = sadd.s32 1, %s3194_s16  ;;  %p2453_p0 = scmp.ge.s32.totalorder %s3198_s17, 1  ;;  %s3198_s17 = sphi %s3229_s17, %s14_s17   ;;  %s3194_s16 = sphi %s3227_s16, %s4111_s16   ;;  %s3190_s15 = sphi %s3225_s15, %s4110_s15  }
   0x3   : > { %p28_p1 = scmp.ge.s32.totalorder %s26_s18, 2  ;;  %p209_p2 = scmp.lt.s32.totalorder %s3198_s17, 3 }
   0x5   : > { %s4113_s18 = smov (%p28_p1, %s26_s18), 0  ;;  %p210_p3 = pnand %p2453_p0, %p209_p2 }
   0x6   : > { %v2792_v0 = vld [vmem:[%s4106_s1 + $0x4] ss:$8 sps:$4 sm:$0xff] (!%p210_p3)   ;;  %v2796_v2 = vld [vmem:[%s4106_s1] ss:$8 sps:$4 sm:$0xff] (!%p210_p3)   ;;  %v2798_v4 = vld [vmem:[%s4106_s1 + $0x14] ss:$8 sps:$4 sm:$0xff] (!%p210_p3)  }
   0x7   : > { %213 = sbr.rel (%p210_p3) target bundleno = 491 (0x1eb), region = 36  ;;  %v2794_v1 = vld [vmem:[%s4106_s1 + $0x404] ss:$8 sps:$4 sm:$0xff] (!%p210_p3)   ;;  %1921 = vmatprep.subr.bf16.mxu1 (!%p210_p3), %v2792_v0  ;;  %v2797_v3 = vld [vmem:[%s4106_s1 + $0x400] ss:$8 sps:$4 sm:$0xff] (!%p210_p3)   ;;  %s2454_s9 = sshll.u32 (!%p210_p3), %s3190_s15, 1 }
   0x8   : > { %2093 = vmatprep.subr.bf16.mxu0 (!%p210_p3), %v2794_v1  ;;  %1922 = vmatpush1.bf16.msra.mxu1 (!%p210_p3), %v2796_v2  ;;  %v2800_v5 = vld [vmem:[%s4106_s1 + $0x414] ss:$8 sps:$4 sm:$0xff] (!%p210_p3)   ;;  %v2802_v6 = vld [vmem:[%s4106_s1 + $0x10] ss:$8 sps:$4 sm:$0xff] (!%p210_p3)   ;;  %v2804_v8 = vld [vmem:[%s4106_s1 + $0x24] ss:$8 sps:$4 sm:$0xff] (!%p210_p3)  }
   0x9   : > { %2094 = vmatpush1.bf16.msra.mxu0 (!%p210_p3), %v2797_v3  ;;  %1923 = vmatprep.subr.bf16.mxu1 (!%p210_p3), %v2798_v4  ;;  %v2803_v7 = vld [vmem:[%s4106_s1 + $0x410] ss:$8 sps:$4 sm:$0xff] (!%p210_p3)   ;;  %v2806_v9 = vld [vmem:[%s4106_s1 + $0x424] ss:$8 sps:$4 sm:$0xff] (!%p210_p3)   ;;  %v2808_v10 = vld [vmem:[%s4106_s1 + $0x20] ss:$8 sps:$4 sm:$0xff] (!%p210_p3)  }
   0xa   : > { %2095 = vmatprep.subr.bf16.mxu0 (!%p210_p3), %v2800_v5  ;;  %v2809_v11 = vld [vmem:[%s4106_s1 + $0x420] ss:$8 sps:$4 sm:$0xff] (!%p210_p3)   ;;  %v2810_v12 = vld [vmem:[%s4106_s1 + $0x34] ss:$8 sps:$4 sm:$0xff] (!%p210_p3)   ;;  %v2814_v14 = vld [vmem:[%s4106_s1 + $0x30] ss:$8 sps:$4 sm:$0xff] (!%p210_p3)  }
   0xb   : > { %v2812_v13 = vld [vmem:[%s4106_s1 + $0x434] ss:$8 sps:$4 sm:$0xff] (!%p210_p3)   ;;  %v2815_v15 = vld [vmem:[%s4106_s1 + $0x430] ss:$8 sps:$4 sm:$0xff] (!%p210_p3)   ;;  %v2816_v16 = vld [vmem:[%s4106_s1 + $0x44] ss:$8 sps:$4 sm:$0xff] (!%p210_p3)  }
   0xc   : > { %1924 = vmatpush1.bf16.msra.mxu1 (!%p210_p3), %v2802_v6  ;;  %v2818_v17 = vld [vmem:[%s4106_s1 + $0x444] ss:$8 sps:$4 sm:$0xff] (!%p210_p3)   ;;  %v2820_v18 = vld [vmem:[%s4106_s1 + $0x40] ss:$8 sps:$4 sm:$0xff] (!%p210_p3)   ;;  %v2822_v20 = vld [vmem:[%s4106_s1 + $0x54] ss:$8 sps:$4 sm:$0xff] (!%p210_p3)  }
   0xd   : > { %2096 = vmatpush1.bf16.msra.mxu0 (!%p210_p3), %v2803_v7  ;;  %1925 = vmatprep.subr.bf16.mxu1 (!%p210_p3), %v2804_v8  ;;  %v2821_v19 = vld [vmem:[%s4106_s1 + $0x440] ss:$8 sps:$4 sm:$0xff] (!%p210_p3)   ;;  %v2824_v21 = vld [vmem:[%s4106_s1 + $0x454] ss:$8 sps:$4 sm:$0xff] (!%p210_p3)   ;;  %v2826_v22 = vld [vmem:[%s4106_s1 + $0x50] ss:$8 sps:$4 sm:$0xff] (!%p210_p3)  }
   0xe   : > { %2097 = vmatprep.subr.bf16.mxu0 %v2806_v9  ;;  %v2827_v23 = vld [vmem:[%s4106_s1 + $0x450] ss:$8 sps:$4 sm:$0xff]   ;;  %v2828_v24 = vld [vmem:[%s4106_s1 + $0x64] ss:$8 sps:$4 sm:$0xff]   ;;  %v2832_v26 = vld [vmem:[%s4106_s1 + $0x60] ss:$8 sps:$4 sm:$0xff]  }
   0xf   : > { %v2830_v25 = vld [vmem:[%s4106_s1 + $0x464] ss:$8 sps:$4 sm:$0xff]   ;;  %v2833_v27 = vld [vmem:[%s4106_s1 + $0x460] ss:$8 sps:$4 sm:$0xff]   ;;  %v2834_v28 = vld [vmem:[%s4106_s1 + $0x74] ss:$8 sps:$4 sm:$0xff]  }
  0x10   : > { %1926 = vmatpush1.bf16.msra.mxu1 %v2808_v10  ;;  %v2836_v29 = vld [vmem:[%s4106_s1 + $0x474] ss:$8 sps:$4 sm:$0xff]   ;;  %v2838_v30 = vld [vmem:[%s4106_s1 + $0x70] ss:$8 sps:$4 sm:$0xff]   ;;  %v2840_v32 = vld [vmem:[%s4106_s1 + $0x84] ss:$8 sps:$4 sm:$0xff]  }
  0x11   : > { %2098 = vmatpush1.bf16.msra.mxu0 %v2809_v11  ;;  %1927 = vmatprep.subr.bf16.mxu1 %v2810_v12  ;;  %v2839_v31 = vld [vmem:[%s4106_s1 + $0x470] ss:$8 sps:$4 sm:$0xff]   ;;  %p255_p4 = scmp.lt.s32.totalorder %s2454_s9, 3  ;;  %v2842_v33 = vld [vmem:[%s4106_s1 + $0x484] ss:$8 sps:$4 sm:$0xff]  }
  0x12   : > { %2099 = vmatprep.subr.bf16.mxu0 %v2812_v13  ;;  %v2844_v34 = vld [vmem:[%s4106_s1 + $0x80] ss:$8 sps:$4 sm:$0xff]   ;;  %v2846_v36 = vld [vmem:[%s4106_s1 + $0x94] ss:$8 sps:$4 sm:$0xff]   ;;  %v2850_v38 = vld [vmem:[%s4106_s1 + $0x90] ss:$8 sps:$4 sm:$0xff]  }
  0x13   : > { %v2845_v35 = vld [vmem:[%s4106_s1 + $0x480] ss:$8 sps:$4 sm:$0xff]   ;;  %s4115_s9 = smov (!%p255_p4, %s2454_s9), 3  ;;  %v2848_v37 = vld [vmem:[%s4106_s1 + $0x494] ss:$8 sps:$4 sm:$0xff]  }
  0x14   : > { %1928 = vmatpush1.bf16.msra.mxu1 %v2814_v14  ;;  %v2851_v39 = vld [vmem:[%s4106_s1 + $0x490] ss:$8 sps:$4 sm:$0xff]   ;;  %v2852_v40 = vld [vmem:[%s4106_s1 + $0xa4] ss:$8 sps:$4 sm:$0xff]   ;;  %s2736_s10 = sshll.u32 %s4115_s9, 6  ;;  %s2737_s25 = sshll.u32 %s4115_s9, 3 }
  0x15   : > { %2100 = vmatpush1.bf16.msra.mxu0 %v2815_v15  ;;  %1929 = vmatprep.subr.bf16.mxu1 %v2816_v16  ;;  %v2854_v41 = vld [vmem:[%s4106_s1 + $0x4a4] ss:$8 sps:$4 sm:$0xff]   ;;  %v2856_v42 = vld [vmem:[%s4106_s1 + $0xa0] ss:$8 sps:$4 sm:$0xff]   ;;  %s3384_s22 = scalar_lea.vmem %s4105_s0, %s2736_s10  ;;  %v2858_v44 = vld [vmem:[%s4106_s1 + $0xb4] ss:$8 sps:$4 sm:$0xff]   ;;  %s286_s28 = scalar_lea.vmem %s4109_s4, %s2737_s25 }
  0x16   : > { %2101 = vmatprep.subr.bf16.mxu0 %v2818_v17  ;;  %v2857_v43 = vld [vmem:[%s4106_s1 + $0x4a0] ss:$8 sps:$4 sm:$0xff]   ;;  %v2860_v45 = vld [vmem:[%s4106_s1 + $0x4b4] ss:$8 sps:$4 sm:$0xff]   ;;  %v2862_v46 = vld [vmem:[%s4106_s1 + $0xb0] ss:$8 sps:$4 sm:$0xff]  }
  0x17   : > { %v2863_v47 = vld [vmem:[%s4106_s1 + $0x4b0] ss:$8 sps:$4 sm:$0xff]   ;;  %v289_v48 = vld [vmem:[%s3384_s22] sm:$0xff]  ;;  %v2870_v58 = vld [vmem:[%s4106_s1 + $0xd4] ss:$8 sps:$4 sm:$0xff]  }
  0x18   : > { %1930 = vmatpush1.bf16.msra.mxu1 %v2820_v18  ;;  %v297_v49 = vld [vmem:[%s3384_s22 + $0x40] sm:$0xff]  ;;  %v2872_v59 = vld [vmem:[%s4106_s1 + $0x4d4] ss:$8 sps:$4 sm:$0xff]   ;;  %v2874_v60 = vld [vmem:[%s4106_s1 + $0xd0] ss:$8 sps:$4 sm:$0xff]  }
  0x19   : > { %2102 = vmatpush1.bf16.msra.mxu0 %v2821_v19  ;;  %1931 = vmatprep.subr.bf16.mxu1 %v2822_v20  ;;  %v2864_v50 = vld [vmem:[%s4106_s1 + $0xc4] ss:$8 sps:$4 sm:$0xff]   ;;  %v2461_v52 = vcombine.high %v289_v48, %v297_v49  ;;  %v2868_v56 = vld [vmem:[%s4106_s1 + $0xc0] ss:$8 sps:$4 sm:$0xff]   ;;  %v2875_v61 = vld [vmem:[%s4106_s1 + $0x4d0] ss:$8 sps:$4 sm:$0xff]   ;;  %v2460_v8 = vcombine.low %v289_v48, %v297_v49 }
  0x1a   : > { %2103 = vmatprep.subr.bf16.mxu0 %v2824_v21  ;;  %v2866_v51 = vld [vmem:[%s4106_s1 + $0x4c4] ss:$8 sps:$4 sm:$0xff]   ;;  %v2869_v57 = vld [vmem:[%s4106_s1 + $0x4c0] ss:$8 sps:$4 sm:$0xff]   ;;  %v2882_v2 = vld [vmem:[%s4106_s1 + $0xf4] ss:$8 sps:$4 sm:$0xff]  }
  0x1b   : > { %v293_v53 = vld [vmem:[%s3384_s22 + $0x20] sm:$0xff]  ;;  %1953 = vmatprep.mubr.bf16.mxu1 %v2461_v52  ;;  %v2884_v3 = vld [vmem:[%s4106_s1 + $0x4f4] ss:$8 sps:$4 sm:$0xff]   ;;  %v2886_v4 = vld [vmem:[%s4106_s1 + $0xf0] ss:$8 sps:$4 sm:$0xff]  }
  0x1c   : > { %1932 = vmatpush1.bf16.msra.mxu1 %v2826_v22  ;;  %v301_v54 = vld [vmem:[%s3384_s22 + $0x60] sm:$0xff]  ;;  %v2887_v5 = vld [vmem:[%s4106_s1 + $0x4f0] ss:$8 sps:$4 sm:$0xff]   ;;  %v2896_v12 = vld [vmem:[%s4106_s1 + $0x114] ss:$8 sps:$4 sm:$0xff]  }
  0x1d   : > { %2104 = vmatpush1.bf16.msra.mxu0 %v2827_v23  ;;  %1933 = vmatprep.subr.bf16.mxu1 %v2828_v24  ;;  %v2469_v55 = vcombine.high %v293_v53, %v301_v54  ;;  %v2876_v62 = vld [vmem:[%s4106_s1 + $0xe4] ss:$8 sps:$4 sm:$0xff]   ;;  %v2880_v0 = vld [vmem:[%s4106_s1 + $0xe0] ss:$8 sps:$4 sm:$0xff]   ;;  %v2468_v10 = vcombine.low %v293_v53, %v301_v54  ;;  %v2899_v13 = vld [vmem:[%s4106_s1 + $0x514] ss:$8 sps:$4 sm:$0xff]  }
  0x1e   : > { %2105 = vmatprep.subr.bf16.mxu0 %v2830_v25  ;;  %v2878_v63 = vld [vmem:[%s4106_s1 + $0x4e4] ss:$8 sps:$4 sm:$0xff]   ;;  %v2881_v1 = vld [vmem:[%s4106_s1 + $0x4e0] ss:$8 sps:$4 sm:$0xff]   ;;  %v2894_v14 = vld [vmem:[%s4106_s1 + $0x110] ss:$8 sps:$4 sm:$0xff]  }
  0x1f   : > { %2125 = vmatprep.mubr.bf16.mxu0 %v2469_v55  ;;  %v2890_v6 = vld [vmem:[%s4106_s1 + $0x104] ss:$8 sps:$4 sm:$0xff]   ;;  %v2888_v9 = vld [vmem:[%s4106_s1 + $0x100] ss:$8 sps:$4 sm:$0xff]   ;;  %v2897_v15 = vld [vmem:[%s4106_s1 + $0x510] ss:$8 sps:$4 sm:$0xff]  }
  0x20   : > { %1934 = vmatpush1.bf16.msra.mxu1 %v2832_v26  ;;  %v2893_v7 = vld [vmem:[%s4106_s1 + $0x504] ss:$8 sps:$4 sm:$0xff]   ;;  %v2891_v11 = vld [vmem:[%s4106_s1 + $0x500] ss:$8 sps:$4 sm:$0xff]   ;;  %v2908_v20 = vld [vmem:[%s4106_s1 + $0x134] ss:$8 sps:$4 sm:$0xff]  }
  0x21   : > { %2106 = vmatpush1.bf16.msra.mxu0 %v2833_v27  ;;  %1935 = vmatprep.subr.bf16.mxu1 %v2834_v28  ;;  %v2902_v16 = vld [vmem:[%s4106_s1 + $0x124] ss:$8 sps:$4 sm:$0xff]   ;;  %v2900_v18 = vld [vmem:[%s4106_s1 + $0x120] ss:$8 sps:$4 sm:$0xff]   ;;  %v2911_v21 = vld [vmem:[%s4106_s1 + $0x534] ss:$8 sps:$4 sm:$0xff]  }
  0x22   : > { %2107 = vmatprep.subr.bf16.mxu0 %v2836_v29  ;;  %v2905_v17 = vld [vmem:[%s4106_s1 + $0x524] ss:$8 sps:$4 sm:$0xff]   ;;  %v2903_v19 = vld [vmem:[%s4106_s1 + $0x520] ss:$8 sps:$4 sm:$0xff]   ;;  %v2906_v22 = vld [vmem:[%s4106_s1 + $0x130] ss:$8 sps:$4 sm:$0xff]  }
  0x23   : > { %v2909_v23 = vld [vmem:[%s4106_s1 + $0x530] ss:$8 sps:$4 sm:$0xff]   ;;  %v2914_v24 = vld [vmem:[%s4106_s1 + $0x144] ss:$8 sps:$4 sm:$0xff]   ;;  %v2912_v26 = vld [vmem:[%s4106_s1 + $0x140] ss:$8 sps:$4 sm:$0xff]  }
  0x24   : > { %1936 = vmatpush1.bf16.msra.mxu1 %v2838_v30  ;;  %v2917_v25 = vld [vmem:[%s4106_s1 + $0x544] ss:$8 sps:$4 sm:$0xff]   ;;  %v2915_v27 = vld [vmem:[%s4106_s1 + $0x540] ss:$8 sps:$4 sm:$0xff]   ;;  %v2920_v28 = vld [vmem:[%s4106_s1 + $0x154] ss:$8 sps:$4 sm:$0xff]  }
  0x25   : > { %2108 = vmatpush1.bf16.msra.mxu0 %v2839_v31  ;;  %1937 = vmatprep.subr.bf16.mxu1 %v2840_v32  ;;  %v2923_v29 = vld [vmem:[%s4106_s1 + $0x554] ss:$8 sps:$4 sm:$0xff]   ;;  %v2918_v30 = vld [vmem:[%s4106_s1 + $0x150] ss:$8 sps:$4 sm:$0xff]   ;;  %v2926_v32 = vld [vmem:[%s4106_s1 + $0x164] ss:$8 sps:$4 sm:$0xff]  }
  0x26   : > { %2109 = vmatprep.subr.bf16.mxu0 %v2842_v33  ;;  %v2921_v31 = vld [vmem:[%s4106_s1 + $0x550] ss:$8 sps:$4 sm:$0xff]   ;;  %v2929_v33 = vld [vmem:[%s4106_s1 + $0x564] ss:$8 sps:$4 sm:$0xff]   ;;  %v2936_v48 = vld [vmem:[%s4106_s1 + $0x180] ss:$8 sps:$4 sm:$0xff]  }
  0x27   : > { %v2939_v49 = vld [vmem:[%s4106_s1 + $0x580] ss:$8 sps:$4 sm:$0xff]   ;;  %v2942_v52 = vld [vmem:[%s4106_s1 + $0x190] ss:$8 sps:$4 sm:$0xff]   ;;  %v2950_v54 = vld [vmem:[%s4106_s1 + $0x1a4] ss:$8 sps:$4 sm:$0xff]  }
  0x28   : > { %1938 = vmatpush1.bf16.msra.mxu1 %v2844_v34  ;;  %v2924_v34 = vld [vmem:[%s4106_s1 + $0x160] ss:$8 sps:$4 sm:$0xff]   ;;  %v2945_v53 = vld [vmem:[%s4106_s1 + $0x590] ss:$8 sps:$4 sm:$0xff]   ;;  %v2953_v55 = vld [vmem:[%s4106_s1 + $0x5a4] ss:$8 sps:$4 sm:$0xff]  }
  0x29   : > { %2110 = vmatpush1.bf16.msra.mxu0 %v2845_v35  ;;  %1939 = vmatprep.subr.bf16.mxu1 %v2846_v36  ;;  %v2927_v35 = vld [vmem:[%s4106_s1 + $0x560] ss:$8 sps:$4 sm:$0xff]  }
  0x2a   : > { %2111 = vmatprep.subr.bf16.mxu0 %v2848_v37  ;;  %v3535_v36 = vld [vmem:[%s3384_s22 + $0x8] sm:$0xff] }
  0x2b   : > { %v3538_v37 = vld [vmem:[%s3384_s22 + $0x48] sm:$0xff] }
  0x2c   : > { %1940 = vmatpush1.bf16.msra.mxu1 %v2850_v38  ;;  %v2932_v38 = vld [vmem:[%s4106_s1 + $0x174] ss:$8 sps:$4 sm:$0xff]  }
  0x2d   : > { %2112 = vmatpush1.bf16.msra.mxu0 %v2851_v39  ;;  %1941 = vmatprep.subr.bf16.mxu1 %v2852_v40  ;;  %v2935_v39 = vld [vmem:[%s4106_s1 + $0x574] ss:$8 sps:$4 sm:$0xff]   ;;  %v2463_v40 = vcombine.high %v3535_v36, %v3538_v37 }
  0x2e   : > { %2113 = vmatprep.subr.bf16.mxu0 %v2854_v41  ;;  %v3549_v41 = vld [vmem:[%s3384_s22 + $0x28] sm:$0xff] }
  0x30   : > { %1942 = vmatpush1.bf16.msra.mxu1 %v2856_v42  ;;  %v3552_v42 = vld [vmem:[%s3384_s22 + $0x68] sm:$0xff] }
  0x31   : > { %2114 = vmatpush1.bf16.msra.mxu0 %v2857_v43  ;;  %1943 = vmatprep.subr.bf16.mxu1 %v2858_v44  ;;  %v2471_v43 = vcombine.high %v3549_v41, %v3552_v42  ;;  %v2930_v44 = vld [vmem:[%s4106_s1 + $0x170] ss:$8 sps:$4 sm:$0xff]  }
  0x32   : > { %2115 = vmatprep.subr.bf16.mxu0 %v2860_v45  ;;  %v2933_v45 = vld [vmem:[%s4106_s1 + $0x570] ss:$8 sps:$4 sm:$0xff]  }
  0x34   : > { %1944 = vmatpush1.bf16.msra.mxu1 %v2862_v46  ;;  %v2938_v46 = vld [vmem:[%s4106_s1 + $0x184] ss:$8 sps:$4 sm:$0xff]  }
  0x35   : > { %2116 = vmatpush1.bf16.msra.mxu0 %v2863_v47  ;;  %1945 = vmatprep.subr.bf16.mxu1 %v2864_v50  ;;  %v2941_v47 = vld [vmem:[%s4106_s1 + $0x584] ss:$8 sps:$4 sm:$0xff]   ;;  %v2944_v50 = vld [vmem:[%s4106_s1 + $0x194] ss:$8 sps:$4 sm:$0xff]  }
  0x36   : > { %2117 = vmatprep.subr.bf16.mxu0 %v2866_v51  ;;  %v2947_v51 = vld [vmem:[%s4106_s1 + $0x594] ss:$8 sps:$4 sm:$0xff]  }
  0x38   : > { %1946 = vmatpush1.bf16.msra.mxu1 %v2868_v56  ;;  %v2948_v56 = vld [vmem:[%s4106_s1 + $0x1a0] ss:$8 sps:$4 sm:$0xff]  }
  0x39   : > { %2118 = vmatpush1.bf16.msra.mxu0 %v2869_v57  ;;  %1947 = vmatprep.subr.bf16.mxu1 %v2870_v58  ;;  %v2951_v57 = vld [vmem:[%s4106_s1 + $0x5a0] ss:$8 sps:$4 sm:$0xff]   ;;  %v2956_v58 = vld [vmem:[%s4106_s1 + $0x1b4] ss:$8 sps:$4 sm:$0xff]  }
  0x3a   : > { %2119 = vmatprep.subr.bf16.mxu0 %v2872_v59  ;;  %v2959_v59 = vld [vmem:[%s4106_s1 + $0x5b4] ss:$8 sps:$4 sm:$0xff]  }
  0x3c   : > { %1948 = vmatpush1.bf16.msra.mxu1 %v2874_v60  ;;  %v2954_v60 = vld [vmem:[%s4106_s1 + $0x1b0] ss:$8 sps:$4 sm:$0xff]  }
  0x3d   : > { %2120 = vmatpush1.bf16.msra.mxu0 %v2875_v61  ;;  %1949 = vmatprep.subr.bf16.mxu1 %v2876_v62  ;;  %v2957_v61 = vld [vmem:[%s4106_s1 + $0x5b0] ss:$8 sps:$4 sm:$0xff]   ;;  %v2962_v62 = vld [vmem:[%s4106_s1 + $0x1c4] ss:$8 sps:$4 sm:$0xff]  }
  0x3e   : > { %2121 = vmatprep.subr.bf16.mxu0 %v2878_v63  ;;  %v2965_v63 = vld [vmem:[%s4106_s1 + $0x5c4] ss:$8 sps:$4 sm:$0xff]  }
  0x40   : > { %1950 = vmatpush1.bf16.msra.mxu1 %v2880_v0  ;;  %v2960_v0 = vld [vmem:[%s4106_s1 + $0x1c0] ss:$8 sps:$4 sm:$0xff]  }
  0x41   : > { %2122 = vmatpush1.bf16.msra.mxu0 %v2881_v1  ;;  %1951 = vmatprep.subr.bf16.mxu1 %v2882_v2  ;;  %v2963_v1 = vld [vmem:[%s4106_s1 + $0x5c0] ss:$8 sps:$4 sm:$0xff]   ;;  %v2968_v2 = vld [vmem:[%s4106_s1 + $0x1d4] ss:$8 sps:$4 sm:$0xff]  }
  0x42   : > { %2123 = vmatprep.subr.bf16.mxu0 %v2884_v3  ;;  %v2971_v3 = vld [vmem:[%s4106_s1 + $0x5d4] ss:$8 sps:$4 sm:$0xff]  }
  0x44   : > { %1952 = vmatpush1.bf16.msra.mxu1 %v2886_v4  ;;  %v2966_v4 = vld [vmem:[%s4106_s1 + $0x1d0] ss:$8 sps:$4 sm:$0xff]  }
  0x45   : > { %2124 = vmatpush1.bf16.msra.mxu0 %v2887_v5  ;;  %1964 = vmatprep.subr.bf16.mxu1 %v2890_v6  ;;  %v2969_v5 = vld [vmem:[%s4106_s1 + $0x5d0] ss:$8 sps:$4 sm:$0xff]   ;;  %v2974_v6 = vld [vmem:[%s4106_s1 + $0x1e4] ss:$8 sps:$4 sm:$0xff]  }
  0x46   : > { %2136 = vmatprep.subr.bf16.mxu0 %v2893_v7  ;;  %v2977_v7 = vld [vmem:[%s4106_s1 + $0x5e4] ss:$8 sps:$4 sm:$0xff]  }
  0x47   : > { %1954 = vmatmul.mubr.bf16.vlgmr.msra.gmra.mrb[0].mxu1 %v2460_v8  ;;  %v2972_v8 = vld [vmem:[%s4106_s1 + $0x1e0] ss:$8 sps:$4 sm:$0xff]  }
  0x48   : > { %2126 = vmatmul.mubr.bf16.vlgmr.msra.gmra.mrb[0].mxu0 %v2468_v10  ;;  %1965 = vmatpush1.bf16.msra.mxu1 %v2888_v9  ;;  %v2975_v9 = vld [vmem:[%s4106_s1 + $0x5e0] ss:$8 sps:$4 sm:$0xff]   ;;  %v2980_v10 = vld [vmem:[%s4106_s1 + $0x1f4] ss:$8 sps:$4 sm:$0xff]  }
  0x49   : > { %2137 = vmatpush1.bf16.msra.mxu0 %v2891_v11  ;;  %1966 = vmatprep.subr.bf16.mxu1 %v2896_v12  ;;  %v2983_v11 = vld [vmem:[%s4106_s1 + $0x5f4] ss:$8 sps:$4 sm:$0xff]   ;;  %v2978_v12 = vld [vmem:[%s4106_s1 + $0x1f0] ss:$8 sps:$4 sm:$0xff]  }
  0x4a   : > { %2138 = vmatprep.subr.bf16.mxu0 %v2899_v13  ;;  %1996 = vmatprep.mubr.bf16.mxu1 %v2463_v40  ;;  %v2981_v13 = vld [vmem:[%s4106_s1 + $0x5f0] ss:$8 sps:$4 sm:$0xff]   ;;  %v3008_v40 = vld [vmem:[%s4106_s1 + $0x240] ss:$8 sps:$4 sm:$0xff]  }
  0x4b   : > { %2168 = vmatprep.mubr.bf16.mxu0 %v2471_v43  ;;  %v3019_v43 = vld [vmem:[%s4106_s1 + $0x654] ss:$8 sps:$4 sm:$0xff]  }
  0x4c   : > { %1967 = vmatpush1.bf16.msra.mxu1 %v2894_v14  ;;  %v2986_v14 = vld [vmem:[%s4106_s1 + $0x204] ss:$8 sps:$4 sm:$0xff]  }
  0x4d   : > { %2139 = vmatpush1.bf16.msra.mxu0 %v2897_v15  ;;  %1968 = vmatprep.subr.bf16.mxu1 %v2902_v16  ;;  %v2989_v15 = vld [vmem:[%s4106_s1 + $0x604] ss:$8 sps:$4 sm:$0xff]   ;;  %v2462_v16 = vcombine.low %v3535_v36, %v3538_v37  ;;  %v3002_v36 = vld [vmem:[%s4106_s1 + $0x230] ss:$8 sps:$4 sm:$0xff]  }
  0x4e   : > { %2140 = vmatprep.subr.bf16.mxu0 %v2905_v17  ;;  %v2984_v17 = vld [vmem:[%s4106_s1 + $0x200] ss:$8 sps:$4 sm:$0xff]   ;;  %v3005_v37 = vld [vmem:[%s4106_s1 + $0x630] ss:$8 sps:$4 sm:$0xff]  }
  0x50   : > { %1969 = vmatpush1.bf16.msra.mxu1 %v2900_v18  ;;  %v2470_v18 = vcombine.low %v3549_v41, %v3552_v42  ;;  %v3011_v41 = vld [vmem:[%s4106_s1 + $0x640] ss:$8 sps:$4 sm:$0xff]   ;;  %v3016_v42 = vld [vmem:[%s4106_s1 + $0x254] ss:$8 sps:$4 sm:$0xff]  }
  0x51   : > { %2141 = vmatpush1.bf16.msra.mxu0 %v2903_v19  ;;  %1970 = vmatprep.subr.bf16.mxu1 %v2908_v20  ;;  %v2987_v19 = vld [vmem:[%s4106_s1 + $0x600] ss:$8 sps:$4 sm:$0xff]   ;;  %v2992_v20 = vld [vmem:[%s4106_s1 + $0x214] ss:$8 sps:$4 sm:$0xff]  }
  0x52   : > { %2142 = vmatprep.subr.bf16.mxu0 %v2911_v21  ;;  %v2995_v21 = vld [vmem:[%s4106_s1 + $0x614] ss:$8 sps:$4 sm:$0xff]  }
  0x54   : > { %1971 = vmatpush1.bf16.msra.mxu1 %v2906_v22  ;;  %v2990_v22 = vld [vmem:[%s4106_s1 + $0x210] ss:$8 sps:$4 sm:$0xff]  }
  0x55   : > { %2143 = vmatpush1.bf16.msra.mxu0 %v2909_v23  ;;  %1972 = vmatprep.subr.bf16.mxu1 %v2914_v24  ;;  %v2993_v23 = vld [vmem:[%s4106_s1 + $0x610] ss:$8 sps:$4 sm:$0xff]  }
  0x56   : > { %2144 = vmatprep.subr.bf16.mxu0 %v2917_v25  ;;  %v3687_v24 = vld [vmem:[%s3384_s22 + $0x10] sm:$0xff] }
  0x57   : > { %v3690_v25 = vld [vmem:[%s3384_s22 + $0x50] sm:$0xff] }
  0x58   : > { %1973 = vmatpush1.bf16.msra.mxu1 %v2912_v26  ;;  %v2998_v26 = vld [vmem:[%s4106_s1 + $0x224] ss:$8 sps:$4 sm:$0xff]  }
  0x59   : > { %2145 = vmatpush1.bf16.msra.mxu0 %v2915_v27  ;;  %1974 = vmatprep.subr.bf16.mxu1 %v2920_v28  ;;  %v3001_v27 = vld [vmem:[%s4106_s1 + $0x624] ss:$8 sps:$4 sm:$0xff]   ;;  %v2465_v28 = vcombine.high %v3687_v24, %v3690_v25 }
  0x5a   : > { %2146 = vmatprep.subr.bf16.mxu0 %v2923_v29  ;;  %v3701_v29 = vld [vmem:[%s3384_s22 + $0x30] sm:$0xff] }
  0x5c   : > { %1975 = vmatpush1.bf16.msra.mxu1 %v2918_v30  ;;  %v3704_v30 = vld [vmem:[%s3384_s22 + $0x70] sm:$0xff] }
  0x5d   : > { %2147 = vmatpush1.bf16.msra.mxu0 %v2921_v31  ;;  %1976 = vmatprep.subr.bf16.mxu1 %v2926_v32  ;;  %v2473_v31 = vcombine.high %v3701_v29, %v3704_v30  ;;  %v2996_v32 = vld [vmem:[%s4106_s1 + $0x220] ss:$8 sps:$4 sm:$0xff]  }
  0x5e   : > { %2148 = vmatprep.subr.bf16.mxu0 %v2929_v33  ;;  %v2999_v33 = vld [vmem:[%s4106_s1 + $0x620] ss:$8 sps:$4 sm:$0xff]  }
  0x60   : > { %1977 = vmatpush1.bf16.msra.mxu1 %v2924_v34  ;;  %v3004_v34 = vld [vmem:[%s4106_s1 + $0x234] ss:$8 sps:$4 sm:$0xff]  }
  0x61   : > { %2149 = vmatpush1.bf16.msra.mxu0 %v2927_v35  ;;  %1978 = vmatprep.subr.bf16.mxu1 %v2932_v38  ;;  %v3007_v35 = vld [vmem:[%s4106_s1 + $0x634] ss:$8 sps:$4 sm:$0xff]   ;;  %v3010_v38 = vld [vmem:[%s4106_s1 + $0x244] ss:$8 sps:$4 sm:$0xff]  }
  0x62   : > { %2150 = vmatprep.subr.bf16.mxu0 %v2935_v39  ;;  %v3013_v39 = vld [vmem:[%s4106_s1 + $0x644] ss:$8 sps:$4 sm:$0xff]  }
  0x64   : > { %1979 = vmatpush1.bf16.msra.mxu1 %v2930_v44  ;;  %v3014_v44 = vld [vmem:[%s4106_s1 + $0x250] ss:$8 sps:$4 sm:$0xff]  }
  0x65   : > { %2151 = vmatpush1.bf16.msra.mxu0 %v2933_v45  ;;  %1980 = vmatprep.subr.bf16.mxu1 %v2938_v46  ;;  %v3017_v45 = vld [vmem:[%s4106_s1 + $0x650] ss:$8 sps:$4 sm:$0xff]   ;;  %v3022_v46 = vld [vmem:[%s4106_s1 + $0x264] ss:$8 sps:$4 sm:$0xff]  }
  0x66   : > { %2152 = vmatprep.subr.bf16.mxu0 %v2941_v47  ;;  %v3025_v47 = vld [vmem:[%s4106_s1 + $0x664] ss:$8 sps:$4 sm:$0xff]  }
  0x68   : > { %1981 = vmatpush1.bf16.msra.mxu1 %v2936_v48  ;;  %v3020_v48 = vld [vmem:[%s4106_s1 + $0x260] ss:$8 sps:$4 sm:$0xff]  }
  0x69   : > { %2153 = vmatpush1.bf16.msra.mxu0 %v2939_v49  ;;  %1982 = vmatprep.subr.bf16.mxu1 %v2944_v50  ;;  %v3023_v49 = vld [vmem:[%s4106_s1 + $0x660] ss:$8 sps:$4 sm:$0xff]   ;;  %v3028_v50 = vld [vmem:[%s4106_s1 + $0x274] ss:$8 sps:$4 sm:$0xff]  }
  0x6a   : > { %2154 = vmatprep.subr.bf16.mxu0 %v2947_v51  ;;  %v3031_v51 = vld [vmem:[%s4106_s1 + $0x674] ss:$8 sps:$4 sm:$0xff]  }
  0x6c   : > { %1983 = vmatpush1.bf16.msra.mxu1 %v2942_v52  ;;  %v3026_v52 = vld [vmem:[%s4106_s1 + $0x270] ss:$8 sps:$4 sm:$0xff]  }
  0x6d   : > { %2155 = vmatpush1.bf16.msra.mxu0 %v2945_v53  ;;  %1984 = vmatprep.subr.bf16.mxu1 %v2950_v54  ;;  %v3029_v53 = vld [vmem:[%s4106_s1 + $0x670] ss:$8 sps:$4 sm:$0xff]   ;;  %v3034_v54 = vld [vmem:[%s4106_s1 + $0x284] ss:$8 sps:$4 sm:$0xff]  }
  0x6e   : > { %2156 = vmatprep.subr.bf16.mxu0 %v2953_v55  ;;  %v3037_v55 = vld [vmem:[%s4106_s1 + $0x684] ss:$8 sps:$4 sm:$0xff]  }
  0x70   : > { %1985 = vmatpush1.bf16.msra.mxu1 %v2948_v56  ;;  %v3032_v56 = vld [vmem:[%s4106_s1 + $0x280] ss:$8 sps:$4 sm:$0xff]  }
  0x71   : > { %2157 = vmatpush1.bf16.msra.mxu0 %v2951_v57  ;;  %1986 = vmatprep.subr.bf16.mxu1 %v2956_v58  ;;  %v3035_v57 = vld [vmem:[%s4106_s1 + $0x680] ss:$8 sps:$4 sm:$0xff]   ;;  %v3040_v58 = vld [vmem:[%s4106_s1 + $0x294] ss:$8 sps:$4 sm:$0xff]  }
  0x72   : > { %2158 = vmatprep.subr.bf16.mxu0 %v2959_v59  ;;  %v3043_v59 = vld [vmem:[%s4106_s1 + $0x694] ss:$8 sps:$4 sm:$0xff]  }
  0x74   : > { %1987 = vmatpush1.bf16.msra.mxu1 %v2954_v60  ;;  %v3038_v60 = vld [vmem:[%s4106_s1 + $0x290] ss:$8 sps:$4 sm:$0xff]  }
  0x75   : > { %2159 = vmatpush1.bf16.msra.mxu0 %v2957_v61  ;;  %1988 = vmatprep.subr.bf16.mxu1 %v2962_v62  ;;  %v3041_v61 = vld [vmem:[%s4106_s1 + $0x690] ss:$8 sps:$4 sm:$0xff]   ;;  %v3046_v62 = vld [vmem:[%s4106_s1 + $0x2a4] ss:$8 sps:$4 sm:$0xff]  }
  0x76   : > { %2160 = vmatprep.subr.bf16.mxu0 %v2965_v63  ;;  %v3049_v63 = vld [vmem:[%s4106_s1 + $0x6a4] ss:$8 sps:$4 sm:$0xff]  }
  0x78   : > { %1989 = vmatpush1.bf16.msra.mxu1 %v2960_v0  ;;  %v3044_v0 = vld [vmem:[%s4106_s1 + $0x2a0] ss:$8 sps:$4 sm:$0xff]  }
  0x79   : > { %2161 = vmatpush1.bf16.msra.mxu0 %v2963_v1  ;;  %1990 = vmatprep.subr.bf16.mxu1 %v2968_v2  ;;  %v3047_v1 = vld [vmem:[%s4106_s1 + $0x6a0] ss:$8 sps:$4 sm:$0xff]   ;;  %v3052_v2 = vld [vmem:[%s4106_s1 + $0x2b4] ss:$8 sps:$4 sm:$0xff]  }
  0x7a   : > { %2162 = vmatprep.subr.bf16.mxu0 %v2971_v3  ;;  %v3055_v3 = vld [vmem:[%s4106_s1 + $0x6b4] ss:$8 sps:$4 sm:$0xff]  }
  0x7c   : > { %1991 = vmatpush1.bf16.msra.mxu1 %v2966_v4  ;;  %v3050_v4 = vld [vmem:[%s4106_s1 + $0x2b0] ss:$8 sps:$4 sm:$0xff]  }
  0x7d   : > { %2163 = vmatpush1.bf16.msra.mxu0 %v2969_v5  ;;  %1992 = vmatprep.subr.bf16.mxu1 %v2974_v6  ;;  %v3053_v5 = vld [vmem:[%s4106_s1 + $0x6b0] ss:$8 sps:$4 sm:$0xff]   ;;  %v3058_v6 = vld [vmem:[%s4106_s1 + $0x2c4] ss:$8 sps:$4 sm:$0xff]  }
  0x7e   : > { %2164 = vmatprep.subr.bf16.mxu0 %v2977_v7  ;;  %v3061_v7 = vld [vmem:[%s4106_s1 + $0x6c4] ss:$8 sps:$4 sm:$0xff]  }
  0x80   : > { %1993 = vmatpush1.bf16.msra.mxu1 %v2972_v8  ;;  %v3056_v8 = vld [vmem:[%s4106_s1 + $0x2c0] ss:$8 sps:$4 sm:$0xff]  }
  0x81   : > { %2165 = vmatpush1.bf16.msra.mxu0 %v2975_v9  ;;  %1994 = vmatprep.subr.bf16.mxu1 %v2980_v10  ;;  %v3059_v9 = vld [vmem:[%s4106_s1 + $0x6c0] ss:$8 sps:$4 sm:$0xff]   ;;  %v3064_v10 = vld [vmem:[%s4106_s1 + $0x2d4] ss:$8 sps:$4 sm:$0xff]  }
  0x82   : > { %2166 = vmatprep.subr.bf16.mxu0 %v2983_v11  ;;  %v3067_v11 = vld [vmem:[%s4106_s1 + $0x6d4] ss:$8 sps:$4 sm:$0xff]  }
  0x84   : > { %1995 = vmatpush1.bf16.msra.mxu1 %v2978_v12  ;;  %v3062_v12 = vld [vmem:[%s4106_s1 + $0x2d0] ss:$8 sps:$4 sm:$0xff]  }
  0x85   : > { %2167 = vmatpush1.bf16.msra.mxu0 %v2981_v13  ;;  %2007 = vmatprep.subr.bf16.mxu1 %v2986_v14  ;;  %v3065_v13 = vld [vmem:[%s4106_s1 + $0x6d0] ss:$8 sps:$4 sm:$0xff]   ;;  %v3070_v14 = vld [vmem:[%s4106_s1 + $0x2e4] ss:$8 sps:$4 sm:$0xff]  }
  0x86   : > { %2179 = vmatprep.subr.bf16.mxu0 %v2989_v15  ;;  %v3073_v15 = vld [vmem:[%s4106_s1 + $0x6e4] ss:$8 sps:$4 sm:$0xff]  }
  0x87   : > { %1997 = vmatmul.mubr.bf16.vlgmr.msra.gmra.mrb[0].mxu1 %v2462_v16  ;;  %v3068_v16 = vld [vmem:[%s4106_s1 + $0x2e0] ss:$8 sps:$4 sm:$0xff]  }
  0x88   : > { %2169 = vmatmul.mubr.bf16.vlgmr.msra.gmra.mrb[0].mxu0 %v2470_v18  ;;  %2008 = vmatpush1.bf16.msra.mxu1 %v2984_v17  ;;  %v3071_v17 = vld [vmem:[%s4106_s1 + $0x6e0] ss:$8 sps:$4 sm:$0xff]   ;;  %v3076_v18 = vld [vmem:[%s4106_s1 + $0x2f4] ss:$8 sps:$4 sm:$0xff]  }
  0x89   : > { %2180 = vmatpush1.bf16.msra.mxu0 %v2987_v19  ;;  %2009 = vmatprep.subr.bf16.mxu1 %v2992_v20  ;;  %v3079_v19 = vld [vmem:[%s4106_s1 + $0x6f4] ss:$8 sps:$4 sm:$0xff]   ;;  %v3074_v20 = vld [vmem:[%s4106_s1 + $0x2f0] ss:$8 sps:$4 sm:$0xff]  }
  0x8a   : > { %2181 = vmatprep.subr.bf16.mxu0 %v2995_v21  ;;  %2039 = vmatprep.mubr.bf16.mxu1 %v2465_v28  ;;  %v3077_v21 = vld [vmem:[%s4106_s1 + $0x6f0] ss:$8 sps:$4 sm:$0xff]   ;;  %v2472_v28 = vcombine.low %v3701_v29, %v3704_v30 }
  0x8b   : > { %2211 = vmatprep.mubr.bf16.mxu0 %v2473_v31  ;;  %v3884_v31 = vld [vmem:[%s3384_s22 + $0x58] sm:$0xff] }
  0x8c   : > { %2010 = vmatpush1.bf16.msra.mxu1 %v2990_v22  ;;  %v3082_v22 = vld [vmem:[%s4106_s1 + $0x304] ss:$8 sps:$4 sm:$0xff]  }
  0x8d   : > { %2182 = vmatpush1.bf16.msra.mxu0 %v2993_v23  ;;  %2011 = vmatprep.subr.bf16.mxu1 %v2998_v26  ;;  %v3085_v23 = vld [vmem:[%s4106_s1 + $0x704] ss:$8 sps:$4 sm:$0xff]   ;;  %v3877_v26 = vld [vmem:[%s3384_s22 + $0x18] sm:$0xff] }
  0x8e   : > { %2183 = vmatprep.subr.bf16.mxu0 %v3001_v27  ;;  %v2464_v27 = vcombine.low %v3687_v24, %v3690_v25  ;;  %v3088_v24 = vld [vmem:[%s4106_s1 + $0x314] ss:$8 sps:$4 sm:$0xff]   ;;  %v2467_v29 = vcombine.high %v3877_v26, %v3884_v31 }
  0x8f   : > { %v3091_v25 = vld [vmem:[%s4106_s1 + $0x714] ss:$8 sps:$4 sm:$0xff]  }
  0x90   : > { %2012 = vmatpush1.bf16.msra.mxu1 %v2996_v32  ;;  %v3887_v32 = vld [vmem:[%s3384_s22 + $0x38] sm:$0xff] }
  0x91   : > { %2184 = vmatpush1.bf16.msra.mxu0 %v2999_v33  ;;  %2013 = vmatprep.subr.bf16.mxu1 %v3004_v34  ;;  %v3890_v33 = vld [vmem:[%s3384_s22 + $0x78] sm:$0xff]  ;;  %v3080_v34 = vld [vmem:[%s4106_s1 + $0x300] ss:$8 sps:$4 sm:$0xff]  }
  0x92   : > { %2185 = vmatprep.subr.bf16.mxu0 %v3007_v35  ;;  %v3083_v35 = vld [vmem:[%s4106_s1 + $0x700] ss:$8 sps:$4 sm:$0xff]   ;;  %v2475_v30 = vcombine.high %v3887_v32, %v3890_v33 }
  0x94   : > { %2014 = vmatpush1.bf16.msra.mxu1 %v3002_v36  ;;  %v3086_v36 = vld [vmem:[%s4106_s1 + $0x310] ss:$8 sps:$4 sm:$0xff]  }
  0x95   : > { %2186 = vmatpush1.bf16.msra.mxu0 %v3005_v37  ;;  %2015 = vmatprep.subr.bf16.mxu1 %v3010_v38  ;;  %v3089_v37 = vld [vmem:[%s4106_s1 + $0x710] ss:$8 sps:$4 sm:$0xff]   ;;  %v3094_v38 = vld [vmem:[%s4106_s1 + $0x324] ss:$8 sps:$4 sm:$0xff]  }
  0x96   : > { %2187 = vmatprep.subr.bf16.mxu0 %v3013_v39  ;;  %v3097_v39 = vld [vmem:[%s4106_s1 + $0x724] ss:$8 sps:$4 sm:$0xff]  }
  0x98   : > { %2016 = vmatpush1.bf16.msra.mxu1 %v3008_v40  ;;  %v3092_v40 = vld [vmem:[%s4106_s1 + $0x320] ss:$8 sps:$4 sm:$0xff]  }
  0x99   : > { %2188 = vmatpush1.bf16.msra.mxu0 %v3011_v41  ;;  %2017 = vmatprep.subr.bf16.mxu1 %v3016_v42  ;;  %v3095_v41 = vld [vmem:[%s4106_s1 + $0x720] ss:$8 sps:$4 sm:$0xff]   ;;  %v3100_v42 = vld [vmem:[%s4106_s1 + $0x334] ss:$8 sps:$4 sm:$0xff]  }
  0x9a   : > { %2189 = vmatprep.subr.bf16.mxu0 %v3019_v43  ;;  %v3103_v43 = vld [vmem:[%s4106_s1 + $0x734] ss:$8 sps:$4 sm:$0xff]  }
  0x9c   : > { %2018 = vmatpush1.bf16.msra.mxu1 %v3014_v44  ;;  %v3098_v44 = vld [vmem:[%s4106_s1 + $0x330] ss:$8 sps:$4 sm:$0xff]  }
  0x9d   : > { %2190 = vmatpush1.bf16.msra.mxu0 %v3017_v45  ;;  %2019 = vmatprep.subr.bf16.mxu1 %v3022_v46  ;;  %v3101_v45 = vld [vmem:[%s4106_s1 + $0x730] ss:$8 sps:$4 sm:$0xff]   ;;  %v3106_v46 = vld [vmem:[%s4106_s1 + $0x344] ss:$8 sps:$4 sm:$0xff]  }
  0x9e   : > { %2191 = vmatprep.subr.bf16.mxu0 %v3025_v47  ;;  %v3109_v47 = vld [vmem:[%s4106_s1 + $0x744] ss:$8 sps:$4 sm:$0xff]  }
  0xa0   : > { %2020 = vmatpush1.bf16.msra.mxu1 %v3020_v48  ;;  %v3104_v48 = vld [vmem:[%s4106_s1 + $0x340] ss:$8 sps:$4 sm:$0xff]  }
  0xa1   : > { %2192 = vmatpush1.bf16.msra.mxu0 %v3023_v49  ;;  %2021 = vmatprep.subr.bf16.mxu1 %v3028_v50  ;;  %v3107_v49 = vld [vmem:[%s4106_s1 + $0x740] ss:$8 sps:$4 sm:$0xff]   ;;  %v3112_v50 = vld [vmem:[%s4106_s1 + $0x354] ss:$8 sps:$4 sm:$0xff]  }
  0xa2   : > { %2193 = vmatprep.subr.bf16.mxu0 %v3031_v51  ;;  %v3115_v51 = vld [vmem:[%s4106_s1 + $0x754] ss:$8 sps:$4 sm:$0xff]  }
  0xa4   : > { %2022 = vmatpush1.bf16.msra.mxu1 %v3026_v52  ;;  %v3110_v52 = vld [vmem:[%s4106_s1 + $0x350] ss:$8 sps:$4 sm:$0xff]  }
  0xa5   : > { %2194 = vmatpush1.bf16.msra.mxu0 %v3029_v53  ;;  %2023 = vmatprep.subr.bf16.mxu1 %v3034_v54  ;;  %v3113_v53 = vld [vmem:[%s4106_s1 + $0x750] ss:$8 sps:$4 sm:$0xff]   ;;  %v3118_v54 = vld [vmem:[%s4106_s1 + $0x364] ss:$8 sps:$4 sm:$0xff]  }
  0xa6   : > { %2195 = vmatprep.subr.bf16.mxu0 %v3037_v55  ;;  %v3121_v55 = vld [vmem:[%s4106_s1 + $0x764] ss:$8 sps:$4 sm:$0xff]  }
  0xa8   : > { %2024 = vmatpush1.bf16.msra.mxu1 %v3032_v56  ;;  %v3116_v56 = vld [vmem:[%s4106_s1 + $0x360] ss:$8 sps:$4 sm:$0xff]  }
  0xa9   : > { %2196 = vmatpush1.bf16.msra.mxu0 %v3035_v57  ;;  %2025 = vmatprep.subr.bf16.mxu1 %v3040_v58  ;;  %v3119_v57 = vld [vmem:[%s4106_s1 + $0x760] ss:$8 sps:$4 sm:$0xff]   ;;  %v3124_v58 = vld [vmem:[%s4106_s1 + $0x374] ss:$8 sps:$4 sm:$0xff]  }
  0xaa   : > { %2197 = vmatprep.subr.bf16.mxu0 %v3043_v59  ;;  %v3127_v59 = vld [vmem:[%s4106_s1 + $0x774] ss:$8 sps:$4 sm:$0xff]  }
  0xac   : > { %2026 = vmatpush1.bf16.msra.mxu1 %v3038_v60  ;;  %v3122_v60 = vld [vmem:[%s4106_s1 + $0x370] ss:$8 sps:$4 sm:$0xff]  }
  0xad   : > { %2198 = vmatpush1.bf16.msra.mxu0 %v3041_v61  ;;  %2027 = vmatprep.subr.bf16.mxu1 %v3046_v62  ;;  %v3125_v61 = vld [vmem:[%s4106_s1 + $0x770] ss:$8 sps:$4 sm:$0xff]   ;;  %v3130_v62 = vld [vmem:[%s4106_s1 + $0x384] ss:$8 sps:$4 sm:$0xff]  }
  0xae   : > { %2199 = vmatprep.subr.bf16.mxu0 %v3049_v63  ;;  %v3133_v63 = vld [vmem:[%s4106_s1 + $0x784] ss:$8 sps:$4 sm:$0xff]  }
  0xb0   : > { %2028 = vmatpush1.bf16.msra.mxu1 %v3044_v0  ;;  %v3128_v0 = vld [vmem:[%s4106_s1 + $0x380] ss:$8 sps:$4 sm:$0xff]  }
  0xb1   : > { %2200 = vmatpush1.bf16.msra.mxu0 %v3047_v1  ;;  %2029 = vmatprep.subr.bf16.mxu1 %v3052_v2  ;;  %v3131_v1 = vld [vmem:[%s4106_s1 + $0x780] ss:$8 sps:$4 sm:$0xff]   ;;  %v3136_v2 = vld [vmem:[%s4106_s1 + $0x394] ss:$8 sps:$4 sm:$0xff]  }
  0xb2   : > { %2201 = vmatprep.subr.bf16.mxu0 %v3055_v3  ;;  %v3139_v3 = vld [vmem:[%s4106_s1 + $0x794] ss:$8 sps:$4 sm:$0xff]  }
  0xb4   : > { %2030 = vmatpush1.bf16.msra.mxu1 %v3050_v4  ;;  %v3134_v4 = vld [vmem:[%s4106_s1 + $0x390] ss:$8 sps:$4 sm:$0xff]  }
  0xb5   : > { %2202 = vmatpush1.bf16.msra.mxu0 %v3053_v5  ;;  %2031 = vmatprep.subr.bf16.mxu1 %v3058_v6  ;;  %v3137_v5 = vld [vmem:[%s4106_s1 + $0x790] ss:$8 sps:$4 sm:$0xff]   ;;  %v3142_v6 = vld [vmem:[%s4106_s1 + $0x3a4] ss:$8 sps:$4 sm:$0xff]  }
  0xb6   : > { %2203 = vmatprep.subr.bf16.mxu0 %v3061_v7  ;;  %v3145_v7 = vld [vmem:[%s4106_s1 + $0x7a4] ss:$8 sps:$4 sm:$0xff]  }
  0xb8   : > { %2032 = vmatpush1.bf16.msra.mxu1 %v3056_v8  ;;  %v3140_v8 = vld [vmem:[%s4106_s1 + $0x3a0] ss:$8 sps:$4 sm:$0xff]  }
  0xb9   : > { %2204 = vmatpush1.bf16.msra.mxu0 %v3059_v9  ;;  %2033 = vmatprep.subr.bf16.mxu1 %v3064_v10  ;;  %v3143_v9 = vld [vmem:[%s4106_s1 + $0x7a0] ss:$8 sps:$4 sm:$0xff]   ;;  %v3148_v10 = vld [vmem:[%s4106_s1 + $0x3b4] ss:$8 sps:$4 sm:$0xff]  }
  0xba   : > { %2205 = vmatprep.subr.bf16.mxu0 %v3067_v11  ;;  %v3151_v11 = vld [vmem:[%s4106_s1 + $0x7b4] ss:$8 sps:$4 sm:$0xff]  }
  0xbc   : > { %2034 = vmatpush1.bf16.msra.mxu1 %v3062_v12  ;;  %v3146_v12 = vld [vmem:[%s4106_s1 + $0x3b0] ss:$8 sps:$4 sm:$0xff]  }
  0xbd   : > { %2206 = vmatpush1.bf16.msra.mxu0 %v3065_v13  ;;  %2035 = vmatprep.subr.bf16.mxu1 %v3070_v14  ;;  %v3149_v13 = vld [vmem:[%s4106_s1 + $0x7b0] ss:$8 sps:$4 sm:$0xff]   ;;  %v3154_v14 = vld [vmem:[%s4106_s1 + $0x3c4] ss:$8 sps:$4 sm:$0xff]  }
  0xbe   : > { %2207 = vmatprep.subr.bf16.mxu0 %v3073_v15  ;;  %v3157_v15 = vld [vmem:[%s4106_s1 + $0x7c4] ss:$8 sps:$4 sm:$0xff]  }
  0xc0   : > { %2036 = vmatpush1.bf16.msra.mxu1 %v3068_v16  ;;  %v3152_v16 = vld [vmem:[%s4106_s1 + $0x3c0] ss:$8 sps:$4 sm:$0xff]  }
  0xc1   : > { %2208 = vmatpush1.bf16.msra.mxu0 %v3071_v17  ;;  %2037 = vmatprep.subr.bf16.mxu1 %v3076_v18  ;;  %v3155_v17 = vld [vmem:[%s4106_s1 + $0x7c0] ss:$8 sps:$4 sm:$0xff]   ;;  %v3160_v18 = vld [vmem:[%s4106_s1 + $0x3d4] ss:$8 sps:$4 sm:$0xff]  }
  0xc2   : > { %2209 = vmatprep.subr.bf16.mxu0 %v3079_v19  ;;  %v3163_v19 = vld [vmem:[%s4106_s1 + $0x7d4] ss:$8 sps:$4 sm:$0xff]  }
  0xc4   : > { %2038 = vmatpush1.bf16.msra.mxu1 %v3074_v20  ;;  %v3158_v20 = vld [vmem:[%s4106_s1 + $0x3d0] ss:$8 sps:$4 sm:$0xff]  }
  0xc5   : > { %2210 = vmatpush1.bf16.msra.mxu0 %v3077_v21  ;;  %2050 = vmatprep.subr.bf16.mxu1 %v3082_v22  ;;  %v3161_v21 = vld [vmem:[%s4106_s1 + $0x7d0] ss:$8 sps:$4 sm:$0xff]   ;;  %v3166_v22 = vld [vmem:[%s4106_s1 + $0x3e4] ss:$8 sps:$4 sm:$0xff]  }
  0xc6   : > { %2222 = vmatprep.subr.bf16.mxu0 %v3085_v23  ;;  %v3169_v23 = vld [vmem:[%s4106_s1 + $0x7e4] ss:$8 sps:$4 sm:$0xff]  }
  0xc7   : > { %2040 = vmatmul.mubr.bf16.vlgmr.msra.gmra.mrb[0].mxu1 %v2464_v27  ;;  %v3164_v27 = vld [vmem:[%s4106_s1 + $0x3e0] ss:$8 sps:$4 sm:$0xff]  }
  0xc8   : > { %2212 = vmatmul.mubr.bf16.vlgmr.msra.gmra.mrb[0].mxu0 %v2472_v28  ;;  %2051 = vmatpush1.bf16.msra.mxu1 %v3080_v34  ;;  %v3167_v28 = vld [vmem:[%s4106_s1 + $0x7e0] ss:$8 sps:$4 sm:$0xff]   ;;  %v3172_v34 = vld [vmem:[%s4106_s1 + $0x3f4] ss:$8 sps:$4 sm:$0xff]  }
  0xc9   : > { %2223 = vmatpush1.bf16.msra.mxu0 %v3083_v35  ;;  %2052 = vmatprep.subr.bf16.mxu1 %v3088_v24  ;;  %v3175_v35 = vld [vmem:[%s4106_s1 + $0x7f4] ss:$8 sps:$4 sm:$0xff]   ;;  %v3170_v24 = vld [vmem:[%s4106_s1 + $0x3f0] ss:$8 sps:$4 sm:$0xff]  }
  0xca   : > { %2224 = vmatprep.subr.bf16.mxu0 %v3091_v25  ;;  %2082 = vmatprep.mubr.bf16.mxu1 %v2467_v29  ;;  %v3173_v25 = vld [vmem:[%s4106_s1 + $0x7f0] ss:$8 sps:$4 sm:$0xff]   ;;  %v2466_v29 = vcombine.low %v3877_v26, %v3884_v31 }
  0xcb   : > { %2254 = vmatprep.mubr.bf16.mxu0 %v2475_v30  ;;  %v2474_v30 = vcombine.low %v3887_v32, %v3890_v33 }
  0xcc   : > { %2053 = vmatpush1.bf16.msra.mxu1 %v3086_v36  ;;  %v2267_v36 = vlaneseq }
  0xcd   : > { %2225 = vmatpush1.bf16.msra.mxu0 %v3089_v37  ;;  %2054 = vmatprep.subr.bf16.mxu1 %v3094_v38 }
  0xce   : > { %2226 = vmatprep.subr.bf16.mxu0 %v3097_v39  ;;  %v2268_v37 = vshrl.u32 %v2267_v36, 7  ;;  %v2265_v39 = vld [vmem:[%s4107_s2] sm:$0x3] }
  0xd0   : > { %2055 = vmatpush1.bf16.msra.mxu1 %v3092_v40  ;;  %v2269_v38 = vsub.s32 0, %v2268_v37  ;;  %v2273_v40 = vsub.s32 1, %v2268_v37 }
  0xd1   : > { %2227 = vmatpush1.bf16.msra.mxu0 %v3095_v41  ;;  %2056 = vmatprep.subr.bf16.mxu1 %v3100_v42  ;;  %v2281_v41 = vld [vmem:[%s4108_s3] sm:$0x3] }
  0xd2   : > { %2228 = vmatprep.subr.bf16.mxu0 %v3103_v43  ;;  %v2270_v26 = vrot.slane %v2265_v39, %v2269_v38  ;;  %v2274_v32 = vrot.slane %v2265_v39, %v2273_v40  ;;  %v2286_v43 = vrot.slane %v2281_v41, %v2269_v38 }
  0xd4   : > { %2057 = vmatpush1.bf16.msra.mxu1 %v3098_v44 }
  0xd5   : > { %2229 = vmatpush1.bf16.msra.mxu0 %v3101_v45  ;;  %2058 = vmatprep.subr.bf16.mxu1 %v3106_v46 }
  0xd6   : > { %2230 = vmatprep.subr.bf16.mxu0 %v3109_v47  ;;  %v2290_v47 = vrot.slane %v2281_v41, %v2273_v40 }
  0xd8   : > { %2059 = vmatpush1.bf16.msra.mxu1 %v3104_v48 }
  0xd9   : > { %2231 = vmatpush1.bf16.msra.mxu0 %v3107_v49  ;;  %2060 = vmatprep.subr.bf16.mxu1 %v3112_v50 }
  0xda   : > { %2232 = vmatprep.subr.bf16.mxu0 %v3115_v51 }
  0xdc   : > { %2061 = vmatpush1.bf16.msra.mxu1 %v3110_v52 }
  0xdd   : > { %2233 = vmatpush1.bf16.msra.mxu0 %v3113_v53  ;;  %2062 = vmatprep.subr.bf16.mxu1 %v3118_v54 }
  0xde   : > { %2234 = vmatprep.subr.bf16.mxu0 %v3121_v55 }
  0xe0   : > { %2063 = vmatpush1.bf16.msra.mxu1 %v3116_v56 }
  0xe1   : > { %2235 = vmatpush1.bf16.msra.mxu0 %v3119_v57  ;;  %2064 = vmatprep.subr.bf16.mxu1 %v3124_v58 }
  0xe2   : > { %2236 = vmatprep.subr.bf16.mxu0 %v3127_v59 }
  0xe4   : > { %2065 = vmatpush1.bf16.msra.mxu1 %v3122_v60 }
  0xe5   : > { %2237 = vmatpush1.bf16.msra.mxu0 %v3125_v61  ;;  %2066 = vmatprep.subr.bf16.mxu1 %v3130_v62 }
  0xe6   : > { %2238 = vmatprep.subr.bf16.mxu0 %v3133_v63 }
  0xe8   : > { %2067 = vmatpush1.bf16.msra.mxu1 %v3128_v0 }
  0xe9   : > { %2239 = vmatpush1.bf16.msra.mxu0 %v3131_v1  ;;  %2068 = vmatprep.subr.bf16.mxu1 %v3136_v2 }
  0xea   : > { %2240 = vmatprep.subr.bf16.mxu0 %v3139_v3 }
  0xec   : > { %2069 = vmatpush1.bf16.msra.mxu1 %v3134_v4 }
  0xed   : > { %2241 = vmatpush1.bf16.msra.mxu0 %v3137_v5  ;;  %2070 = vmatprep.subr.bf16.mxu1 %v3142_v6 }
  0xee   : > { %2242 = vmatprep.subr.bf16.mxu0 %v3145_v7 }
  0xf0   : > { %2071 = vmatpush1.bf16.msra.mxu1 %v3140_v8 }
  0xf1   : > { %2243 = vmatpush1.bf16.msra.mxu0 %v3143_v9  ;;  %2072 = vmatprep.subr.bf16.mxu1 %v3148_v10 }
  0xf2   : > { %2244 = vmatprep.subr.bf16.mxu0 %v3151_v11 }
  0xf4   : > { %2073 = vmatpush1.bf16.msra.mxu1 %v3146_v12 }
  0xf5   : > { %2245 = vmatpush1.bf16.msra.mxu0 %v3149_v13  ;;  %2074 = vmatprep.subr.bf16.mxu1 %v3154_v14 }
  0xf6   : > { %2246 = vmatprep.subr.bf16.mxu0 %v3157_v15 }
  0xf8   : > { %2075 = vmatpush1.bf16.msra.mxu1 %v3152_v16 }
  0xf9   : > { %2247 = vmatpush1.bf16.msra.mxu0 %v3155_v17  ;;  %2076 = vmatprep.subr.bf16.mxu1 %v3160_v18 }
  0xfa   : > { %2248 = vmatprep.subr.bf16.mxu0 %v3163_v19 }
  0xfc   : > { %2077 = vmatpush1.bf16.msra.mxu1 %v3158_v20 }
  0xfd   : > { %2249 = vmatpush1.bf16.msra.mxu0 %v3161_v21  ;;  %2078 = vmatprep.subr.bf16.mxu1 %v3166_v22 }
  0xfe   : > { %2250 = vmatprep.subr.bf16.mxu0 %v3169_v23 }
 0x100   : > { %2079 = vmatpush1.bf16.msra.mxu1 %v3164_v27 }
 0x101   : > { %2251 = vmatpush1.bf16.msra.mxu0 %v3167_v28  ;;  %2080 = vmatprep.subr.bf16.mxu1 %v3172_v34 }
 0x102   : > { %2252 = vmatprep.subr.bf16.mxu0 %v3175_v35 }
 0x104   : > { %2081 = vmatpush1.bf16.msra.mxu1 %v3170_v24 }
 0x105   : > { %2253 = vmatpush1.bf16.msra.mxu0 %v3173_v25 }
 0x107   : > { %2083 = vmatmul.mubr.bf16.vlgmr.msra.gmra.mrb[0].mxu1 %v2466_v29 }
 0x108   : > { %2255 = vmatmul.mubr.bf16.vlgmr.msra.gmra.mrb[0].mxu0 %v2474_v30 }
 0x1da   : > { %v2084_v31 = vpop.f32.mrb[0].mxu1 }
 0x1db   : > { %v2256_v42 = vpop.f32.mrb[0].mxu0  ;;  %v2086_v44 = vpop.f32.mrb[1].mxu1 }
 0x1dc   : > { %v2740_v33 = vadd.f32 %v2256_v42, %v2084_v31  ;;  %v2258_v45 = vpop.f32.mrb[1].mxu0  ;;  %v2088_v48 = vpop.f32.mrb[2].mxu1 }
 0x1dd   : > { %v2741_v46 = vadd.f32 %v2258_v45, %v2086_v44  ;;  %v2260_v49 = vpop.f32.mrb[2].mxu0  ;;  %v2090_v52 = vpop.f32.mrb[3].mxu1 }
 0x1de   : > { %v2277_v50 = vmul.f32 %v2740_v33, %v2270_v26  ;;  %v2742_v51 = vadd.f32 %v2260_v49, %v2088_v48  ;;  %v2262_v53 = vpop.f32.mrb[3].mxu0 }
 0x1df   : > { %v2278_v54 = vmul.f32 %v2741_v46, %v2274_v32  ;;  %v2743_v55 = vadd.f32 %v2262_v53, %v2090_v52 }
 0x1e0   : > { %v2293_v56 = vadd.f32 %v2286_v43, %v2277_v50  ;;  %v2279_v57 = vmul.f32 %v2742_v51, %v2270_v26 }
 0x1e1   : > { %v2294_v58 = vadd.f32 %v2290_v47, %v2278_v54  ;;  %v2280_v59 = vmul.f32 %v2743_v55, %v2274_v32 }
 0x1e2   : > { %vm2297_vm0 = vcmp.ge.f32.partialorder %v2293_v56, 0.0  ;;  %v2301_v60 = vmul.f32 0.2, %v2293_v56  ;;  %v2295_v61 = vadd.f32 %v2286_v43, %v2279_v57 }
 0x1e3   : > { %vm2298_vm1 = vcmp.ge.f32.partialorder %v2294_v58, 0.0  ;;  %v2302_v62 = vmul.f32 0.2, %v2294_v58  ;;  %v2296_v63 = vadd.f32 %v2290_v47, %v2280_v59 }
 0x1e4   : > { %v2305_v0 = vsel %vm2297_vm0, %v2293_v56, %v2301_v60  ;;  %vm2299_vm2 = vcmp.ge.f32.partialorder %v2295_v61, 0.0  ;;  %v2303_v1 = vmul.f32 0.2, %v2295_v61 }
 0x1e5   : > { %v2306_v2 = vsel %vm2298_vm1, %v2294_v58, %v2302_v62  ;;  %vm2300_vm3 = vcmp.ge.f32.partialorder %v2296_v63, 0.0  ;;  %v2304_v3 = vmul.f32 0.2, %v2296_v63 }
 0x1e6   : > { %v2738_v4 = vpack.c.bf16 %v2306_v2, %v2305_v0  ;;  %v2307_v5 = vsel %vm2299_vm2, %v2295_v61, %v2303_v1 }
 0x1e7   : > { %v2308_v6 = vsel %vm2300_vm3, %v2296_v63, %v2304_v3 }
 0x1e8   : > { %2321 = vst [vmem:[%s286_s28] sm:$0xff] %v2738_v4  ;;  %v2739_v7 = vpack.c.bf16 %v2308_v6, %v2307_v5 }
 0x1ea   : > { %2322 = vst [vmem:[%s286_s28 + $0x8] sm:$0xff] %v2739_v7 }
 0x1eb PF: > { %s14_s17 = sadd.s32 1, %s3198_s17   ;;  %s4110_s15 = smov %s3194_s16 }
 0x1ec   : > { %p11_p5 = scmp.ge.s32.totalorder %s14_s17, 4   ;;  %s4111_s16 = smov %s4113_s18 }
 0x1ee   :  { %13 = sbr.rel (!%p11_p5) target bundleno = 2 (0x2), region = 75 }

// kernel: _forward.7
= control target key start
LH: loop header
LB: loop body
LE: loop exit
PB: predicated region body
PF: predicated region fallthrough
CT: control target
= control target key end

     0   :  { %9 = vsyncpa [#allocation4], 0  ;;  %s1331_s0 = inlined_call_operand.vmem [shape: bf16[8,256], index: 0, kind: input, shape index: {}]   ;;  %s1332_s1 = inlined_call_operand.vmem [shape: bf16[256,512], index: 1, kind: input, shape index: {}]   ;;  %s1333_s2 = inlined_call_operand.vmem [shape: f32[1,512], index: 2, kind: input, shape index: {}]   ;;  %s1334_s3 = inlined_call_operand.vmem [shape: f32[1,512], index: 3, kind: input, shape index: {}]   ;;  %s1335_s4 = inlined_call_operand.hbm [shape: f32[8,512], index: 4, kind: output, shape index: {}]  }
   0x1   :  { %11 = vsyncpa [#allocation4 + $0x1], 0  ;;  %s1091_s15 = smov 0   ;;  %s1093_s16 = smov 0  }
   0x2   :  { %s1095_s17 = smov 0   ;;  %s1097_s18 = smov 0  }
   0x3   :  { %s1099_s19 = smov 0   ;;  %s1101_s20 = smov 0  }
   0x4 LB: > { %s826_s21 = sadd.s32 4294967295, %s1063_s20   ;;  %s827_s22 = sadd.s32 4294967294, %s1063_s20   ;;  %s1063_s20 = sphi %s1101_s20, %s17_s20   ;;  %s1059_s19 = sphi %s1099_s19, %s1342_s19   ;;  %s1055_s18 = sphi %s1097_s18, %s1341_s18   ;;  %s1051_s17 = sphi %s1095_s17, %s1340_s17   ;;  %s1047_s16 = sphi %s1093_s16, %s1339_s16   ;;  %s1043_s15 = sphi %s1091_s15, %s1338_s15  }
   0x5   : > { %s26_s23 = sadd.s32 1, %s1059_s19  ;;  %s62_s24 = sadd.s32 1, %s1051_s17 }
   0x6   : > { %p27_p0 = scmp.ge.s32.totalorder %s26_s23, 2  ;;  %p69_p1 = scmp.ne.s32.totalorder %s1051_s17, %s1047_s16 }
   0x7   : > { %p70_p2 = scmp.eq.s32.totalorder %s1063_s20, 0  ;;  %p153_p3 = scmp.eq.s32.totalorder %s826_s21, 1 }
   0x8   : > { %s1344_s23 = smov (%p27_p0, %s26_s23), 0  ;;  %p158_p6 = scmp.ne.s32.totalorder %s1047_s16, %s1043_s15 }
   0x9   : > { %p71_p4 = por %p70_p2, %p69_p1  ;;  %p1130_p5 = por %p153_p3, %p69_p1 }
   0xa   : > { %s59_s26 = ssub.s32 %s1059_s19, %s1344_s23  ;;  %p159_p8 = scmp.eq.s32.totalorder %s827_s22, 1 }
   0xb   : > { %p60_p7 = scmp.eq.s32.totalorder %s59_s26, 0  ;;  %p830_p10 = scmp.ge.s32.totalorder %s1063_s20, 2 }
   0xc   : > { %p1141_p9 = por %p159_p8, %p158_p6 }
   0xd   : > { %s1139_s27 = scalar_select %p60_p7, %s1051_s17, %s62_s24  }
   0xe   : > { %183 = sbr.rel (%p830_p10) target bundleno = 41 (0x29), region = 20 }
  0x15   : > { %186 = sbr.rel (!%p71_p4) target bundleno = 41 (0x29), region = 24  ;;  %s188_s29 = sand.u32 (%p71_p4), 1, %s1051_s17  }
  0x16   : > { %s878_s30 = sshll.u32 (%p71_p4), %s1059_s19, 3  ;;  %s831_s5 = sshll.u32 (%p71_p4), %s188_s29, 8 }
  0x17   : > { %s1153_s8 = scalar_lea.vmem (%p71_p4), %s1332_s1, %s878_s30  ;;  %s1158_s9 = scalar_lea.vmem (%p71_p4), [#allocation2], %s831_s5 }
  0x18   : > { %v283_v0 = vld [vmem:[%s1153_s8] sm:$0xff] (%p71_p4)  ;;  %v285_v1 = vld [vmem:[%s1153_s8 + $0x10] sm:$0xff] (%p71_p4) }
  0x19   : > { %v287_v2 = vld [vmem:[%s1153_s8 + $0x20] sm:$0xff] (%p71_p4)  ;;  %284 = vst [vmem:[%s1158_s9] sm:$0xff] (%p71_p4), %v283_v0  ;;  %286 = vst [vmem:[%s1158_s9 + $0x8] sm:$0xff] (%p71_p4), %v285_v1  ;;  %v289_v3 = vld [vmem:[%s1153_s8 + $0x30] sm:$0xff] (%p71_p4) }
  0x1a   : > { %288 = vst [vmem:[%s1158_s9 + $0x10] sm:$0xff] (%p71_p4), %v287_v2  ;;  %v291_v4 = vld [vmem:[%s1153_s8 + $0x40] sm:$0xff] (%p71_p4)  ;;  %v293_v5 = vld [vmem:[%s1153_s8 + $0x50] sm:$0xff] (%p71_p4)  ;;  %290 = vst [vmem:[%s1158_s9 + $0x18] sm:$0xff] (%p71_p4), %v289_v3 }
  0x1b   : > { %292 = vst [vmem:[%s1158_s9 + $0x20] sm:$0xff] (%p71_p4), %v291_v4  ;;  %294 = vst [vmem:[%s1158_s9 + $0x28] sm:$0xff] (%p71_p4), %v293_v5  ;;  %v295_v6 = vld [vmem:[%s1153_s8 + $0x60] sm:$0xff] (%p71_p4)  ;;  %v297_v7 = vld [vmem:[%s1153_s8 + $0x70] sm:$0xff] (%p71_p4) }
  0x1c   : > { %v299_v8 = vld [vmem:[%s1153_s8 + $0x80] sm:$0xff]  ;;  %296 = vst [vmem:[%s1158_s9 + $0x30] sm:$0xff] %v295_v6  ;;  %298 = vst [vmem:[%s1158_s9 + $0x38] sm:$0xff] %v297_v7  ;;  %v301_v9 = vld [vmem:[%s1153_s8 + $0x90] sm:$0xff] }
  0x1d   : > { %300 = vst [vmem:[%s1158_s9 + $0x40] sm:$0xff] %v299_v8  ;;  %v303_v10 = vld [vmem:[%s1153_s8 + $0xa0] sm:$0xff]  ;;  %v305_v11 = vld [vmem:[%s1153_s8 + $0xb0] sm:$0xff]  ;;  %302 = vst [vmem:[%s1158_s9 + $0x48] sm:$0xff] %v301_v9 }
  0x1e   : > { %304 = vst [vmem:[%s1158_s9 + $0x50] sm:$0xff] %v303_v10  ;;  %306 = vst [vmem:[%s1158_s9 + $0x58] sm:$0xff] %v305_v11  ;;  %v307_v12 = vld [vmem:[%s1153_s8 + $0xc0] sm:$0xff]  ;;  %v309_v13 = vld [vmem:[%s1153_s8 + $0xd0] sm:$0xff] }
  0x1f   : > { %v311_v14 = vld [vmem:[%s1153_s8 + $0xe0] sm:$0xff]  ;;  %308 = vst [vmem:[%s1158_s9 + $0x60] sm:$0xff] %v307_v12  ;;  %310 = vst [vmem:[%s1158_s9 + $0x68] sm:$0xff] %v309_v13  ;;  %v313_v15 = vld [vmem:[%s1153_s8 + $0xf0] sm:$0xff] }
  0x20   : > { %312 = vst [vmem:[%s1158_s9 + $0x70] sm:$0xff] %v311_v14  ;;  %v315_v16 = vld [vmem:[%s1153_s8 + $0x100] sm:$0xff]  ;;  %v317_v17 = vld [vmem:[%s1153_s8 + $0x110] sm:$0xff]  ;;  %314 = vst [vmem:[%s1158_s9 + $0x78] sm:$0xff] %v313_v15 }
  0x21   : > { %316 = vst [vmem:[%s1158_s9 + $0x80] sm:$0xff] %v315_v16  ;;  %318 = vst [vmem:[%s1158_s9 + $0x88] sm:$0xff] %v317_v17  ;;  %v319_v18 = vld [vmem:[%s1153_s8 + $0x120] sm:$0xff]  ;;  %v321_v19 = vld [vmem:[%s1153_s8 + $0x130] sm:$0xff] }
  0x22   : > { %v323_v20 = vld [vmem:[%s1153_s8 + $0x140] sm:$0xff]  ;;  %320 = vst [vmem:[%s1158_s9 + $0x90] sm:$0xff] %v319_v18  ;;  %322 = vst [vmem:[%s1158_s9 + $0x98] sm:$0xff] %v321_v19  ;;  %v325_v21 = vld [vmem:[%s1153_s8 + $0x150] sm:$0xff] }
  0x23   : > { %324 = vst [vmem:[%s1158_s9 + $0xa0] sm:$0xff] %v323_v20  ;;  %v327_v22 = vld [vmem:[%s1153_s8 + $0x160] sm:$0xff]  ;;  %v329_v23 = vld [vmem:[%s1153_s8 + $0x170] sm:$0xff]  ;;  %326 = vst [vmem:[%s1158_s9 + $0xa8] sm:$0xff] %v325_v21 }
  0x24   : > { %328 = vst [vmem:[%s1158_s9 + $0xb0] sm:$0xff] %v327_v22  ;;  %330 = vst [vmem:[%s1158_s9 + $0xb8] sm:$0xff] %v329_v23  ;;  %v331_v24 = vld [vmem:[%s1153_s8 + $0x180] sm:$0xff]  ;;  %v333_v25 = vld [vmem:[%s1153_s8 + $0x190] sm:$0xff] }
  0x25   : > { %v335_v26 = vld [vmem:[%s1153_s8 + $0x1a0] sm:$0xff]  ;;  %332 = vst [vmem:[%s1158_s9 + $0xc0] sm:$0xff] %v331_v24  ;;  %334 = vst [vmem:[%s1158_s9 + $0xc8] sm:$0xff] %v333_v25  ;;  %v337_v27 = vld [vmem:[%s1153_s8 + $0x1b0] sm:$0xff] }
  0x26   : > { %336 = vst [vmem:[%s1158_s9 + $0xd0] sm:$0xff] %v335_v26  ;;  %v339_v28 = vld [vmem:[%s1153_s8 + $0x1c0] sm:$0xff]  ;;  %v341_v29 = vld [vmem:[%s1153_s8 + $0x1d0] sm:$0xff]  ;;  %338 = vst [vmem:[%s1158_s9 + $0xd8] sm:$0xff] %v337_v27 }
  0x27   : > { %340 = vst [vmem:[%s1158_s9 + $0xe0] sm:$0xff] %v339_v28  ;;  %342 = vst [vmem:[%s1158_s9 + $0xe8] sm:$0xff] %v341_v29  ;;  %v343_v30 = vld [vmem:[%s1153_s8 + $0x1e0] sm:$0xff]  ;;  %v345_v31 = vld [vmem:[%s1153_s8 + $0x1f0] sm:$0xff] }
  0x28   : > { %344 = vst [vmem:[%s1158_s9 + $0xf0] sm:$0xff] %v343_v30  ;;  %346 = vst [vmem:[%s1158_s9 + $0xf8] sm:$0xff] %v345_v31 }
  0x29 PF: > { %p834_p11 = scmp.ge.s32.totalorder %s1063_s20, 1  ;;  %p367_p12 = scmp.lt.s32.totalorder %s1063_s20, 3 }
  0x2b   : > { %p368_p13 = pnand %p834_p11, %p367_p12 }
  0x2c   : > { %s1224_s10 = sand.u32 (!%p368_p13), 1, %s1047_s16   ;;  %v1229_v32 = vld [vmem:[%s1331_s0] sm:$0xff] (!%p368_p13)  ;;  %s837_s21 = sshll.u32 (!%p368_p13), %s1055_s18, 1  ;;  %v672_v3 = vlaneseq (!%p368_p13) }
  0x2d   : > { %371 = sbr.rel (%p368_p13) target bundleno = 343 (0x157), region = 70  ;;  %s835_s13 = sshll.u32 (!%p368_p13), %s1224_s10, 8  ;;  %v840_v33 = vcombine.high (!%p368_p13), %v1229_v32, %v1229_v32  ;;  %v839_v2 = vcombine.low (!%p368_p13), %v1229_v32, %v1229_v32 }
  0x2e   : > { %s1234_s14 = scalar_lea.vmem (!%p368_p13), [#allocation2], %s835_s13  ;;  %p419_p0 = scmp.lt.s32.totalorder (!%p368_p13), %s837_s21, 3  ;;  %v673_v4 = vshrl.u32 (!%p368_p13), %v672_v3, 7 }
  0x2f   : > { %v935_v34 = vld [vmem:[%s1234_s14 + $0x4] ss:$8 sps:$4 sm:$0xff] (!%p368_p13)   ;;  %661 = vmatprep.mubr.bf16.mxu0 (!%p368_p13), %v840_v33  ;;  %v937_v35 = vld [vmem:[%s1234_s14] ss:$8 sps:$4 sm:$0xff] (!%p368_p13)   ;;  %v938_v36 = vld [vmem:[%s1234_s14 + $0x14] ss:$8 sps:$4 sm:$0xff] (!%p368_p13)  }
  0x30   : > { %629 = vmatprep.subr.bf16.mxu0 (!%p368_p13), %v935_v34  ;;  %v940_v37 = vld [vmem:[%s1234_s14 + $0x10] ss:$8 sps:$4 sm:$0xff] (!%p368_p13)   ;;  %v941_v38 = vld [vmem:[%s1234_s14 + $0x24] ss:$8 sps:$4 sm:$0xff] (!%p368_p13)   ;;  %v943_v39 = vld [vmem:[%s1234_s14 + $0x20] ss:$8 sps:$4 sm:$0xff] (!%p368_p13)  }
  0x31   : > { %630 = vmatpush1.bf16.msra.mxu0 (!%p368_p13), %v937_v35  ;;  %v944_v40 = vld [vmem:[%s1234_s14 + $0x34] ss:$8 sps:$4 sm:$0xff] (!%p368_p13)   ;;  %v946_v41 = vld [vmem:[%s1234_s14 + $0x30] ss:$8 sps:$4 sm:$0xff] (!%p368_p13)   ;;  %v947_v42 = vld [vmem:[%s1234_s14 + $0x44] ss:$8 sps:$4 sm:$0xff] (!%p368_p13)  }
  0x32   : > { %631 = vmatprep.subr.bf16.mxu0 (!%p368_p13), %v938_v36  ;;  %v949_v43 = vld [vmem:[%s1234_s14 + $0x40] ss:$8 sps:$4 sm:$0xff] (!%p368_p13)   ;;  %v950_v44 = vld [vmem:[%s1234_s14 + $0x54] ss:$8 sps:$4 sm:$0xff] (!%p368_p13)   ;;  %v952_v45 = vld [vmem:[%s1234_s14 + $0x50] ss:$8 sps:$4 sm:$0xff] (!%p368_p13)  }
  0x33   : > { %v953_v46 = vld [vmem:[%s1234_s14 + $0x64] ss:$8 sps:$4 sm:$0xff] (!%p368_p13)   ;;  %v955_v47 = vld [vmem:[%s1234_s14 + $0x60] ss:$8 sps:$4 sm:$0xff] (!%p368_p13)   ;;  %v956_v48 = vld [vmem:[%s1234_s14 + $0x74] ss:$8 sps:$4 sm:$0xff] (!%p368_p13)  }
  0x34   : > { %v958_v49 = vld [vmem:[%s1234_s14 + $0x70] ss:$8 sps:$4 sm:$0xff]   ;;  %v959_v50 = vld [vmem:[%s1234_s14 + $0x84] ss:$8 sps:$4 sm:$0xff]   ;;  %v961_v51 = vld [vmem:[%s1234_s14 + $0x80] ss:$8 sps:$4 sm:$0xff]  }
  0x35   : > { %632 = vmatpush1.bf16.msra.mxu0 %v940_v37  ;;  %v962_v52 = vld [vmem:[%s1234_s14 + $0x94] ss:$8 sps:$4 sm:$0xff]   ;;  %v964_v53 = vld [vmem:[%s1234_s14 + $0x90] ss:$8 sps:$4 sm:$0xff]   ;;  %v965_v54 = vld [vmem:[%s1234_s14 + $0xa4] ss:$8 sps:$4 sm:$0xff]  }
  0x36   : > { %633 = vmatprep.subr.bf16.mxu0 %v941_v38  ;;  %v967_v55 = vld [vmem:[%s1234_s14 + $0xa0] ss:$8 sps:$4 sm:$0xff]   ;;  %v968_v56 = vld [vmem:[%s1234_s14 + $0xb4] ss:$8 sps:$4 sm:$0xff]   ;;  %v970_v57 = vld [vmem:[%s1234_s14 + $0xb0] ss:$8 sps:$4 sm:$0xff]  }
  0x37   : > { %v971_v58 = vld [vmem:[%s1234_s14 + $0xc4] ss:$8 sps:$4 sm:$0xff]   ;;  %v973_v59 = vld [vmem:[%s1234_s14 + $0xc0] ss:$8 sps:$4 sm:$0xff]   ;;  %v974_v60 = vld [vmem:[%s1234_s14 + $0xd4] ss:$8 sps:$4 sm:$0xff]  }
  0x38   : > { %v976_v61 = vld [vmem:[%s1234_s14 + $0xd0] ss:$8 sps:$4 sm:$0xff]   ;;  %v977_v62 = vld [vmem:[%s1234_s14 + $0xe4] ss:$8 sps:$4 sm:$0xff]   ;;  %v979_v63 = vld [vmem:[%s1234_s14 + $0xe0] ss:$8 sps:$4 sm:$0xff]  }
  0x39   : > { %634 = vmatpush1.bf16.msra.mxu0 %v943_v39  ;;  %v980_v0 = vld [vmem:[%s1234_s14 + $0xf4] ss:$8 sps:$4 sm:$0xff]   ;;  %v982_v1 = vld [vmem:[%s1234_s14 + $0xf0] ss:$8 sps:$4 sm:$0xff]   ;;  %s1346_s21 = smov (!%p419_p0, %s837_s21), 3  ;;  %v674_v5 = vsub.s32 0, %v673_v4 }
  0x3a   : > { %635 = vmatprep.subr.bf16.mxu0 %v944_v40  ;;  %s421_s26 = scalar_lea.vmem %s1333_s2, %s1346_s21  ;;  %s426_s5 = scalar_lea.vmem %s1334_s3, %s1346_s21  ;;  %v678_v7 = vsub.s32 1, %v673_v4 }
  0x3b   : > { %v670_v6 = vld [vmem:[%s421_s26] sm:$0x3]  ;;  %s836_s6 = sshll.u32 %s1224_s10, 4  ;;  %s879_s7 = sshll.u32 %s1055_s18, 8 }
  0x3c   : > { %v684_v8 = vld [vmem:[%s426_s5] sm:$0x3]  ;;  %v675_v9 = vrot.slane %v670_v6, %v674_v5  ;;  %v679_v10 = vrot.slane %v670_v6, %v678_v7  ;;  %s411_s8 = scalar_lea.vmem [#allocation3], %s836_s6  ;;  %s1282_s13 = scalar_lea.hbm %s1335_s4, %s879_s7 }
  0x3d   : > { %636 = vmatpush1.bf16.msra.mxu0 %v946_v41  ;;  %v689_v11 = vrot.slane %v684_v8, %v674_v5  ;;  %v693_v13 = vrot.slane %v684_v8, %v678_v7  ;;  %s717_s9 = sshll.u32 %s411_s8, 4  ;;  %s701_s18 = scalar_lea.sflag [#allocation4], %s1224_s10  ;;  %s1284_s9 = int_to_ptr.vmem [resolvable:$true] %s717_s9 }
  0x3e   : > { %637 = vmatprep.subr.bf16.mxu0 %v947_v42  ;;  %s985_s14 = scalar_lea.vmem %s1284_s9, 256  ;;  %s1065_s21 = smov [#allocation3]  }
  0x3f   : > { %p986_p1 = scmp.ne.s32.totalorder %s1284_s9, %s985_s14  ;;  %s989_s22 = sshll.u32 %s1065_s21, 4  ;;  %s990_s22 = int_to_ptr.vmem [resolvable:$false] %s989_s22 }
  0x40   : > { %s991_s24 = scalar_lea.vmem %s990_s22, 512  ;;  %p992_p4 = scmp.lt.s32.totalorder %s1284_s9, %s990_s22 }
  0x41   : > { %638 = vmatpush1.bf16.msra.mxu0 %v949_v43  ;;  %p987_p2 = pnand %p986_p1, %p1130_p5  ;;  %p993_p6 = scmp.lt.s32.totalorder %s991_s24, %s985_s14 }
  0x42   : > { %639 = vmatprep.subr.bf16.mxu0 %v950_v44 }
  0x43   : > { %p988_p3 = pneg %p987_p2  ;;  %p994_p7 = por %p993_p6, %p992_p4 }
  0x45   : > { %640 = vmatpush1.bf16.msra.mxu0 %v952_v45  ;;  %p995_p8 = pnand %p994_p7, %p988_p3 }
  0x46   : > { %641 = vmatprep.subr.bf16.mxu0 %v953_v46 }
  0x49   : > { %642 = vmatpush1.bf16.msra.mxu0 %v955_v47 }
  0x4a   : > { %643 = vmatprep.subr.bf16.mxu0 %v956_v48 }
  0x4d   : > { %644 = vmatpush1.bf16.msra.mxu0 %v958_v49 }
  0x4e   : > { %645 = vmatprep.subr.bf16.mxu0 %v959_v50 }
  0x51   : > { %646 = vmatpush1.bf16.msra.mxu0 %v961_v51 }
  0x52   : > { %647 = vmatprep.subr.bf16.mxu0 %v962_v52 }
  0x55   : > { %648 = vmatpush1.bf16.msra.mxu0 %v964_v53 }
  0x56   : > { %649 = vmatprep.subr.bf16.mxu0 %v965_v54 }
  0x59   : > { %650 = vmatpush1.bf16.msra.mxu0 %v967_v55 }
  0x5a   : > { %651 = vmatprep.subr.bf16.mxu0 %v968_v56 }
  0x5d   : > { %652 = vmatpush1.bf16.msra.mxu0 %v970_v57 }
  0x5e   : > { %653 = vmatprep.subr.bf16.mxu0 %v971_v58 }
  0x61   : > { %654 = vmatpush1.bf16.msra.mxu0 %v973_v59 }
  0x62   : > { %655 = vmatprep.subr.bf16.mxu0 %v974_v60 }
  0x65   : > { %656 = vmatpush1.bf16.msra.mxu0 %v976_v61 }
  0x66   : > { %657 = vmatprep.subr.bf16.mxu0 %v977_v62 }
  0x69   : > { %658 = vmatpush1.bf16.msra.mxu0 %v979_v63 }
  0x6a   : > { %659 = vmatprep.subr.bf16.mxu0 %v980_v0 }
  0x6d   : > { %660 = vmatpush1.bf16.msra.mxu0 %v982_v1 }
  0x70   : > { %662 = vmatmul.mubr.bf16.vlgmr.msra.gmra.mrb[0].mxu0 %v839_v2 }
 0x143   : > { %v663_v12 = vpop.f32.mrb[0].mxu0 }
 0x144   : > { %v682_v14 = vmul.f32 %v675_v9, %v663_v12  ;;  %v665_v15 = vpop.f32.mrb[1].mxu0 }
 0x145   : > { %v683_v16 = vmul.f32 %v679_v10, %v665_v15  ;;  %v667_v17 = vpop.f32.mrb[2].mxu0 }
 0x146   : > { %v696_v18 = vadd.f32 %v689_v11, %v682_v14  ;;  %v668_v19 = vpop.f32.mrb[3].mxu0 }
 0x147   : > { %v697_v20 = vadd.f32 %v693_v13, %v683_v16 }
 0x148   : > { %698 = vst [vmem:[%s411_s8] sm:$0xff] %v696_v18 }
 0x149   : > { %699 = vst [vmem:[%s411_s8 + $0x8] sm:$0xff] %v697_v20 }
 0x14a   : > { %998 = shalt.err (!%p995_p8)
}
 0x14b   : > { %s999_s10 = scalar_lea.hbm %s1282_s13, 256  ;;  %s1003_s30 = scalar_lea.hbm %s1335_s4, 512 }
 0x14c   : > { %p1000_p11 = scmp.ne.s32.totalorder %s1282_s13, %s999_s10  ;;  %p1004_p0 = scmp.lt.u32.totalorder %s1282_s13, %s1335_s4 }
 0x14d   : > { %p1005_p1 = scmp.lt.u32.totalorder %s1003_s30, %s999_s10  ;;  %p1007_p3 = scmp.lt.u32.totalorder %s999_s10, %s1282_s13 }
 0x14e   : > { %p1001_p12 = pnand %p1000_p11, %p1130_p5 }
 0x14f   : > { %p1006_p2 = por %p1005_p1, %p1004_p0 }
 0x150   : > { %p1002_p13 = pneg %p1001_p12 }
 0x151   : > { %p1008_p4 = por %p1007_p3, %p1006_p2 }
 0x153   : > { %p1009_p6 = pnand %p1008_p4, %p1002_p13 }
 0x155   : > { %1012 = shalt.err (!%p1009_p6)
}
 0x156   : > { %880 = dma.vmem_to_hbm [thread:$0]  (%p1130_p5), %s1284_s9, 256, %s1282_s13, %s701_s18  }
 0x157 PF: > { %s729_s7 = sand.u32 1, %s1043_s15   ;;  %p883_p7 = pnand %p830_p10, %p1141_p9 }
 0x158   : > { %s730_s8 = scalar_lea.sflag [#allocation4], %s729_s7 }
 0x159   : > { %1038 = dma.done.wait (!%p883_p7), %s730_s8, 256  }
 0x15a   : > { %1040 = vsyncadd (!%p883_p7), %s730_s8, 4294967040  ;;  %s17_s20 = sadd.s32 1, %s1063_s20   ;;  %s1338_s15 = smov %s1047_s16 }
 0x15b   : > { %p14_p8 = scmp.ge.s32.totalorder %s17_s20, 4   ;;  %s1339_s16 = smov %s1051_s17 }
 0x15c   : > { %s1340_s17 = smov %s1139_s27  ;;  %s1341_s18 = smov %s1059_s19 }
 0x15d   : > { %s1342_s19 = smov %s1344_s23  ;;  %16 = sbr.rel (!%p14_p8) target bundleno = 4 (0x4), region = 123 }
 0x164   :  { %735 = vsyncpa [#allocation4], 1 }
 0x165   :  { %737 = vsyncpa [#allocation4 + $0x1], 1 }

</bundles_post_ra>
